<compile_context>
chip_gen: v7x
topology: tpu7x:2x2x1
jax: 0.10.0
libtpu: 0.0.40
codegen_flags: <defaults>
</compile_context>

<pallas_src>
import functools

import jax
import jax.numpy as jnp
from jax import lax
from jax.experimental import pallas as pl
from jax.experimental.pallas import tpu as pltpu


def _sinkhorn_kernel(q0_ref, p_ref, thr_ref, s_ref, sbt_ref, sat_ref,
                     q_out_ref, *, a_dim, eps, n_chunks, chunk):
    f32 = jnp.float32
    Q0 = q0_ref[...]          # [C, N]     flat joint, N = A*B, n = a*B + b
    p_cat = p_ref[...]        # [C, A+B]   [p1 | p2] target marginals
    thr_cat = thr_ref[...]    # [C, A+B]   atol * p
    S = s_ref[...]            # [N, A+B]   [S_B | S_A]: Q @ S -> both marginals
    S_BT = sbt_ref[...]       # [A, N]     broadcast [C, A] -> [C, N]
    S_AT = sat_ref[...]       # [B, N]     broadcast [C, B] -> [C, N]

    # loop-invariant slices (done once, outside the iteration loop)
    p1 = p_cat[:, :a_dim]
    p2 = p_cat[:, a_dim:]
    thr1 = thr_cat[:, :a_dim]
    thr2 = thr_cat[:, a_dim:]

    # f32-accurate MXU dots: default precision rounds operands to bf16, which
    # would put the marginals ~1e-3 off and kill the atol*p early exit.
    dot_h = functools.partial(jnp.dot, precision=lax.Precision.HIGHEST,
                              preferred_element_type=jnp.float32)

    def recip(x):
        return pl.reciprocal(x, approx=False)

    def sinkhorn_step(Q, nanflag, with_check):
        # fused marginals of the current joint (single MXU issue)
        QS = dot_h(Q, S)                                          # [C, A+B]
        m12 = jnp.max(jnp.abs(QS - p_cat) - thr_cat, axis=1, keepdims=True)
        cond1 = m12 <= 0.0                                        # [C, 1]

        # column step: rescale so the x2-marginal matches p2
        q_x2 = QS[:, a_dim:]                                      # [C, B]
        col_scale = p2 * recip(jnp.maximum(q_x2, eps))            # [C, B]
        Q_col = Q * dot_h(col_scale, S_AT)                        # [C, N]

        QcS = dot_h(Q_col, S)                                     # [C, A+B]
        row_sum = QcS[:, :a_dim]                                  # [C, A]
        m3 = jnp.max(jnp.abs(row_sum - p1) - thr1, axis=1, keepdims=True)
        cond2 = m3 <= 0.0

        # row step: rescale so the x1-marginal matches p1
        row_scale = p1 * recip(jnp.maximum(row_sum, eps))         # [C, A]
        Q_row = Q_col * dot_h(row_scale, S_BT)                    # [C, N]

        # per-class early-return semantics of sinkhorn_probs()
        Q_sk = jnp.where(cond1, Q, jnp.where(cond2, Q_col, Q_row))

        # stack(...).clip(min=eps) + renormalize the class-conditional
        new_Q = jnp.maximum(Q_sk, eps)
        q_x1_x2 = jnp.sum(new_Q, axis=0, keepdims=True)           # [1, N]
        q_ygx = jnp.clip(new_Q * recip(q_x1_x2), eps, 1.0)
        new_Q = q_ygx * recip(jnp.sum(q_ygx, axis=0, keepdims=True)) * q_x1_x2

        # sticky NaN guard (vector only): on NaN keep the last good Q
        nan_now = jnp.max(jnp.where(jnp.isnan(new_Q), 1.0, 0.0),
                          axis=1, keepdims=True)
        nan_now = jnp.max(nan_now, axis=0, keepdims=True)         # [1, 1]
        nanflag = jnp.maximum(nanflag, nan_now)
        Q_next = jnp.where(nanflag > 0.0, Q, new_Q)

        if with_check:
            # m4 only feeds the stop metric, so compute it on check steps only
            QrS = dot_h(Q_row, S)
            m4 = jnp.max(jnp.abs(QrS[:, a_dim:] - p2) - thr2,
                         axis=1, keepdims=True)
            stop_metric = jnp.minimum(m12, jnp.minimum(m3, m4))   # [C, 1]
            return Q_next, nanflag, stop_metric
        return Q_next, nanflag

    def chunk_body(carry):
        Q, ci, _done = carry
        nanflag = jnp.zeros((1, 1), f32)

        def fast(_, c):
            return sinkhorn_step(c[0], c[1], with_check=False)

        # K-1 unrolled steps with no scalar extraction / branch
        Q, nanflag = lax.fori_loop(0, chunk - 1, fast, (Q, nanflag),
                                   unroll=True)
        # final step of the chunk also evaluates the stop metric
        Q, nanflag, stop_metric = sinkhorn_step(Q, nanflag, with_check=True)

        has_nan = jnp.max(nanflag) > 0.0
        all_stop = jnp.max(stop_metric) <= 0.0
        done = jnp.logical_or(has_nan, all_stop)
        return Q, ci + jnp.int32(1), done

    def cond_fn(carry):
        _, ci, done = carry
        return jnp.logical_and(ci < jnp.int32(n_chunks),
                               jnp.logical_not(done))

    init = (Q0, jnp.int32(0), jnp.array(False))
    Q_final, _, _ = lax.while_loop(cond_fn, chunk_body, init)
    q_out_ref[...] = Q_final


@functools.partial(jax.jit,
                   static_argnames=("atol", "eps", "sinkhorn_iterations"))
def qbuilder_forward(x1, x2, w1, b1, w2, b2, p_y_given_x1, p_y_given_x2,
                     atol=1e-6, eps=1e-8, sinkhorn_iterations=200):
    """QBuilder.forward; returns Q in PyTorch layout [A, B, n_classes]."""
    f32 = jnp.float32
    x1 = x1.astype(f32); x2 = x2.astype(f32)
    w1 = w1.astype(f32); b1 = b1.astype(f32)
    w2 = w2.astype(f32); b2 = b2.astype(f32)
    py1 = p_y_given_x1.astype(f32); py2 = p_y_given_x2.astype(f32)

    A, C = py1.shape
    B = py2.shape[0]
    N = A * B

    # ---- one-shot preprocessing (plain XLA; off the kernel critical path) --
    # TODO(synk): MLP class is not given in the reference; layers=[] is taken
    # to mean a single Linear(in_dims, n_classes) with no activation/dropout.
    q1 = x1 @ w1 + b1[None, :]                                   # [A, C]
    q2 = x2 @ w2 + b2[None, :]                                   # [B, C]

    def standardize(q):
        n = q.shape[0]
        mean = jnp.mean(q, axis=0, keepdims=True)
        var = jnp.sum((q - mean) ** 2, axis=0, keepdims=True) / (n - 1)
        return (q - mean) / (jnp.sqrt(var) + eps)                # unbiased std

    q1 = standardize(q1)
    q2 = standardize(q2)

    # Q[a, b, c] = exp(q1[a, c] * q2[b, c]); normalize() divides by the sum of
    # the eps-clamped copy, exactly as the reference.
    E = jnp.exp(jnp.einsum("ah,bh->abh", q1, q2))                # [A, B, C]
    Q0 = E / jnp.sum(jnp.maximum(E, eps))
    Q0_flat = jnp.transpose(Q0, (2, 0, 1)).reshape(C, N)         # lane-dense

    # Target marginals.  The reference uses p_x = 1/len(p_y_given_x1) for BOTH
    # marginals (even when A != B); kept verbatim to match the module.
    p_x = 1.0 / A
    p1 = (py1 * p_x).T                                           # [C, A]
    p2 = (py2 * p_x).T                                           # [C, B]
    p_cat = jnp.concatenate([p1, p2], axis=1)                    # [C, A+B]
    thr_cat = jnp.float32(atol) * p_cat                          # atol * p

    # 0/1 summation matrices for MXU segmented reductions / broadcasts on the
    # flat [C, A*B] layout.  S fuses both marginal reductions in one dot.
    n_idx = jnp.arange(N)
    S_B = (n_idx[:, None] // B == jnp.arange(A)[None, :]).astype(f32)  # [N, A]
    S_A = (n_idx[:, None] % B == jnp.arange(B)[None, :]).astype(f32)   # [N, B]
    S = jnp.concatenate([S_B, S_A], axis=1)                            # [N,A+B]
    S_BT = S_B.T                                                       # [A, N]
    S_AT = S_A.T                                                       # [B, N]

    # Chunked early-exit: K Sinkhorn steps per scalar convergence check.
    chunk = next(k for k in (4, 8, 5, 2, 1) if sinkhorn_iterations % k == 0)
    n_chunks = sinkhorn_iterations // chunk

    # Dense-S scheme scales as O(A*B*(A+B)); keep well under VMEM (v7x has the
    # smallest budget).  If this ever trips, tile the N axis or drop dense S.
    assert 4 * 2 * N * (A + B) < 16 * 2**20, "S matrices too large for VMEM"

    flops = int(sinkhorn_iterations * (4 * 2 * C * N * (A + B) + 16 * C * N))
    transcendentals = int(sinkhorn_iterations * (2 * N + C * (A + B)))
    bytes_accessed = int(4 * (2 * C * N + 2 * C * (A + B) + 2 * N * (A + B)))

    kernel = functools.partial(_sinkhorn_kernel, a_dim=A, eps=eps,
                               n_chunks=n_chunks, chunk=chunk)
    vmem = pl.BlockSpec(memory_space=pltpu.MemorySpace.VMEM)
    q_flat = pl.pallas_call(
        kernel,
        out_shape=jax.ShapeDtypeStruct((C, N), f32),
        in_specs=[vmem] * 6,
        out_specs=vmem,
        cost_estimate=pl.CostEstimate(flops=flops,
                                      transcendentals=transcendentals,
                                      bytes_accessed=bytes_accessed),
    )(Q0_flat, p_cat, thr_cat, S, S_BT, S_AT)

    # back to PyTorch layout: Q[a, b, class]
    return jnp.transpose(q_flat.reshape(C, A, B), (1, 2, 0))


if __name__ == "__main__":
    key = jax.random.PRNGKey(0)
    A, B, C = 16, 8, 2          # batch of x1, batch of x2, n_classes
    D1, D2 = 16, 32             # in_dims = (D1, D2)
    k = jax.random.split(key, 8)

    x1 = jax.random.normal(k[0], (A, D1), jnp.float32)
    x2 = jax.random.normal(k[1], (B, D2), jnp.float32)

    # deterministic Linear(in_dims, n_classes) params (torch-style uniform init)
    lim1, lim2 = 1.0 / (D1 ** 0.5), 1.0 / (D2 ** 0.5)
    w1 = jax.random.uniform(k[2], (D1, C), jnp.float32, -lim1, lim1)
    b1 = jax.random.uniform(k[3], (C,), jnp.float32, -lim1, lim1)
    w2 = jax.random.uniform(k[4], (D2, C), jnp.float32, -lim2, lim2)
    b2 = jax.random.uniform(k[5], (C,), jnp.float32, -lim2, lim2)

    # p(y|x) tables: each row a valid distribution over n_classes
    p_y_given_x1 = jax.nn.softmax(jax.random.normal(k[6], (A, C)), axis=-1)
    p_y_given_x2 = jax.nn.softmax(jax.random.normal(k[7], (B, C)), axis=-1)

    Q = qbuilder_forward(x1, x2, w1, b1, w2, b2, p_y_given_x1, p_y_given_x2)
    Q = jax.block_until_ready(Q)

    assert Q.shape == (A, B, C), Q.shape
    assert bool(jnp.all(jnp.isfinite(Q)))
    print("KERNEL_OK")
</pallas_src>

<mosaic_0001>
module attributes {stable_mosaic.version = 11 : i64} {
  func.func @_sinkhorn_kernel(%arg0: memref<2x128xf32, #tpu.memory_space<vmem>>, %arg1: memref<2x24xf32, #tpu.memory_space<vmem>>, %arg2: memref<2x24xf32, #tpu.memory_space<vmem>>, %arg3: memref<128x24xf32, #tpu.memory_space<vmem>>, %arg4: memref<16x128xf32, #tpu.memory_space<vmem>>, %arg5: memref<8x128xf32, #tpu.memory_space<vmem>>, %arg6: memref<2x128xf32, #tpu.memory_space<vmem>>) attributes {dimension_semantics = [], scalar_prefetch = 0 : i64, scratch_operands = 0 : i64, tpu.core_type = #tpu.core_type<tc>} {
    %c0 = arith.constant 0 : index
    %c0_0 = arith.constant 0 : index
    %0 = vector.load %arg0[%c0, %c0_0] : memref<2x128xf32, #tpu.memory_space<vmem>>, vector<2x128xf32>
    %c0_1 = arith.constant 0 : index
    %c0_2 = arith.constant 0 : index
    %1 = vector.load %arg1[%c0_1, %c0_2] : memref<2x24xf32, #tpu.memory_space<vmem>>, vector<2x24xf32>
    %c0_3 = arith.constant 0 : index
    %c0_4 = arith.constant 0 : index
    %2 = vector.load %arg2[%c0_3, %c0_4] : memref<2x24xf32, #tpu.memory_space<vmem>>, vector<2x24xf32>
    %c0_5 = arith.constant 0 : index
    %c0_6 = arith.constant 0 : index
    %3 = vector.load %arg3[%c0_5, %c0_6] : memref<128x24xf32, #tpu.memory_space<vmem>>, vector<128x24xf32>
    %c0_7 = arith.constant 0 : index
    %c0_8 = arith.constant 0 : index
    %4 = vector.load %arg4[%c0_7, %c0_8] : memref<16x128xf32, #tpu.memory_space<vmem>>, vector<16x128xf32>
    %c0_9 = arith.constant 0 : index
    %c0_10 = arith.constant 0 : index
    %5 = vector.load %arg5[%c0_9, %c0_10] : memref<8x128xf32, #tpu.memory_space<vmem>>, vector<8x128xf32>
    %6 = vector.extract_strided_slice %1 {offsets = [0, 0], sizes = [2, 16], strides = [1, 1]} : vector<2x24xf32> to vector<2x16xf32>
    %7 = vector.extract_strided_slice %1 {offsets = [0, 16], sizes = [2, 8], strides = [1, 1]} : vector<2x24xf32> to vector<2x8xf32>
    %8 = vector.extract_strided_slice %2 {offsets = [0, 0], sizes = [2, 16], strides = [1, 1]} : vector<2x24xf32> to vector<2x16xf32>
    %9 = vector.extract_strided_slice %2 {offsets = [0, 16], sizes = [2, 8], strides = [1, 1]} : vector<2x24xf32> to vector<2x8xf32>
    %c0_i32 = arith.constant 0 : i32
    %false = arith.constant false
    %10:3 = scf.while (%arg7 = %0, %arg8 = %c0_i32, %arg9 = %false) : (vector<2x128xf32>, i32, i1) -> (vector<2x128xf32>, i32, i1) {
      %c50_i32 = arith.constant 50 : i32
      %12 = arith.cmpi slt, %arg8, %c50_i32 : i32
      %true = arith.constant true
      %13 = arith.xori %arg9, %true : i1
      %14 = arith.andi %12, %13 : i1
      scf.condition(%14) %arg7, %arg8, %arg9 : vector<2x128xf32>, i32, i1
    } do {
    ^bb0(%arg7: vector<2x128xf32>, %arg8: i32, %arg9: i1):
      %cst = arith.constant 0.000000e+00 : f32
      %12 = vector.broadcast %cst : f32 to vector<1x1xf32>
      %c0_i32_13 = arith.constant 0 : i32
      %cst_14 = arith.constant dense<0.000000e+00> : vector<2x24xf32>
      %13 = tpu.matmul %arg7, %3, %cst_14 {dimension_numbers = #tpu.dot_dimension_numbers<[1], [0], [0], [1], [0, 0, 1, 1], [], []>, precision = #tpu.contract_precision<fp32>} : vector<2x128xf32>, vector<128x24xf32>, vector<2x24xf32> -> vector<2x24xf32>
      %14 = arith.subf %13, %1 : vector<2x24xf32>
      %15 = math.absf %14 : vector<2x24xf32>
      %16 = arith.subf %15, %2 : vector<2x24xf32>
      %cst_15 = arith.constant dense<0xFF800000> : vector<2xf32>
      %17 = vector.multi_reduction <maximumf>, %16, %cst_15 [1] : vector<2x24xf32> to vector<2xf32>
      %18 = vector.shape_cast %17 : vector<2xf32> to vector<2x1xf32>
      %cst_16 = arith.constant 0.000000e+00 : f32
      %19 = vector.broadcast %cst_16 : f32 to vector<2x1xf32>
      %20 = arith.cmpf ole, %18, %19 : vector<2x1xf32>
      %21 = vector.extract_strided_slice %13 {offsets = [0, 16], sizes = [2, 8], strides = [1, 1]} : vector<2x24xf32> to vector<2x8xf32>
      %cst_17 = arith.constant 9.99999993E-9 : f32
      %22 = vector.broadcast %cst_17 : f32 to vector<2x8xf32>
      %23 = arith.maximumf %21, %22 : vector<2x8xf32>
      %24 = tpu.reciprocal %23 : vector<2x8xf32> -> vector<2x8xf32>
      %25 = arith.mulf %7, %24 : vector<2x8xf32>
      %cst_18 = arith.constant dense<0.000000e+00> : vector<2x128xf32>
      %26 = tpu.matmul %25, %5, %cst_18 {dimension_numbers = #tpu.dot_dimension_numbers<[1], [0], [0], [1], [0, 0, 1, 1], [], []>, precision = #tpu.contract_precision<fp32>} : vector<2x8xf32>, vector<8x128xf32>, vector<2x128xf32> -> vector<2x128xf32>
      %27 = arith.mulf %arg7, %26 : vector<2x128xf32>
      %cst_19 = arith.constant dense<0.000000e+00> : vector<2x24xf32>
      %28 = tpu.matmul %27, %3, %cst_19 {dimension_numbers = #tpu.dot_dimension_numbers<[1], [0], [0], [1], [0, 0, 1, 1], [], []>, precision = #tpu.contract_precision<fp32>} : vector<2x128xf32>, vector<128x24xf32>, vector<2x24xf32> -> vector<2x24xf32>
      %29 = vector.extract_strided_slice %28 {offsets = [0, 0], sizes = [2, 16], strides = [1, 1]} : vector<2x24xf32> to vector<2x16xf32>
      %30 = arith.subf %29, %6 : vector<2x16xf32>
      %31 = math.absf %30 : vector<2x16xf32>
      %32 = arith.subf %31, %8 : vector<2x16xf32>
      %cst_20 = arith.constant dense<0xFF800000> : vector<2xf32>
      %33 = vector.multi_reduction <maximumf>, %32, %cst_20 [1] : vector<2x16xf32> to vector<2xf32>
      %34 = vector.shape_cast %33 : vector<2xf32> to vector<2x1xf32>
      %cst_21 = arith.constant 0.000000e+00 : f32
      %35 = vector.broadcast %cst_21 : f32 to vector<2x1xf32>
      %36 = arith.cmpf ole, %34, %35 : vector<2x1xf32>
      %cst_22 = arith.constant 9.99999993E-9 : f32
      %37 = vector.broadcast %cst_22 : f32 to vector<2x16xf32>
      %38 = arith.maximumf %29, %37 : vector<2x16xf32>
      %39 = tpu.reciprocal %38 : vector<2x16xf32> -> vector<2x16xf32>
      %40 = arith.mulf %6, %39 : vector<2x16xf32>
      %cst_23 = arith.constant dense<0.000000e+00> : vector<2x128xf32>
      %41 = tpu.matmul %40, %4, %cst_23 {dimension_numbers = #tpu.dot_dimension_numbers<[1], [0], [0], [1], [0, 0, 1, 1], [], []>, precision = #tpu.contract_precision<fp32>} : vector<2x16xf32>, vector<16x128xf32>, vector<2x128xf32> -> vector<2x128xf32>
      %42 = arith.mulf %27, %41 : vector<2x128xf32>
      %43 = vector.shape_cast %36 : vector<2x1xi1> to vector<2x1xi1>
      %44 = vector.broadcast %43 : vector<2x1xi1> to vector<2x128xi1>
      %45 = arith.select %44, %27, %42 : vector<2x128xi1>, vector<2x128xf32>
      %46 = vector.shape_cast %20 : vector<2x1xi1> to vector<2x1xi1>
      %47 = vector.broadcast %46 : vector<2x1xi1> to vector<2x128xi1>
      %48 = arith.select %47, %arg7, %45 : vector<2x128xi1>, vector<2x128xf32>
      %cst_24 = arith.constant 9.99999993E-9 : f32
      %49 = vector.broadcast %cst_24 : f32 to vector<2x128xf32>
      %50 = arith.maximumf %48, %49 : vector<2x128xf32>
      %cst_25 = arith.constant dense<0.000000e+00> : vector<128xf32>
      %51 = vector.multi_reduction <add>, %50, %cst_25 [0] : vector<2x128xf32> to vector<128xf32>
      %52 = vector.shape_cast %51 : vector<128xf32> to vector<1x128xf32>
      %53 = tpu.reciprocal %52 : vector<1x128xf32> -> vector<1x128xf32>
      %54 = vector.broadcast %53 : vector<1x128xf32> to vector<2x128xf32>
      %55 = arith.mulf %50, %54 : vector<2x128xf32>
      %cst_26 = arith.constant 9.99999993E-9 : f32
      %cst_27 = arith.constant 1.000000e+00 : f32
      %56 = vector.broadcast %cst_26 : f32 to vector<2x128xf32>
      %57 = arith.maximumf %56, %55 : vector<2x128xf32>
      %58 = vector.broadcast %cst_27 : f32 to vector<2x128xf32>
      %59 = arith.minimumf %58, %57 : vector<2x128xf32>
      %cst_28 = arith.constant dense<0.000000e+00> : vector<128xf32>
      %60 = vector.multi_reduction <add>, %59, %cst_28 [0] : vector<2x128xf32> to vector<128xf32>
      %61 = vector.shape_cast %60 : vector<128xf32> to vector<1x128xf32>
      %62 = tpu.reciprocal %61 : vector<1x128xf32> -> vector<1x128xf32>
      %63 = vector.broadcast %62 : vector<1x128xf32> to vector<2x128xf32>
      %64 = arith.mulf %59, %63 : vector<2x128xf32>
      %65 = vector.broadcast %52 : vector<1x128xf32> to vector<2x128xf32>
      %66 = arith.mulf %64, %65 : vector<2x128xf32>
      %67 = arith.cmpf one, %66, %66 : vector<2x128xf32>
      %cst_29 = arith.constant 1.000000e+00 : f32
      %cst_30 = arith.constant 0.000000e+00 : f32
      %68 = vector.broadcast %cst_29 : f32 to vector<2x128xf32>
      %69 = vector.broadcast %cst_30 : f32 to vector<2x128xf32>
      %70 = arith.select %67, %68, %69 : vector<2x128xi1>, vector<2x128xf32>
      %cst_31 = arith.constant dense<0xFF800000> : vector<2xf32>
      %71 = vector.multi_reduction <maximumf>, %70, %cst_31 [1] : vector<2x128xf32> to vector<2xf32>
      %72 = vector.shape_cast %71 : vector<2xf32> to vector<2x1xf32>
      %cst_32 = arith.constant dense<0xFF800000> : vector<1xf32>
      %73 = vector.multi_reduction <maximumf>, %72, %cst_32 [0] : vector<2x1xf32> to vector<1xf32>
      %74 = vector.shape_cast %73 : vector<1xf32> to vector<1x1xf32>
      %75 = arith.maximumf %12, %74 : vector<1x1xf32>
      %cst_33 = arith.constant 0.000000e+00 : f32
      %76 = vector.broadcast %cst_33 : f32 to vector<1x1xf32>
      %77 = arith.cmpf ogt, %75, %76 : vector<1x1xf32>
      %78 = vector.shape_cast %77 : vector<1x1xi1> to vector<1x1xi1>
      %79 = vector.broadcast %78 : vector<1x1xi1> to vector<2x128xi1>
      %80 = arith.select %79, %arg7, %66 : vector<2x128xi1>, vector<2x128xf32>
      %c1_i32 = arith.constant 1 : i32
      %cst_34 = arith.constant dense<0.000000e+00> : vector<2x24xf32>
      %81 = tpu.matmul %80, %3, %cst_34 {dimension_numbers = #tpu.dot_dimension_numbers<[1], [0], [0], [1], [0, 0, 1, 1], [], []>, precision = #tpu.contract_precision<fp32>} : vector<2x128xf32>, vector<128x24xf32>, vector<2x24xf32> -> vector<2x24xf32>
      %82 = arith.subf %81, %1 : vector<2x24xf32>
      %83 = math.absf %82 : vector<2x24xf32>
      %84 = arith.subf %83, %2 : vector<2x24xf32>
      %cst_35 = arith.constant dense<0xFF800000> : vector<2xf32>
      %85 = vector.multi_reduction <maximumf>, %84, %cst_35 [1] : vector<2x24xf32> to vector<2xf32>
      %86 = vector.shape_cast %85 : vector<2xf32> to vector<2x1xf32>
      %cst_36 = arith.constant 0.000000e+00 : f32
      %87 = vector.broadcast %cst_36 : f32 to vector<2x1xf32>
      %88 = arith.cmpf ole, %86, %87 : vector<2x1xf32>
      %89 = vector.extract_strided_slice %81 {offsets = [0, 16], sizes = [2, 8], strides = [1, 1]} : vector<2x24xf32> to vector<2x8xf32>
      %cst_37 = arith.constant 9.99999993E-9 : f32
      %90 = vector.broadcast %cst_37 : f32 to vector<2x8xf32>
      %91 = arith.maximumf %89, %90 : vector<2x8xf32>
      %92 = tpu.reciprocal %91 : vector<2x8xf32> -> vector<2x8xf32>
      %93 = arith.mulf %7, %92 : vector<2x8xf32>
      %cst_38 = arith.constant dense<0.000000e+00> : vector<2x128xf32>
      %94 = tpu.matmul %93, %5, %cst_38 {dimension_numbers = #tpu.dot_dimension_numbers<[1], [0], [0], [1], [0, 0, 1, 1], [], []>, precision = #tpu.contract_precision<fp32>} : vector<2x8xf32>, vector<8x128xf32>, vector<2x128xf32> -> vector<2x128xf32>
      %95 = arith.mulf %80, %94 : vector<2x128xf32>
      %cst_39 = arith.constant dense<0.000000e+00> : vector<2x24xf32>
      %96 = tpu.matmul %95, %3, %cst_39 {dimension_numbers = #tpu.dot_dimension_numbers<[1], [0], [0], [1], [0, 0, 1, 1], [], []>, precision = #tpu.contract_precision<fp32>} : vector<2x128xf32>, vector<128x24xf32>, vector<2x24xf32> -> vector<2x24xf32>
      %97 = vector.extract_strided_slice %96 {offsets = [0, 0], sizes = [2, 16], strides = [1, 1]} : vector<2x24xf32> to vector<2x16xf32>
      %98 = arith.subf %97, %6 : vector<2x16xf32>
      %99 = math.absf %98 : vector<2x16xf32>
      %100 = arith.subf %99, %8 : vector<2x16xf32>
      %cst_40 = arith.constant dense<0xFF800000> : vector<2xf32>
      %101 = vector.multi_reduction <maximumf>, %100, %cst_40 [1] : vector<2x16xf32> to vector<2xf32>
      %102 = vector.shape_cast %101 : vector<2xf32> to vector<2x1xf32>
      %cst_41 = arith.constant 0.000000e+00 : f32
      %103 = vector.broadcast %cst_41 : f32 to vector<2x1xf32>
      %104 = arith.cmpf ole, %102, %103 : vector<2x1xf32>
      %cst_42 = arith.constant 9.99999993E-9 : f32
      %105 = vector.broadcast %cst_42 : f32 to vector<2x16xf32>
      %106 = arith.maximumf %97, %105 : vector<2x16xf32>
      %107 = tpu.reciprocal %106 : vector<2x16xf32> -> vector<2x16xf32>
      %108 = arith.mulf %6, %107 : vector<2x16xf32>
      %cst_43 = arith.constant dense<0.000000e+00> : vector<2x128xf32>
      %109 = tpu.matmul %108, %4, %cst_43 {dimension_numbers = #tpu.dot_dimension_numbers<[1], [0], [0], [1], [0, 0, 1, 1], [], []>, precision = #tpu.contract_precision<fp32>} : vector<2x16xf32>, vector<16x128xf32>, vector<2x128xf32> -> vector<2x128xf32>
      %110 = arith.mulf %95, %109 : vector<2x128xf32>
      %111 = vector.shape_cast %104 : vector<2x1xi1> to vector<2x1xi1>
      %112 = vector.broadcast %111 : vector<2x1xi1> to vector<2x128xi1>
      %113 = arith.select %112, %95, %110 : vector<2x128xi1>, vector<2x128xf32>
      %114 = vector.shape_cast %88 : vector<2x1xi1> to vector<2x1xi1>
      %115 = vector.broadcast %114 : vector<2x1xi1> to vector<2x128xi1>
      %116 = arith.select %115, %80, %113 : vector<2x128xi1>, vector<2x128xf32>
      %cst_44 = arith.constant 9.99999993E-9 : f32
      %117 = vector.broadcast %cst_44 : f32 to vector<2x128xf32>
      %118 = arith.maximumf %116, %117 : vector<2x128xf32>
      %cst_45 = arith.constant dense<0.000000e+00> : vector<128xf32>
      %119 = vector.multi_reduction <add>, %118, %cst_45 [0] : vector<2x128xf32> to vector<128xf32>
      %120 = vector.shape_cast %119 : vector<128xf32> to vector<1x128xf32>
      %121 = tpu.reciprocal %120 : vector<1x128xf32> -> vector<1x128xf32>
      %122 = vector.broadcast %121 : vector<1x128xf32> to vector<2x128xf32>
      %123 = arith.mulf %118, %122 : vector<2x128xf32>
      %cst_46 = arith.constant 9.99999993E-9 : f32
      %cst_47 = arith.constant 1.000000e+00 : f32
      %124 = vector.broadcast %cst_46 : f32 to vector<2x128xf32>
      %125 = arith.maximumf %124, %123 : vector<2x128xf32>
      %126 = vector.broadcast %cst_47 : f32 to vector<2x128xf32>
      %127 = arith.minimumf %126, %125 : vector<2x128xf32>
      %cst_48 = arith.constant dense<0.000000e+00> : vector<128xf32>
      %128 = vector.multi_reduction <add>, %127, %cst_48 [0] : vector<2x128xf32> to vector<128xf32>
      %129 = vector.shape_cast %128 : vector<128xf32> to vector<1x128xf32>
      %130 = tpu.reciprocal %129 : vector<1x128xf32> -> vector<1x128xf32>
      %131 = vector.broadcast %130 : vector<1x128xf32> to vector<2x128xf32>
      %132 = arith.mulf %127, %131 : vector<2x128xf32>
      %133 = vector.broadcast %120 : vector<1x128xf32> to vector<2x128xf32>
      %134 = arith.mulf %132, %133 : vector<2x128xf32>
      %135 = arith.cmpf one, %134, %134 : vector<2x128xf32>
      %cst_49 = arith.constant 1.000000e+00 : f32
      %cst_50 = arith.constant 0.000000e+00 : f32
      %136 = vector.broadcast %cst_49 : f32 to vector<2x128xf32>
      %137 = vector.broadcast %cst_50 : f32 to vector<2x128xf32>
      %138 = arith.select %135, %136, %137 : vector<2x128xi1>, vector<2x128xf32>
      %cst_51 = arith.constant dense<0xFF800000> : vector<2xf32>
      %139 = vector.multi_reduction <maximumf>, %138, %cst_51 [1] : vector<2x128xf32> to vector<2xf32>
      %140 = vector.shape_cast %139 : vector<2xf32> to vector<2x1xf32>
      %cst_52 = arith.constant dense<0xFF800000> : vector<1xf32>
      %141 = vector.multi_reduction <maximumf>, %140, %cst_52 [0] : vector<2x1xf32> to vector<1xf32>
      %142 = vector.shape_cast %141 : vector<1xf32> to vector<1x1xf32>
      %143 = arith.maximumf %75, %142 : vector<1x1xf32>
      %cst_53 = arith.constant 0.000000e+00 : f32
      %144 = vector.broadcast %cst_53 : f32 to vector<1x1xf32>
      %145 = arith.cmpf ogt, %143, %144 : vector<1x1xf32>
      %146 = vector.shape_cast %145 : vector<1x1xi1> to vector<1x1xi1>
      %147 = vector.broadcast %146 : vector<1x1xi1> to vector<2x128xi1>
      %148 = arith.select %147, %80, %134 : vector<2x128xi1>, vector<2x128xf32>
      %c2_i32 = arith.constant 2 : i32
      %cst_54 = arith.constant dense<0.000000e+00> : vector<2x24xf32>
      %149 = tpu.matmul %148, %3, %cst_54 {dimension_numbers = #tpu.dot_dimension_numbers<[1], [0], [0], [1], [0, 0, 1, 1], [], []>, precision = #tpu.contract_precision<fp32>} : vector<2x128xf32>, vector<128x24xf32>, vector<2x24xf32> -> vector<2x24xf32>
      %150 = arith.subf %149, %1 : vector<2x24xf32>
      %151 = math.absf %150 : vector<2x24xf32>
      %152 = arith.subf %151, %2 : vector<2x24xf32>
      %cst_55 = arith.constant dense<0xFF800000> : vector<2xf32>
      %153 = vector.multi_reduction <maximumf>, %152, %cst_55 [1] : vector<2x24xf32> to vector<2xf32>
      %154 = vector.shape_cast %153 : vector<2xf32> to vector<2x1xf32>
      %cst_56 = arith.constant 0.000000e+00 : f32
      %155 = vector.broadcast %cst_56 : f32 to vector<2x1xf32>
      %156 = arith.cmpf ole, %154, %155 : vector<2x1xf32>
      %157 = vector.extract_strided_slice %149 {offsets = [0, 16], sizes = [2, 8], strides = [1, 1]} : vector<2x24xf32> to vector<2x8xf32>
      %cst_57 = arith.constant 9.99999993E-9 : f32
      %158 = vector.broadcast %cst_57 : f32 to vector<2x8xf32>
      %159 = arith.maximumf %157, %158 : vector<2x8xf32>
      %160 = tpu.reciprocal %159 : vector<2x8xf32> -> vector<2x8xf32>
      %161 = arith.mulf %7, %160 : vector<2x8xf32>
      %cst_58 = arith.constant dense<0.000000e+00> : vector<2x128xf32>
      %162 = tpu.matmul %161, %5, %cst_58 {dimension_numbers = #tpu.dot_dimension_numbers<[1], [0], [0], [1], [0, 0, 1, 1], [], []>, precision = #tpu.contract_precision<fp32>} : vector<2x8xf32>, vector<8x128xf32>, vector<2x128xf32> -> vector<2x128xf32>
      %163 = arith.mulf %148, %162 : vector<2x128xf32>
      %cst_59 = arith.constant dense<0.000000e+00> : vector<2x24xf32>
      %164 = tpu.matmul %163, %3, %cst_59 {dimension_numbers = #tpu.dot_dimension_numbers<[1], [0], [0], [1], [0, 0, 1, 1], [], []>, precision = #tpu.contract_precision<fp32>} : vector<2x128xf32>, vector<128x24xf32>, vector<2x24xf32> -> vector<2x24xf32>
      %165 = vector.extract_strided_slice %164 {offsets = [0, 0], sizes = [2, 16], strides = [1, 1]} : vector<2x24xf32> to vector<2x16xf32>
      %166 = arith.subf %165, %6 : vector<2x16xf32>
      %167 = math.absf %166 : vector<2x16xf32>
      %168 = arith.subf %167, %8 : vector<2x16xf32>
      %cst_60 = arith.constant dense<0xFF800000> : vector<2xf32>
      %169 = vector.multi_reduction <maximumf>, %168, %cst_60 [1] : vector<2x16xf32> to vector<2xf32>
      %170 = vector.shape_cast %169 : vector<2xf32> to vector<2x1xf32>
      %cst_61 = arith.constant 0.000000e+00 : f32
      %171 = vector.broadcast %cst_61 : f32 to vector<2x1xf32>
      %172 = arith.cmpf ole, %170, %171 : vector<2x1xf32>
      %cst_62 = arith.constant 9.99999993E-9 : f32
      %173 = vector.broadcast %cst_62 : f32 to vector<2x16xf32>
      %174 = arith.maximumf %165, %173 : vector<2x16xf32>
      %175 = tpu.reciprocal %174 : vector<2x16xf32> -> vector<2x16xf32>
      %176 = arith.mulf %6, %175 : vector<2x16xf32>
      %cst_63 = arith.constant dense<0.000000e+00> : vector<2x128xf32>
      %177 = tpu.matmul %176, %4, %cst_63 {dimension_numbers = #tpu.dot_dimension_numbers<[1], [0], [0], [1], [0, 0, 1, 1], [], []>, precision = #tpu.contract_precision<fp32>} : vector<2x16xf32>, vector<16x128xf32>, vector<2x128xf32> -> vector<2x128xf32>
      %178 = arith.mulf %163, %177 : vector<2x128xf32>
      %179 = vector.shape_cast %172 : vector<2x1xi1> to vector<2x1xi1>
      %180 = vector.broadcast %179 : vector<2x1xi1> to vector<2x128xi1>
      %181 = arith.select %180, %163, %178 : vector<2x128xi1>, vector<2x128xf32>
      %182 = vector.shape_cast %156 : vector<2x1xi1> to vector<2x1xi1>
      %183 = vector.broadcast %182 : vector<2x1xi1> to vector<2x128xi1>
      %184 = arith.select %183, %148, %181 : vector<2x128xi1>, vector<2x128xf32>
      %cst_64 = arith.constant 9.99999993E-9 : f32
      %185 = vector.broadcast %cst_64 : f32 to vector<2x128xf32>
      %186 = arith.maximumf %184, %185 : vector<2x128xf32>
      %cst_65 = arith.constant dense<0.000000e+00> : vector<128xf32>
      %187 = vector.multi_reduction <add>, %186, %cst_65 [0] : vector<2x128xf32> to vector<128xf32>
      %188 = vector.shape_cast %187 : vector<128xf32> to vector<1x128xf32>
      %189 = tpu.reciprocal %188 : vector<1x128xf32> -> vector<1x128xf32>
      %190 = vector.broadcast %189 : vector<1x128xf32> to vector<2x128xf32>
      %191 = arith.mulf %186, %190 : vector<2x128xf32>
      %cst_66 = arith.constant 9.99999993E-9 : f32
      %cst_67 = arith.constant 1.000000e+00 : f32
      %192 = vector.broadcast %cst_66 : f32 to vector<2x128xf32>
      %193 = arith.maximumf %192, %191 : vector<2x128xf32>
      %194 = vector.broadcast %cst_67 : f32 to vector<2x128xf32>
      %195 = arith.minimumf %194, %193 : vector<2x128xf32>
      %cst_68 = arith.constant dense<0.000000e+00> : vector<128xf32>
      %196 = vector.multi_reduction <add>, %195, %cst_68 [0] : vector<2x128xf32> to vector<128xf32>
      %197 = vector.shape_cast %196 : vector<128xf32> to vector<1x128xf32>
      %198 = tpu.reciprocal %197 : vector<1x128xf32> -> vector<1x128xf32>
      %199 = vector.broadcast %198 : vector<1x128xf32> to vector<2x128xf32>
      %200 = arith.mulf %195, %199 : vector<2x128xf32>
      %201 = vector.broadcast %188 : vector<1x128xf32> to vector<2x128xf32>
      %202 = arith.mulf %200, %201 : vector<2x128xf32>
      %203 = arith.cmpf one, %202, %202 : vector<2x128xf32>
      %cst_69 = arith.constant 1.000000e+00 : f32
      %cst_70 = arith.constant 0.000000e+00 : f32
      %204 = vector.broadcast %cst_69 : f32 to vector<2x128xf32>
      %205 = vector.broadcast %cst_70 : f32 to vector<2x128xf32>
      %206 = arith.select %203, %204, %205 : vector<2x128xi1>, vector<2x128xf32>
      %cst_71 = arith.constant dense<0xFF800000> : vector<2xf32>
      %207 = vector.multi_reduction <maximumf>, %206, %cst_71 [1] : vector<2x128xf32> to vector<2xf32>
      %208 = vector.shape_cast %207 : vector<2xf32> to vector<2x1xf32>
      %cst_72 = arith.constant dense<0xFF800000> : vector<1xf32>
      %209 = vector.multi_reduction <maximumf>, %208, %cst_72 [0] : vector<2x1xf32> to vector<1xf32>
      %210 = vector.shape_cast %209 : vector<1xf32> to vector<1x1xf32>
      %211 = arith.maximumf %143, %210 : vector<1x1xf32>
      %cst_73 = arith.constant 0.000000e+00 : f32
      %212 = vector.broadcast %cst_73 : f32 to vector<1x1xf32>
      %213 = arith.cmpf ogt, %211, %212 : vector<1x1xf32>
      %214 = vector.shape_cast %213 : vector<1x1xi1> to vector<1x1xi1>
      %215 = vector.broadcast %214 : vector<1x1xi1> to vector<2x128xi1>
      %216 = arith.select %215, %148, %202 : vector<2x128xi1>, vector<2x128xf32>
      %c3_i32 = arith.constant 3 : i32
      %cst_74 = arith.constant dense<0.000000e+00> : vector<2x24xf32>
      %217 = tpu.matmul %216, %3, %cst_74 {dimension_numbers = #tpu.dot_dimension_numbers<[1], [0], [0], [1], [0, 0, 1, 1], [], []>, precision = #tpu.contract_precision<fp32>} : vector<2x128xf32>, vector<128x24xf32>, vector<2x24xf32> -> vector<2x24xf32>
      %218 = arith.subf %217, %1 : vector<2x24xf32>
      %219 = math.absf %218 : vector<2x24xf32>
      %220 = arith.subf %219, %2 : vector<2x24xf32>
      %cst_75 = arith.constant dense<0xFF800000> : vector<2xf32>
      %221 = vector.multi_reduction <maximumf>, %220, %cst_75 [1] : vector<2x24xf32> to vector<2xf32>
      %222 = vector.shape_cast %221 : vector<2xf32> to vector<2x1xf32>
      %cst_76 = arith.constant 0.000000e+00 : f32
      %223 = vector.broadcast %cst_76 : f32 to vector<2x1xf32>
      %224 = arith.cmpf ole, %222, %223 : vector<2x1xf32>
      %225 = vector.extract_strided_slice %217 {offsets = [0, 16], sizes = [2, 8], strides = [1, 1]} : vector<2x24xf32> to vector<2x8xf32>
      %cst_77 = arith.constant 9.99999993E-9 : f32
      %226 = vector.broadcast %cst_77 : f32 to vector<2x8xf32>
      %227 = arith.maximumf %225, %226 : vector<2x8xf32>
      %228 = tpu.reciprocal %227 : vector<2x8xf32> -> vector<2x8xf32>
      %229 = arith.mulf %7, %228 : vector<2x8xf32>
      %cst_78 = arith.constant dense<0.000000e+00> : vector<2x128xf32>
      %230 = tpu.matmul %229, %5, %cst_78 {dimension_numbers = #tpu.dot_dimension_numbers<[1], [0], [0], [1], [0, 0, 1, 1], [], []>, precision = #tpu.contract_precision<fp32>} : vector<2x8xf32>, vector<8x128xf32>, vector<2x128xf32> -> vector<2x128xf32>
      %231 = arith.mulf %216, %230 : vector<2x128xf32>
      %cst_79 = arith.constant dense<0.000000e+00> : vector<2x24xf32>
      %232 = tpu.matmul %231, %3, %cst_79 {dimension_numbers = #tpu.dot_dimension_numbers<[1], [0], [0], [1], [0, 0, 1, 1], [], []>, precision = #tpu.contract_precision<fp32>} : vector<2x128xf32>, vector<128x24xf32>, vector<2x24xf32> -> vector<2x24xf32>
      %233 = vector.extract_strided_slice %232 {offsets = [0, 0], sizes = [2, 16], strides = [1, 1]} : vector<2x24xf32> to vector<2x16xf32>
      %234 = arith.subf %233, %6 : vector<2x16xf32>
      %235 = math.absf %234 : vector<2x16xf32>
      %236 = arith.subf %235, %8 : vector<2x16xf32>
      %cst_80 = arith.constant dense<0xFF800000> : vector<2xf32>
      %237 = vector.multi_reduction <maximumf>, %236, %cst_80 [1] : vector<2x16xf32> to vector<2xf32>
      %238 = vector.shape_cast %237 : vector<2xf32> to vector<2x1xf32>
      %cst_81 = arith.constant 0.000000e+00 : f32
      %239 = vector.broadcast %cst_81 : f32 to vector<2x1xf32>
      %240 = arith.cmpf ole, %238, %239 : vector<2x1xf32>
      %cst_82 = arith.constant 9.99999993E-9 : f32
      %241 = vector.broadcast %cst_82 : f32 to vector<2x16xf32>
      %242 = arith.maximumf %233, %241 : vector<2x16xf32>
      %243 = tpu.reciprocal %242 : vector<2x16xf32> -> vector<2x16xf32>
      %244 = arith.mulf %6, %243 : vector<2x16xf32>
      %cst_83 = arith.constant dense<0.000000e+00> : vector<2x128xf32>
      %245 = tpu.matmul %244, %4, %cst_83 {dimension_numbers = #tpu.dot_dimension_numbers<[1], [0], [0], [1], [0, 0, 1, 1], [], []>, precision = #tpu.contract_precision<fp32>} : vector<2x16xf32>, vector<16x128xf32>, vector<2x128xf32> -> vector<2x128xf32>
      %246 = arith.mulf %231, %245 : vector<2x128xf32>
      %247 = vector.shape_cast %240 : vector<2x1xi1> to vector<2x1xi1>
      %248 = vector.broadcast %247 : vector<2x1xi1> to vector<2x128xi1>
      %249 = arith.select %248, %231, %246 : vector<2x128xi1>, vector<2x128xf32>
      %250 = vector.shape_cast %224 : vector<2x1xi1> to vector<2x1xi1>
      %251 = vector.broadcast %250 : vector<2x1xi1> to vector<2x128xi1>
      %252 = arith.select %251, %216, %249 : vector<2x128xi1>, vector<2x128xf32>
      %cst_84 = arith.constant 9.99999993E-9 : f32
      %253 = vector.broadcast %cst_84 : f32 to vector<2x128xf32>
      %254 = arith.maximumf %252, %253 : vector<2x128xf32>
      %cst_85 = arith.constant dense<0.000000e+00> : vector<128xf32>
      %255 = vector.multi_reduction <add>, %254, %cst_85 [0] : vector<2x128xf32> to vector<128xf32>
      %256 = vector.shape_cast %255 : vector<128xf32> to vector<1x128xf32>
      %257 = tpu.reciprocal %256 : vector<1x128xf32> -> vector<1x128xf32>
      %258 = vector.broadcast %257 : vector<1x128xf32> to vector<2x128xf32>
      %259 = arith.mulf %254, %258 : vector<2x128xf32>
      %cst_86 = arith.constant 9.99999993E-9 : f32
      %cst_87 = arith.constant 1.000000e+00 : f32
      %260 = vector.broadcast %cst_86 : f32 to vector<2x128xf32>
      %261 = arith.maximumf %260, %259 : vector<2x128xf32>
      %262 = vector.broadcast %cst_87 : f32 to vector<2x128xf32>
      %263 = arith.minimumf %262, %261 : vector<2x128xf32>
      %cst_88 = arith.constant dense<0.000000e+00> : vector<128xf32>
      %264 = vector.multi_reduction <add>, %263, %cst_88 [0] : vector<2x128xf32> to vector<128xf32>
      %265 = vector.shape_cast %264 : vector<128xf32> to vector<1x128xf32>
      %266 = tpu.reciprocal %265 : vector<1x128xf32> -> vector<1x128xf32>
      %267 = vector.broadcast %266 : vector<1x128xf32> to vector<2x128xf32>
      %268 = arith.mulf %263, %267 : vector<2x128xf32>
      %269 = vector.broadcast %256 : vector<1x128xf32> to vector<2x128xf32>
      %270 = arith.mulf %268, %269 : vector<2x128xf32>
      %271 = arith.cmpf one, %270, %270 : vector<2x128xf32>
      %cst_89 = arith.constant 1.000000e+00 : f32
      %cst_90 = arith.constant 0.000000e+00 : f32
      %272 = vector.broadcast %cst_89 : f32 to vector<2x128xf32>
      %273 = vector.broadcast %cst_90 : f32 to vector<2x128xf32>
      %274 = arith.select %271, %272, %273 : vector<2x128xi1>, vector<2x128xf32>
      %cst_91 = arith.constant dense<0xFF800000> : vector<2xf32>
      %275 = vector.multi_reduction <maximumf>, %274, %cst_91 [1] : vector<2x128xf32> to vector<2xf32>
      %276 = vector.shape_cast %275 : vector<2xf32> to vector<2x1xf32>
      %cst_92 = arith.constant dense<0xFF800000> : vector<1xf32>
      %277 = vector.multi_reduction <maximumf>, %276, %cst_92 [0] : vector<2x1xf32> to vector<1xf32>
      %278 = vector.shape_cast %277 : vector<1xf32> to vector<1x1xf32>
      %279 = arith.maximumf %211, %278 : vector<1x1xf32>
      %cst_93 = arith.constant 0.000000e+00 : f32
      %280 = vector.broadcast %cst_93 : f32 to vector<1x1xf32>
      %281 = arith.cmpf ogt, %279, %280 : vector<1x1xf32>
      %282 = vector.shape_cast %281 : vector<1x1xi1> to vector<1x1xi1>
      %283 = vector.broadcast %282 : vector<1x1xi1> to vector<2x128xi1>
      %284 = arith.select %283, %216, %270 : vector<2x128xi1>, vector<2x128xf32>
      %cst_94 = arith.constant dense<0.000000e+00> : vector<2x24xf32>
      %285 = tpu.matmul %246, %3, %cst_94 {dimension_numbers = #tpu.dot_dimension_numbers<[1], [0], [0], [1], [0, 0, 1, 1], [], []>, precision = #tpu.contract_precision<fp32>} : vector<2x128xf32>, vector<128x24xf32>, vector<2x24xf32> -> vector<2x24xf32>
      %286 = vector.extract_strided_slice %285 {offsets = [0, 16], sizes = [2, 8], strides = [1, 1]} : vector<2x24xf32> to vector<2x8xf32>
      %287 = arith.subf %286, %7 : vector<2x8xf32>
      %288 = math.absf %287 : vector<2x8xf32>
      %289 = arith.subf %288, %9 : vector<2x8xf32>
      %cst_95 = arith.constant dense<0xFF800000> : vector<2xf32>
      %290 = vector.multi_reduction <maximumf>, %289, %cst_95 [1] : vector<2x8xf32> to vector<2xf32>
      %291 = vector.shape_cast %290 : vector<2xf32> to vector<2x1xf32>
      %292 = arith.minimumf %238, %291 : vector<2x1xf32>
      %293 = arith.minimumf %222, %292 : vector<2x1xf32>
      %294 = vector.shape_cast %279 : vector<1x1xf32> to vector<1x1x1xf32>
      %cst_96 = arith.constant dense<0xFF800000> : vector<1xf32>
      %295 = vector.multi_reduction <maximumf>, %294, %cst_96 [1, 2] : vector<1x1x1xf32> to vector<1xf32>
      %296 = vector.shape_cast %295 : vector<1xf32> to vector<1x1x1xf32>
      %297 = vector.extract %296[0, 0, 0] : f32 from vector<1x1x1xf32>
      %cst_97 = arith.constant 0.000000e+00 : f32
      %298 = arith.cmpf ogt, %297, %cst_97 : f32
      %299 = vector.shape_cast %293 : vector<2x1xf32> to vector<1x2x1xf32>
      %cst_98 = arith.constant dense<0xFF800000> : vector<1xf32>
      %300 = vector.multi_reduction <maximumf>, %299, %cst_98 [1, 2] : vector<1x2x1xf32> to vector<1xf32>
      %301 = vector.shape_cast %300 : vector<1xf32> to vector<1x1x1xf32>
      %302 = vector.extract %301[0, 0, 0] : f32 from vector<1x1x1xf32>
      %cst_99 = arith.constant 0.000000e+00 : f32
      %303 = arith.cmpf ole, %302, %cst_99 : f32
      %304 = arith.ori %298, %303 : i1
      %c1_i32_100 = arith.constant 1 : i32
      %305 = arith.addi %arg8, %c1_i32_100 : i32
      scf.yield %284, %305, %304 : vector<2x128xf32>, i32, i1
    }
    %c0_11 = arith.constant 0 : index
    %c0_12 = arith.constant 0 : index
    %11 = vector.load %arg6[%c0_11, %c0_12] : memref<2x128xf32, #tpu.memory_space<vmem>>, vector<2x128xf32>
    tpu.vector_store %arg6[%c0_11, %c0_12], %10#0 {strides = array<i32>} : memref<2x128xf32, #tpu.memory_space<vmem>>, vector<2x128xf32>,
    return
  }
}

</mosaic_0001>

<bundles_post_ra>
// kernel: qbuilder_forward.1
= control target key start
LH: loop header
LB: loop body
LE: loop exit
PB: predicated region body
PF: predicated region fallthrough
CT: control target
= control target key end

     0   :  { %s14759_s11 = smov 0   ;;  %s16352_s0 = inlined_call_operand.vmem [shape: f32[2,128], index: 0, kind: input, shape index: {}]   ;;  %s16353_s1 = inlined_call_operand.vmem [shape: f32[2,24], index: 1, kind: input, shape index: {}]   ;;  %s16354_s2 = inlined_call_operand.vmem [shape: f32[2,24], index: 2, kind: input, shape index: {}]   ;;  %s16355_s3 = inlined_call_operand.vmem [shape: f32[128,24], index: 3, kind: input, shape index: {}]   ;;  %s16356_s6 = inlined_call_operand.vmem [shape: f32[2,128], index: 6, kind: output, shape index: {}]   ;;  %s16357_s4 = inlined_call_operand.vmem [shape: f32[16,128], index: 4, kind: input, shape index: {}]   ;;  %s16358_s5 = inlined_call_operand.vmem [shape: f32[8,128], index: 5, kind: input, shape index: {}]  }
   0x1   :  { %v23_v0 = vld [vmem:[%s16352_s0] sm:$0x3]   ;;  %v14672_v4 = vld [vmem:[%s16355_s3 + $0x8] sm:$0xff]  ;;  %v14677_v5 = vld [vmem:[%s16355_s3 + $0x10] sm:$0xff] }
   0x2   :  { %v14657_v1 = vld [vmem:[%s16353_s1] sm:$0x3]  ;;  %16393 = vst [vmem:[#allocation3_spill] sm:$0xff] %v14672_v4  ;;  %16394 = vst [vmem:[#allocation4_spill] sm:$0xff] %v14677_v5  ;;  %v14682_v6 = vld [vmem:[%s16355_s3 + $0x18] sm:$0xff] }
   0x3   :  { %v14662_v2 = vld [vmem:[%s16354_s2] sm:$0x3]  ;;  %16395 = vst [vmem:[#allocation5_spill] sm:$0xff] %v14682_v6  ;;  %v14692_v8 = vld [vmem:[%s16355_s3 + $0x28] sm:$0xff]  ;;  %v14697_v9 = vld [vmem:[%s16355_s3 + $0x30] sm:$0xff] }
   0x4   :  { %v14667_v3 = vld [vmem:[%s16355_s3] sm:$0xff]  ;;  %16397 = vst [vmem:[#allocation7_spill] sm:$0xff] %v14692_v8  ;;  %16398 = vst [vmem:[#allocation8_spill] sm:$0xff] %v14697_v9  ;;  %v14702_v10 = vld [vmem:[%s16355_s3 + $0x38] sm:$0xff] }
   0x5   :  { %16392 = vst [vmem:[#allocation2_spill] sm:$0xff] %v14667_v3  ;;  %v14687_v7 = vld [vmem:[%s16355_s3 + $0x20] sm:$0xff]  ;;  %16399 = vst [vmem:[#allocation9_spill] sm:$0xff] %v14702_v10  ;;  %v14712_v12 = vld [vmem:[%s16355_s3 + $0x48] sm:$0xff] }
   0x6   :  { %16396 = vst [vmem:[#allocation6_spill] sm:$0xff] %v14687_v7  ;;  %v14707_v11 = vld [vmem:[%s16355_s3 + $0x40] sm:$0xff]  ;;  %16401 = vst [vmem:[#allocation11_spill] sm:$0xff] %v14712_v12  ;;  %v14717_v13 = vld [vmem:[%s16355_s3 + $0x50] sm:$0xff] }
   0x7   :  { %16400 = vst [vmem:[#allocation10_spill] sm:$0xff] %v14707_v11  ;;  %16402 = vst [vmem:[#allocation12_spill] sm:$0xff] %v14717_v13  ;;  %v14722_v14 = vld [vmem:[%s16355_s3 + $0x58] sm:$0xff]  ;;  %v14727_v15 = vld [vmem:[%s16355_s3 + $0x60] sm:$0xff] }
   0x8   :  { %16403 = vst [vmem:[#allocation13_spill] sm:$0xff] %v14722_v14  ;;  %16404 = vst [vmem:[#allocation14_spill] sm:$0xff] %v14727_v15  ;;  %v14732_v16 = vld [vmem:[%s16355_s3 + $0x68] sm:$0xff]  ;;  %v14737_v17 = vld [vmem:[%s16355_s3 + $0x70] sm:$0xff] }
   0x9   :  { %16405 = vst [vmem:[#allocation15_spill] sm:$0xff] %v14732_v16  ;;  %16406 = vst [vmem:[#allocation16_spill] sm:$0xff] %v14737_v17  ;;  %v14742_v18 = vld [vmem:[%s16355_s3 + $0x78] sm:$0xff]  ;;  %v14747_v19 = vld [vmem:[%s16357_s4] sm:$0xff] }
   0xa   :  { %16407 = vst [vmem:[#allocation17_spill] sm:$0xff] %v14742_v18  ;;  %16408 = vst [vmem:[#allocation18_spill] sm:$0xff] %v14747_v19  ;;  %v14752_v20 = vld [vmem:[%s16357_s4 + $0x8] sm:$0xff]  ;;  %v14757_v21 = vld [vmem:[%s16358_s5] sm:$0xff] }
   0xb   :  { %16409 = vst [vmem:[#allocation19_spill] sm:$0xff] %v14752_v20  ;;  %16410 = vst [vmem:[#allocation20_spill] sm:$0xff] %v14757_v21 }
   0xc LB: > { %v16419_v10 = vld [vmem:[#allocation9_spill] sm:$0xff]  ;;  %v16420_v9 = vld [vmem:[#allocation8_spill] sm:$0xff]  ;;  %v16421_v8 = vld [vmem:[#allocation7_spill] sm:$0xff]  ;;  %16427 = vst [vmem:[#allocation21_spill] sm:$0xff] %v14610_v0  ;;  %v16366_v25 = vmov 0.0|0.0   ;;  %vm14613_vm0 = vmmov 0   ;;  %v14610_v0 = vphi %v23_v0, %v16445_v0   ;;  %s14606_s11 = sphi %s14759_s11, %s16444_s11  }
   0xd   : > { %v16417_v12 = vld [vmem:[#allocation11_spill] sm:$0xff]  ;;  %v16422_v7 = vld [vmem:[#allocation6_spill] sm:$0xff]  ;;  %v16423_v6 = vld [vmem:[#allocation5_spill] sm:$0xff]  ;;  %13003 = vmatprep.subr.bf16.mxu0 %v16366_v25  ;;  %v71_v30 = vand.u32 4294901760, %v16421_v8  ;;  %v16359_v31 = vmov 0.0   ;;  %v74_v33 = vand.u32 4294901760, %v16420_v9 }
   0xe   : > { %v16416_v13 = vld [vmem:[#allocation12_spill] sm:$0xff]  ;;  %v16418_v11 = vld [vmem:[#allocation10_spill] sm:$0xff]  ;;  %v16425_v4 = vld [vmem:[#allocation3_spill] sm:$0xff]  ;;  %v65_v26 = vand.u32 4294901760, %v16423_v6  ;;  %v68_v29 = vand.u32 4294901760, %v16422_v7  ;;  %10857 = vmatprep.mubr.msk.f32.mxu0 %vm14613_vm0, %v16359_v31  ;;  %11035 = vmatprep.subr.mxu1 %v16359_v31  ;;  %v77_v34 = vand.u32 4294901760, %v16419_v10 }
   0xf   : > { %v16414_v15 = vld [vmem:[#allocation14_spill] sm:$0xff]  ;;  %v16415_v14 = vld [vmem:[#allocation13_spill] sm:$0xff]  ;;  %v16424_v5 = vld [vmem:[#allocation4_spill] sm:$0xff]  ;;  %v59_v23 = vand.u32 4294901760, %v16425_v4  ;;  %11037 = vmatprep.mubr.msk.f32.mxu1 %vm14613_vm0, %v16359_v31  ;;  %v80_v36 = vand.u32 4294901760, %v16418_v11  ;;  %v83_v37 = vand.u32 4294901760, %v16417_v12  ;;  %v14844_v60 = vsub.f32 %v16421_v8, %v71_v30 }
  0x10   : > { %v16412_v17 = vld [vmem:[#allocation16_spill] sm:$0xff]  ;;  %v16413_v16 = vld [vmem:[#allocation15_spill] sm:$0xff]  ;;  %v16426_v3 = vld [vmem:[#allocation2_spill] sm:$0xff]  ;;  %v62_v24 = vand.u32 4294901760, %v16424_v5  ;;  %v14786_v32 = vpack.c.bf16 %v71_v30, %v68_v29  ;;  %v14794_v35 = vpack.c.bf16 %v77_v34, %v74_v33  ;;  %v14803_v39 = vand.u32 4294901760, %v14610_v0  ;;  %s14615_s3 = smov 112  }
  0x11   : > { %v16411_v18 = vld [vmem:[#allocation17_spill] sm:$0xff]  ;;  %v56_v22 = vand.u32 4294901760, %v16426_v3  ;;  %v14806_v40 = vsub.f32 %v16425_v4, %v59_v23  ;;  %v86_v41 = vand.u32 4294901760, %v16416_v13  ;;  %v89_v42 = vand.u32 4294901760, %v16415_v14  ;;  %s9770_s4 = sadd.s32 1, %s14606_s11  }
  0x12   : > { %v14777_v28 = vpack.c.bf16 %v65_v26, %v62_v24  ;;  %v92_v43 = vand.u32 4294901760, %v16414_v15  ;;  %v95_v44 = vand.u32 4294901760, %v16413_v16  ;;  %v98_v45 = vand.u32 4294901760, %v16412_v17  ;;  %p49_p3 = scmp.lt.s32.totalorder %s9770_s4, 50  ;;  %s16444_s11 = smov %s9770_s4 }
  0x13   : > { %v14774_v27 = vpack.c.bf16 %v59_v23, %v56_v22  ;;  %v14799_v38 = vsub.f32 %v16426_v3, %v56_v22  ;;  %v101_v46 = vand.u32 4294901760, %v16411_v18  ;;  %v14815_v47 = vsub.f32 %v16424_v5, %v62_v24 }
  0x14   : > { %v14818_v48 = vpack.c.bf16 %v83_v37, %v80_v36  ;;  %v14822_v50 = vsub.f32 %v16423_v6, %v65_v26  ;;  %v14827_v51 = vsub.f32 %v14610_v0, %v14803_v39  ;;  %v156_v52 = vand.u32 4294901760, %v14806_v40 }
  0x15   : > { %13005 = vmatpush3.bf16.msra.mxu0 %v14774_v27  ;;  %v149_v49 = vand.u32 4294901760, %v14799_v38  ;;  %v14831_v53 = vsub.f32 %v16422_v7, %v68_v29  ;;  %v14833_v54 = vpack.c.bf16 %v89_v42, %v86_v41  ;;  %v14835_v55 = vpack.c.bf16 %v95_v44, %v92_v43 }
  0x16   : > { %13006 = vmatprep.subr.bf16.mxu0 %v16366_v25  ;;  %v14837_v56 = vpack.c.bf16 %v101_v46, %v98_v45  ;;  %v163_v57 = vand.u32 4294901760, %v14815_v47  ;;  %v170_v59 = vand.u32 4294901760, %v14822_v50  ;;  %v14847_v61 = vsub.f32 %v16420_v9, %v74_v33 }
  0x17   : > { %v150_v58 = vsub.f32 %v14799_v38, %v149_v49  ;;  %v157_v63 = vsub.f32 %v14806_v40, %v156_v52  ;;  %v177_v22 = vand.u32 4294901760, %v14831_v53  ;;  %v14854_v23 = vsub.f32 %v16419_v10, %v77_v34 }
  0x18   : > { %v14857_v24 = vsub.f32 %v16418_v11, %v80_v36  ;;  %v14860_v26 = vsub.f32 %v16417_v12, %v83_v37  ;;  %v14863_v29 = vsub.f32 %v16416_v13, %v86_v41  ;;  %v14866_v30 = vsub.f32 %v16415_v14, %v89_v42 }
  0x19   : > { %13008 = vmatpush3.bf16.msra.mxu0 %v14777_v28  ;;  %v14869_v33 = vsub.f32 %v16414_v15, %v92_v43  ;;  %v14872_v31 = vsub.f32 %v16413_v16, %v95_v44  ;;  %v14875_v34 = vsub.f32 %v16412_v17, %v98_v45  ;;  %v14878_v36 = vsub.f32 %v16411_v18, %v101_v46 }
  0x1a   : > { %13009 = vmatprep.subr.bf16.mxu0 %v16366_v25  ;;  %v151_v37 = vand.u32 4294901760, %v150_v58  ;;  %v164_v41 = vsub.f32 %v14815_v47, %v163_v57  ;;  %v184_v42 = vand.u32 4294901760, %v14844_v60  ;;  %v191_v62 = vand.u32 4294901760, %v14847_v61 }
  0x1b   : > { %v16428_v43 = vand.u32 4294901760, %v14827_v51  ;;  %v158_v45 = vand.u32 4294901760, %v157_v63  ;;  %v171_v3 = vsub.f32 %v14822_v50, %v170_v59  ;;  %v198_v46 = vand.u32 4294901760, %v14854_v23 }
  0x1c   : > { %v205_v4 = vand.u32 4294901760, %v14857_v24  ;;  %v212_v58 = vand.u32 4294901760, %v14860_v26  ;;  %v219_v5 = vand.u32 4294901760, %v14863_v29  ;;  %v226_v6 = vand.u32 4294901760, %v14866_v30 }
  0x1d   : > { %13011 = vmatpush3.bf16.msra.mxu0 %v14786_v32  ;;  %v139_v44 = vsub.f32 %v14827_v51, %v16428_v43  ;;  %v233_v7 = vand.u32 4294901760, %v14869_v33  ;;  %v247_v8 = vand.u32 4294901760, %v14875_v34  ;;  %v254_v63 = vand.u32 4294901760, %v14878_v36 }
  0x1e   : > { %13012 = vmatprep.subr.bf16.mxu0 %v16366_v25  ;;  %v14899_v43 = vpack.c.bf16 %v156_v52, %v149_v49  ;;  %v14901_v9 = vpack.c.bf16 %v170_v59, %v163_v57  ;;  %v14903_v10 = vpack.c.bf16 %v184_v42, %v177_v22  ;;  %v14905_v11 = vpack.c.bf16 %v198_v46, %v191_v62 }
  0x1f   : > { %v16429_v12 = vmov 0.0|0.0   ;;  %v14908_v13 = vpack.c.bf16 %v212_v58, %v205_v4  ;;  %v14910_v14 = vpack.c.bf16 %v226_v6, %v219_v5  ;;  %v14914_v16 = vpack.c.bf16 %v254_v63, %v247_v8 }
  0x20   : > { %v140_v17 = vand.u32 4294901760, %v139_v44  ;;  %v178_v49 = vsub.f32 %v14831_v53, %v177_v22  ;;  %v14918_v52 = vpack.c.bf16 %v158_v45, %v151_v37  ;;  %v165_v57 = vand.u32 4294901760, %v164_v41 }
  0x21   : > { %13014 = vmatpush3.bf16.msra.mxu0 %v14794_v35  ;;  %v172_v59 = vand.u32 4294901760, %v171_v3  ;;  %v185_v18 = vsub.f32 %v14844_v60, %v184_v42  ;;  %v192_v20 = vsub.f32 %v14847_v61, %v191_v62  ;;  %v199_v22 = vsub.f32 %v14854_v23, %v198_v46 }
  0x22   : > { %13015 = vmatprep.subr.bf16.mxu0 %v16366_v25  ;;  %v179_v44 = vand.u32 4294901760, %v178_v49  ;;  %v16430_v21 = vmov 0.0   ;;  %v206_v3 = vsub.f32 %v14857_v24, %v205_v4  ;;  %v213_v41 = vsub.f32 %v14860_v26, %v212_v58 }
  0x23   : > { %v14924_v19 = vpack.c.bf16 %v172_v59, %v165_v57  ;;  %v186_v0 = vand.u32 4294901760, %v185_v18  ;;  %v193_v62 = vand.u32 4294901760, %v192_v20  ;;  %v200_v37 = vand.u32 4294901760, %v199_v22 }
  0x24   : > { %v207_v18 = vand.u32 4294901760, %v206_v3  ;;  %v214_v45 = vand.u32 4294901760, %v213_v41  ;;  %v220_v46 = vsub.f32 %v14863_v29, %v219_v5  ;;  %v227_v4 = vsub.f32 %v14866_v30, %v226_v6 }
  0x25   : > { %13017 = vmatpush3.bf16.msra.mxu0 %v14818_v48  ;;  %v14937_v42 = vpack.c.bf16 %v200_v37, %v193_v62  ;;  %v248_v59 = vsub.f32 %v14875_v34, %v247_v8  ;;  %v14972_v62 = vpack.c.bf16 %v14822_v50, %v14815_v47  ;;  %v14992_v47 = vpack.c.bf16 %v14860_v26, %v14857_v24 }
  0x26   : > { %13018 = vmatprep.subr.bf16.mxu0 %v16366_v25  ;;  %v14944_v20 = vpack.c.bf16 %v214_v45, %v207_v18  ;;  %v221_v58 = vand.u32 4294901760, %v220_v46  ;;  %v228_v49 = vand.u32 4294901760, %v227_v4  ;;  %v14998_v50 = vpack.c.bf16 %v14866_v30, %v14863_v29  ;;  %v16432_v30 = vld [vmem:[#allocation20_spill] sm:$0xff] }
  0x27   : > { %v249_v3 = vand.u32 4294901760, %v248_v59  ;;  %vm699_vm1 = vcmask 189440   ;;  %vm710_vm2 = vcmask 64512   ;;  %vm1804_vm3 = vcmask 123904  }
  0x28   : > { %v14950_v5 = vpack.c.bf16 %v228_v49, %v221_v58  ;;  %vm1812_vm4 = vcmask 130048   ;;  %vm2283_vm7 = vcmask 1041408  }
  0x29   : > { %13020 = vmatpush3.bf16.msra.mxu0 %v14833_v54 }
  0x2a   : > { %13021 = vmatprep.subr.bf16.mxu0 %v16366_v25  ;;  %v240_v25 = vand.u32 4294901760, %v14872_v31 }
  0x2c   : > { %v14912_v15 = vpack.c.bf16 %v240_v25, %v233_v7  ;;  %v241_v57 = vsub.f32 %v14872_v31, %v240_v25 }
  0x2d   : > { %13023 = vmatpush3.bf16.msra.mxu0 %v14835_v55 }
  0x2e   : > { %13024 = vmatprep.subr.bf16.mxu0 %v16429_v12 }
  0x31   : > { %13026 = vmatpush3.bf16.msra.mxu0 %v14837_v56 }
  0x32   : > { %13027 = vmatprep.subr.bf16.mxu0 %v16429_v12 }
  0x34   : > { %10858 = vmatmul.mubr.f32.vlgmr.msra.gmra.mrb[0].mxu0 %v140_v17  ;;  %v14932_v17 = vpack.c.bf16 %v186_v0, %v179_v44  ;;  %v234_v0 = vsub.f32 %v14869_v33, %v233_v7  ;;  %v242_v44 = vand.u32 4294901760, %v241_v57  ;;  %v255_v7 = vsub.f32 %v14878_v36, %v254_v63 }
  0x35   : > { %13029 = vmatpush3.bf16.msra.mxu0 %v14918_v52  ;;  %10892 = vmatprep.mubr.msk.f32.mxu0 %vm14613_vm0, %v16430_v21  ;;  %v14965_v63 = vpack.c.bf16 %v14806_v40, %v14799_v38  ;;  %v14980_v38 = vpack.c.bf16 %v14844_v60, %v14831_v53  ;;  %v14986_v40 = vpack.c.bf16 %v14854_v23, %v14847_v61 }
  0x36   : > { %13030 = vmatprep.subr.bf16.mxu0 %v16429_v12  ;;  %v235_v6 = vand.u32 4294901760, %v234_v0  ;;  %v256_v25 = vand.u32 4294901760, %v255_v7  ;;  %v15004_v53 = vpack.c.bf16 %v14872_v31, %v14869_v33  ;;  %v15010_v60 = vpack.c.bf16 %v14878_v36, %v14875_v34 }
  0x37   : > { %v16431_v31 = vand.u32 4294901760, %v14827_v51  ;;  %v15096_v33 = vand.u32 4294901760, %v16432_v30 }
  0x38   : > { %v14955_v22 = vpack.c.bf16 %v242_v44, %v235_v6  ;;  %v14959_v8 = vpack.c.bf16 %v256_v25, %v249_v3  ;;  %v16433_v44 = vld [vmem:[#allocation21_spill] sm:$0xff] }
  0x39   : > { %13032 = vmatpush3.bf16.msra.mxu0 %v14924_v19  ;;  %11036 = vmatpush3.msra.mxu1 %v15096_v33  ;;  %v15104_v37 = vsub.f32 %v16432_v30, %v15096_v33 }
  0x3a   : > { %13033 = vmatprep.subr.bf16.mxu0 %v16429_v12  ;;  %11040 = vmatprep.subr.mxu1 %v16430_v21 }
  0x3b   : > { %v15108_v45 = vand.u32 4294901760, %v15104_v37 }
  0x3d   : > { %13035 = vmatpush3.bf16.msra.mxu0 %v14932_v17  ;;  %v793_v0 = vsub.f32 %v15104_v37, %v15108_v45 }
  0x3e   : > { %13036 = vmatprep.subr.bf16.mxu0 %v16429_v12 }
  0x3f   : > { %v15112_v57 = vand.u32 4294901760, %v793_v0 }
  0x41   : > { %13038 = vmatpush3.bf16.msra.mxu0 %v14937_v42 }
  0x42   : > { %13039 = vmatprep.subr.bf16.mxu0 %v16429_v12 }
  0x45   : > { %13041 = vmatpush3.bf16.msra.mxu0 %v14944_v20 }
  0x46   : > { %13042 = vmatprep.subr.bf16.mxu0 %v16429_v12 }
  0x49   : > { %13044 = vmatpush3.bf16.msra.mxu0 %v14950_v5 }
  0x4a   : > { %13045 = vmatprep.subr.bf16.mxu0 %v16429_v12 }
  0x4d   : > { %13047 = vmatpush3.bf16.msra.mxu0 %v14955_v22 }
  0x4e   : > { %13048 = vmatprep.subr.bf16.mxu0 %v16429_v12 }
  0x51   : > { %13050 = vmatpush3.bf16.msra.mxu0 %v14959_v8 }
  0x52   : > { %13051 = vmatprep.subr.bf16.mxu0 %v16429_v12 }
  0x54   : > { %10893 = vmatmul.mubr.f32.vlgmr.msra.gmra.mrb[0].mxu0 %v14803_v39 }
  0x55   : > { %13053 = vmatpush3.bf16.msra.mxu0 %v14965_v63  ;;  %10927 = vmatprep.mubr.msk.f32.mxu0 %vm14613_vm0, %v16430_v21 }
  0x56   : > { %13054 = vmatprep.subr.bf16.mxu0 %v16429_v12 }
  0x59   : > { %13056 = vmatpush3.bf16.msra.mxu0 %v14972_v62 }
  0x5a   : > { %13057 = vmatprep.subr.bf16.mxu0 %v16429_v12 }
  0x5d   : > { %13059 = vmatpush3.bf16.msra.mxu0 %v14980_v38 }
  0x5e   : > { %13060 = vmatprep.subr.bf16.mxu0 %v16429_v12 }
  0x61   : > { %13062 = vmatpush3.bf16.msra.mxu0 %v14986_v40 }
  0x62   : > { %13063 = vmatprep.subr.bf16.mxu0 %v16429_v12 }
  0x65   : > { %13065 = vmatpush3.bf16.msra.mxu0 %v14992_v47 }
  0x66   : > { %13066 = vmatprep.subr.bf16.mxu0 %v16429_v12 }
  0x69   : > { %13068 = vmatpush3.bf16.msra.mxu0 %v14998_v50 }
  0x6a   : > { %13069 = vmatprep.subr.bf16.mxu0 %v16429_v12 }
  0x6d   : > { %13071 = vmatpush3.bf16.msra.mxu0 %v15004_v53 }
  0x6e   : > { %13072 = vmatprep.subr.bf16.mxu0 %v16429_v12 }
  0x71   : > { %13074 = vmatpush3.bf16.msra.mxu0 %v15010_v60 }
  0x72   : > { %13075 = vmatprep.subr.bf16.mxu0 %v16429_v12 }
  0x74   : > { %10928 = vmatmul.mubr.f32.vlgmr.msra.gmra.mrb[0].mxu0 %v14827_v51 }
  0x75   : > { %13077 = vmatpush3.bf16.msra.mxu0 %v14774_v27  ;;  %10962 = vmatprep.mubr.msk.f32.mxu0 %vm14613_vm0, %v16430_v21 }
  0x76   : > { %13078 = vmatprep.subr.bf16.mxu0 %v16429_v12 }
  0x79   : > { %13080 = vmatpush3.bf16.msra.mxu0 %v14777_v28 }
  0x7a   : > { %13081 = vmatprep.subr.bf16.mxu0 %v16429_v12 }
  0x7d   : > { %13083 = vmatpush3.bf16.msra.mxu0 %v14786_v32 }
  0x7e   : > { %13084 = vmatprep.subr.bf16.mxu0 %v16429_v12 }
  0x81   : > { %13086 = vmatpush3.bf16.msra.mxu0 %v14794_v35 }
  0x82   : > { %13087 = vmatprep.subr.bf16.mxu0 %v16429_v12 }
  0x85   : > { %13089 = vmatpush3.bf16.msra.mxu0 %v14818_v48 }
  0x86   : > { %13090 = vmatprep.subr.bf16.mxu0 %v16429_v12 }
  0x89   : > { %13092 = vmatpush3.bf16.msra.mxu0 %v14833_v54 }
  0x8a   : > { %13093 = vmatprep.subr.bf16.mxu0 %v16429_v12 }
  0x8d   : > { %13095 = vmatpush3.bf16.msra.mxu0 %v14835_v55 }
  0x8e   : > { %13096 = vmatprep.subr.bf16.mxu0 %v16429_v12 }
  0x91   : > { %13098 = vmatpush3.bf16.msra.mxu0 %v14837_v56 }
  0x92   : > { %13099 = vmatprep.subr.bf16.mxu0 %v16429_v12 }
  0x94   : > { %10963 = vmatmul.mubr.f32.vlgmr.msra.gmra.mrb[0].mxu0 %v16431_v31 }
  0x95   : > { %13101 = vmatpush3.bf16.msra.mxu0 %v14899_v43  ;;  %10997 = vmatprep.mubr.msk.f32.mxu0 %vm14613_vm0, %v16430_v21 }
  0x96   : > { %13102 = vmatprep.subr.bf16.mxu0 %v16429_v12 }
  0x99   : > { %13104 = vmatpush3.bf16.msra.mxu0 %v14901_v9 }
  0x9a   : > { %13105 = vmatprep.subr.bf16.mxu0 %v16429_v12 }
  0x9d   : > { %13107 = vmatpush3.bf16.msra.mxu0 %v14903_v10 }
  0x9e   : > { %13108 = vmatprep.subr.bf16.mxu0 %v16429_v12 }
  0xa1   : > { %13110 = vmatpush3.bf16.msra.mxu0 %v14905_v11 }
  0xa2   : > { %13111 = vmatprep.subr.bf16.mxu0 %v16429_v12 }
  0xa5   : > { %13113 = vmatpush3.bf16.msra.mxu0 %v14908_v13 }
  0xa6   : > { %13114 = vmatprep.subr.bf16.mxu0 %v16429_v12 }
  0xa9   : > { %13116 = vmatpush3.bf16.msra.mxu0 %v14910_v14 }
  0xaa   : > { %13117 = vmatprep.subr.bf16.mxu0 %v16429_v12 }
  0xad   : > { %13119 = vmatpush3.bf16.msra.mxu0 %v14912_v15 }
  0xae   : > { %13120 = vmatprep.subr.bf16.mxu0 %v16429_v12 }
  0xb1   : > { %13122 = vmatpush3.bf16.msra.mxu0 %v14914_v16 }
  0xb2   : > { %13123 = vmatprep.subr.bf16.mxu0 %v16429_v12 }
  0xb4   : > { %10998 = vmatmul.mubr.f32.vlgmr.msra.gmra.mrb[0].mxu0 %v14803_v39 }
  0xb5   : > { %13125 = vmatpush3.bf16.msra.mxu0 %v14774_v27  ;;  %11032 = vmatprep.mubr.msk.f32.mxu0 %vm14613_vm0, %v16430_v21 }
  0xb6   : > { %13126 = vmatprep.subr.bf16.mxu0 %v16429_v12 }
  0xb9   : > { %13128 = vmatpush3.bf16.msra.mxu0 %v14777_v28 }
  0xba   : > { %13129 = vmatprep.subr.bf16.mxu0 %v16429_v12 }
  0xbd   : > { %13131 = vmatpush3.bf16.msra.mxu0 %v14786_v32 }
  0xbe   : > { %13132 = vmatprep.subr.bf16.mxu0 %v16429_v12 }
  0xc1   : > { %13134 = vmatpush3.bf16.msra.mxu0 %v14794_v35 }
  0xc2   : > { %13135 = vmatprep.subr.bf16.mxu0 %v16429_v12 }
  0xc5   : > { %13137 = vmatpush3.bf16.msra.mxu0 %v14818_v48 }
  0xc6   : > { %13138 = vmatprep.subr.bf16.mxu0 %v16429_v12 }
  0xc9   : > { %13140 = vmatpush3.bf16.msra.mxu0 %v14833_v54 }
  0xca   : > { %13141 = vmatprep.subr.bf16.mxu0 %v16429_v12 }
  0xcd   : > { %13143 = vmatpush3.bf16.msra.mxu0 %v14835_v55 }
  0xce   : > { %13144 = vmatprep.subr.bf16.mxu0 %v16429_v12 }
  0xd1   : > { %13146 = vmatpush3.bf16.msra.mxu0 %v14837_v56 }
  0xd2   : > { %13147 = vmatprep.subr.bf16.mxu0 %v16429_v12 }
  0xd4   : > { %11033 = vmatmul.mubr.f32.vlgmr.msra.gmra.mrb[0].mxu0 %v14803_v39 }
  0xd5   : > { %13149 = vmatpush3.bf16.msra.mxu0 %v14774_v27  ;;  %11097 = vmatprep.mubr.msk.f32.mxu0 %vm14613_vm0, %v16430_v21 }
  0xd6   : > { %13150 = vmatprep.subr.bf16.mxu0 %v16429_v12 }
  0xd9   : > { %13152 = vmatpush3.bf16.msra.mxu0 %v14777_v28 }
  0xda   : > { %13153 = vmatprep.subr.bf16.mxu0 %v16429_v12 }
  0xdd   : > { %13155 = vmatpush3.bf16.msra.mxu0 %v14786_v32 }
  0xde   : > { %13156 = vmatprep.subr.bf16.mxu0 %v16429_v12 }
  0xe1   : > { %13158 = vmatpush3.bf16.msra.mxu0 %v14794_v35 }
  0xe2   : > { %13159 = vmatprep.subr.bf16.mxu0 %v16429_v12 }
  0xe5   : > { %13161 = vmatpush3.bf16.msra.mxu0 %v14818_v48 }
  0xe6   : > { %13162 = vmatprep.subr.bf16.mxu0 %v16429_v12 }
  0xe9   : > { %13164 = vmatpush3.bf16.msra.mxu0 %v14833_v54 }
  0xea   : > { %13165 = vmatprep.subr.bf16.mxu0 %v16429_v12 }
  0xed   : > { %13167 = vmatpush3.bf16.msra.mxu0 %v14835_v55 }
  0xee   : > { %13168 = vmatprep.subr.bf16.mxu0 %v16429_v12 }
  0xf1   : > { %13170 = vmatpush3.bf16.msra.mxu0 %v14837_v56 }
  0xf2   : > { %13171 = vmatprep.subr.bf16.mxu0 %v16429_v12 }
 0x1a7   : > { %v692_v39 = vpop.f32.mrb[0].mxu0 }
 0x1a8   : > { %v696_v51 = vsub.f32 %v692_v39, %v14657_v1  ;;  %v704_v61 = vmax.f32 %v692_v39, 1e-08  ;;  %v11034_v23 = vpop.f32.mrb[1].mxu0 }
 0x1a9   : > { %v16434_v23 = vld [vmem:[#allocation18_spill] sm:$0xff] }
 0x1aa   : > { %14564 = vrcp.f32 %v704_v61  ;;  %v697_v24 = vand.u32 2147483647, %v696_v51 }
 0x1ac   : > { %v698_v26 = vsub.f32 %v697_v24, %v14662_v2  ;;  %v1817_v24 = vand.u32 4294901760, %v16434_v23 }
 0x1ae   : > { %v700_v29 = vsel %vm699_vm1, %v698_v26, -inf  ;;  %v16435_v26 = vld [vmem:[#allocation19_spill] sm:$0xff] }
 0x1af   : > { %701 = vmax.xlane.f32.xlu1 %v700_v29  ;;  %v1820_v29 = vand.u32 4294901760, %v16435_v26 }
 0x1b4   : > { %v14565_v34 = vpop.eup %14564 }
 0x1b5   : > { %v706_v36 = vmul.f32 %v14565_v34, %v14657_v1  ;;  %v15262_v34 = vpack.c.bf16 %v1820_v29, %v1817_v24 }
 0x1b7   : > { %708 = vrot.lane.b32.xlu0 %v706_v36, %s14615_s3  ;;  %v1895_v36 = vsub.f32 %v16434_v23, %v1817_v24 }
 0x229   : > { %v709_v41 = vpop.permute.xlu0 %708 }
 0x22a   : > { %v711_v18 = vsel %vm710_vm2, %v709_v41, 0  ;;  %v1902_v41 = vsub.f32 %v16435_v26, %v1820_v29 }
 0x22b   : > { %v779_v46 = vand.u32 4294901760, %v711_v18 }
 0x22d   : > { %v780_v4 = vsub.f32 %v711_v18, %v779_v46  ;;  %v1896_v18 = vand.u32 4294901760, %v1895_v36 }
 0x22f   : > { %v781_v58 = vand.u32 4294901760, %v780_v4 }
 0x231   : > { %v782_v49 = vsub.f32 %v780_v4, %v781_v58 }
 0x233   : > { %v783_v59 = vand.u32 4294901760, %v782_v49 }
 0x235   : > { %11038 = vmatmul.mubr.f32.vlgmr.msra.gmra.mrb[0].mxu1 %v783_v59 }
 0x236   : > { %11041 = vmatpush3.msra.mxu1 %v15112_v57  ;;  %11042 = vmatprep.mubr.msk.f32.mxu1 %vm14613_vm0, %v16430_v21 }
 0x237   : > { %11045 = vmatprep.subr.mxu1 %v16430_v21 }
 0x23d   : > { %11043 = vmatmul.mubr.f32.vlgmr.msra.gmra.mrb[0].mxu1 %v779_v46 }
 0x23e   : > { %11046 = vmatpush3.msra.mxu1 %v15104_v37  ;;  %11047 = vmatprep.mubr.msk.f32.mxu1 %vm14613_vm0, %v16430_v21 }
 0x23f   : > { %11050 = vmatprep.subr.mxu1 %v16430_v21 }
 0x245   : > { %11048 = vmatmul.mubr.f32.vlgmr.msra.gmra.mrb[0].mxu1 %v780_v4  ;;  %v1897_v4 = vsub.f32 %v1895_v36, %v1896_v18 }
 0x246   : > { %11051 = vmatpush3.msra.mxu1 %v15096_v33  ;;  %11052 = vmatprep.mubr.msk.f32.mxu1 %vm14613_vm0, %v16430_v21 }
 0x247   : > { %11055 = vmatprep.subr.mxu1 %v16430_v21 }
 0x24d   : > { %11053 = vmatmul.mubr.f32.vlgmr.msra.gmra.mrb[0].mxu1 %v781_v58  ;;  %v1898_v58 = vand.u32 4294901760, %v1897_v4 }
 0x24e   : > { %11056 = vmatpush3.msra.mxu1 %v15108_v45  ;;  %11057 = vmatprep.mubr.msk.f32.mxu1 %vm14613_vm0, %v16430_v21 }
 0x24f   : > { %11060 = vmatprep.subr.mxu1 %v16430_v21 }
 0x255   : > { %11058 = vmatmul.mubr.f32.vlgmr.msra.gmra.mrb[0].mxu1 %v779_v46 }
 0x256   : > { %11061 = vmatpush3.msra.mxu1 %v15096_v33  ;;  %11062 = vmatprep.mubr.msk.f32.mxu1 %vm14613_vm0, %v16430_v21 }
 0x257   : > { %13219 = vmatprep.subr.bf16.mxu1 %v16429_v12 }
 0x25d   : > { %11063 = vmatmul.mubr.f32.vlgmr.msra.gmra.mrb[0].mxu1 %v779_v46  ;;  %v1903_v46 = vand.u32 4294901760, %v1902_v41 }
 0x25e   : > { %13221 = vmatpush3.bf16.msra.mxu1 %v14774_v27  ;;  %11202 = vmatprep.mubr.msk.f32.mxu1 %vm14613_vm0, %v16430_v21 }
 0x25f   : > { %13222 = vmatprep.subr.bf16.mxu1 %v16429_v12  ;;  %v1904_v0 = vsub.f32 %v1902_v41, %v1903_v46 }
 0x261   : > { %v1905_v49 = vand.u32 4294901760, %v1904_v0 }
 0x262   : > { %13224 = vmatpush3.bf16.msra.mxu1 %v14777_v28 }
 0x263   : > { %13225 = vmatprep.subr.bf16.mxu1 %v16429_v12  ;;  %v15268_v59 = vpack.c.bf16 %v1905_v49, %v1898_v58 }
 0x266   : > { %13227 = vmatpush3.bf16.msra.mxu1 %v14786_v32 }
 0x267   : > { %13228 = vmatprep.subr.bf16.mxu1 %v16429_v12 }
 0x26a   : > { %13230 = vmatpush3.bf16.msra.mxu1 %v14794_v35 }
 0x26b   : > { %13231 = vmatprep.subr.bf16.mxu1 %v16429_v12 }
 0x26e   : > { %13233 = vmatpush3.bf16.msra.mxu1 %v14818_v48 }
 0x26f   : > { %13234 = vmatprep.subr.bf16.mxu1 %v16429_v12 }
 0x272   : > { %13236 = vmatpush3.bf16.msra.mxu1 %v14833_v54 }
 0x273   : > { %13237 = vmatprep.subr.bf16.mxu1 %v16429_v12 }
 0x276   : > { %13239 = vmatpush3.bf16.msra.mxu1 %v14835_v55 }
 0x277   : > { %13240 = vmatprep.subr.bf16.mxu1 %v16429_v12 }
 0x27a   : > { %13242 = vmatpush3.bf16.msra.mxu1 %v14837_v56 }
 0x27b   : > { %13243 = vmatprep.subr.bf16.mxu1 %v16429_v12 }
 0x330   : > { %v1155_v6 = vpop.f32.mrb[0].mxu1 }
 0x331   : > { %v15153_v7 = vmul.f32 %v16433_v44, %v1155_v6  ;;  %v11064_v3 = vpop.f32.mrb[1].mxu1  ;;  %v15270_v6 = vpack.c.bf16 %v1902_v41, %v1895_v36 }
 0x332   : > { %v15272_v3 = vpack.c.bf16 %v1903_v46, %v1896_v18 }
 0x333   : > { %v15156_v25 = vand.u32 4294901760, %v15153_v7  ;;  %16436 = vst [vmem:[#allocation21_spill] sm:$0xff] %v15270_v6 }
 0x334   : > { %16437 = vst [vmem:[#allocation22_spill] sm:$0xff] %v15272_v3 }
 0x335   : > { %v15160_v31 = vsub.f32 %v15153_v7, %v15156_v25 }
 0x337   : > { %v1243_v39 = vand.u32 4294901760, %v15160_v31 }
 0x339   : > { %11203 = vmatmul.mubr.f32.vlgmr.msra.gmra.mrb[2].mxu1 %v1243_v39  ;;  %v1244_v51 = vsub.f32 %v15160_v31, %v1243_v39 }
 0x33a   : > { %13245 = vmatpush3.bf16.msra.mxu1 %v14899_v43  ;;  %11237 = vmatprep.mubr.msk.f32.mxu1 %vm14613_vm0, %v16430_v21 }
 0x33b   : > { %13246 = vmatprep.subr.bf16.mxu1 %v16429_v12  ;;  %v1245_v61 = vand.u32 4294901760, %v1244_v51 }
 0x33d   : > { %11098 = vmatmul.mubr.f32.vlgmr.msra.gmra.mrb[2].mxu0 %v1245_v61 }
 0x33e   : > { %13173 = vmatpush3.bf16.msra.mxu0 %v14918_v52  ;;  %13248 = vmatpush3.bf16.msra.mxu1 %v14901_v9 }
 0x33f   : > { %13174 = vmatprep.subr.bf16.mxu0 %v16429_v12  ;;  %13249 = vmatprep.subr.bf16.mxu1 %v16429_v12 }
 0x340   : > { %11132 = vmatprep.mubr.msk.f32.mxu0 %vm14613_vm0, %v16430_v21 }
 0x342   : > { %13176 = vmatpush3.bf16.msra.mxu0 %v14924_v19  ;;  %13251 = vmatpush3.bf16.msra.mxu1 %v14903_v10 }
 0x343   : > { %13177 = vmatprep.subr.bf16.mxu0 %v16429_v12  ;;  %13252 = vmatprep.subr.bf16.mxu1 %v16429_v12 }
 0x346   : > { %13179 = vmatpush3.bf16.msra.mxu0 %v14932_v17  ;;  %13254 = vmatpush3.bf16.msra.mxu1 %v14905_v11 }
 0x347   : > { %13180 = vmatprep.subr.bf16.mxu0 %v16429_v12  ;;  %13255 = vmatprep.subr.bf16.mxu1 %v16429_v12 }
 0x34a   : > { %13182 = vmatpush3.bf16.msra.mxu0 %v14937_v42  ;;  %13257 = vmatpush3.bf16.msra.mxu1 %v14908_v13 }
 0x34b   : > { %13183 = vmatprep.subr.bf16.mxu0 %v16429_v12  ;;  %13258 = vmatprep.subr.bf16.mxu1 %v16429_v12 }
 0x34e   : > { %13185 = vmatpush3.bf16.msra.mxu0 %v14944_v20  ;;  %13260 = vmatpush3.bf16.msra.mxu1 %v14910_v14 }
 0x34f   : > { %13186 = vmatprep.subr.bf16.mxu0 %v16429_v12  ;;  %13261 = vmatprep.subr.bf16.mxu1 %v16429_v12 }
 0x352   : > { %13188 = vmatpush3.bf16.msra.mxu0 %v14950_v5  ;;  %13263 = vmatpush3.bf16.msra.mxu1 %v14912_v15 }
 0x353   : > { %13189 = vmatprep.subr.bf16.mxu0 %v16429_v12  ;;  %13264 = vmatprep.subr.bf16.mxu1 %v16429_v12 }
 0x356   : > { %13191 = vmatpush3.bf16.msra.mxu0 %v14955_v22  ;;  %13266 = vmatpush3.bf16.msra.mxu1 %v14914_v16 }
 0x357   : > { %13192 = vmatprep.subr.bf16.mxu0 %v16429_v12  ;;  %13267 = vmatprep.subr.bf16.mxu1 %v16429_v12 }
 0x359   : > { %11238 = vmatmul.mubr.f32.vlgmr.msra.gmra.mrb[2].mxu1 %v15156_v25 }
 0x35a   : > { %13194 = vmatpush3.bf16.msra.mxu0 %v14959_v8  ;;  %13269 = vmatpush3.bf16.msra.mxu1 %v14774_v27 }
 0x35b   : > { %13195 = vmatprep.subr.bf16.mxu0 %v16429_v12  ;;  %13270 = vmatprep.subr.bf16.mxu1 %v16429_v12 }
 0x35c   : > { %11272 = vmatprep.mubr.msk.f32.mxu1 %vm14613_vm0, %v16430_v21 }
 0x35d   : > { %11133 = vmatmul.mubr.f32.vlgmr.msra.gmra.mrb[2].mxu0 %v15156_v25 }
 0x35e   : > { %13197 = vmatpush3.bf16.msra.mxu0 %v14965_v63  ;;  %13272 = vmatpush3.bf16.msra.mxu1 %v14777_v28 }
 0x35f   : > { %13198 = vmatprep.subr.bf16.mxu0 %v16429_v12  ;;  %13273 = vmatprep.subr.bf16.mxu1 %v16429_v12 }
 0x360   : > { %11167 = vmatprep.mubr.msk.f32.mxu0 %vm14613_vm0, %v16430_v21 }
 0x362   : > { %13200 = vmatpush3.bf16.msra.mxu0 %v14972_v62  ;;  %13275 = vmatpush3.bf16.msra.mxu1 %v14786_v32 }
 0x363   : > { %13201 = vmatprep.subr.bf16.mxu0 %v16429_v12  ;;  %13276 = vmatprep.subr.bf16.mxu1 %v16429_v12 }
 0x366   : > { %13203 = vmatpush3.bf16.msra.mxu0 %v14980_v38  ;;  %13278 = vmatpush3.bf16.msra.mxu1 %v14794_v35 }
 0x367   : > { %13204 = vmatprep.subr.bf16.mxu0 %v16429_v12  ;;  %13279 = vmatprep.subr.bf16.mxu1 %v16429_v12 }
 0x36a   : > { %13206 = vmatpush3.bf16.msra.mxu0 %v14986_v40  ;;  %13281 = vmatpush3.bf16.msra.mxu1 %v14818_v48 }
 0x36b   : > { %13207 = vmatprep.subr.bf16.mxu0 %v16429_v12  ;;  %13282 = vmatprep.subr.bf16.mxu1 %v16429_v12 }
 0x36e   : > { %13209 = vmatpush3.bf16.msra.mxu0 %v14992_v47  ;;  %13284 = vmatpush3.bf16.msra.mxu1 %v14833_v54 }
 0x36f   : > { %13210 = vmatprep.subr.bf16.mxu0 %v16429_v12  ;;  %13285 = vmatprep.subr.bf16.mxu1 %v16429_v12 }
 0x372   : > { %13212 = vmatpush3.bf16.msra.mxu0 %v14998_v50  ;;  %13287 = vmatpush3.bf16.msra.mxu1 %v14835_v55 }
 0x373   : > { %13213 = vmatprep.subr.bf16.mxu0 %v16429_v12  ;;  %13288 = vmatprep.subr.bf16.mxu1 %v16429_v12 }
 0x376   : > { %13215 = vmatpush3.bf16.msra.mxu0 %v15004_v53  ;;  %13290 = vmatpush3.bf16.msra.mxu1 %v14837_v56 }
 0x377   : > { %13216 = vmatprep.subr.bf16.mxu0 %v16429_v12  ;;  %13309 = vmatprep.subr.bf16.mxu1 %v16429_v12 }
 0x379   : > { %11273 = vmatmul.mubr.f32.vlgmr.msra.gmra.mrb[2].mxu1 %v15156_v25 }
 0x37a   : > { %13218 = vmatpush3.bf16.msra.mxu0 %v15010_v60  ;;  %13311 = vmatpush3.bf16.msra.mxu1 %v14774_v27 }
 0x37b   : > { %13291 = vmatprep.subr.bf16.mxu0 %v16429_v12  ;;  %13312 = vmatprep.subr.bf16.mxu1 %v16429_v12 }
 0x37c   : > { %11349 = vmatprep.mubr.msk.f32.mxu1 %vm14613_vm0, %v16430_v21 }
 0x37d   : > { %11168 = vmatmul.mubr.f32.vlgmr.msra.gmra.mrb[2].mxu0 %v15160_v31 }
 0x37e   : > { %11279 = vmatprep.mubr.msk.f32.mxu0 %vm14613_vm0, %v16430_v21  ;;  %13314 = vmatpush3.bf16.msra.mxu1 %v14777_v28 }
 0x37f   : > { %13315 = vmatprep.subr.bf16.mxu1 %v16429_v12  ;;  %13293 = vmatpush3.bf16.msra.mxu0 %v15262_v34 }
 0x380   : > { %13294 = vmatprep.subr.bf16.mxu0 %v16429_v12 }
 0x382   : > { %13317 = vmatpush3.bf16.msra.mxu1 %v14786_v32 }
 0x383   : > { %13318 = vmatprep.subr.bf16.mxu1 %v16429_v12 }
 0x386   : > { %13320 = vmatpush3.bf16.msra.mxu1 %v14794_v35 }
 0x387   : > { %13321 = vmatprep.subr.bf16.mxu1 %v16429_v12 }
 0x38a   : > { %13323 = vmatpush3.bf16.msra.mxu1 %v14818_v48 }
 0x38b   : > { %13324 = vmatprep.subr.bf16.mxu1 %v16429_v12 }
 0x38e   : > { %13326 = vmatpush3.bf16.msra.mxu1 %v14833_v54 }
 0x38f   : > { %13327 = vmatprep.subr.bf16.mxu1 %v16429_v12 }
 0x392   : > { %13329 = vmatpush3.bf16.msra.mxu1 %v14835_v55 }
 0x393   : > { %13330 = vmatprep.subr.bf16.mxu1 %v16429_v12 }
 0x396   : > { %13332 = vmatpush3.bf16.msra.mxu1 %v14837_v56 }
 0x397   : > { %13333 = vmatprep.subr.bf16.mxu1 %v16429_v12 }
 0x44c   : > { %v1797_v25 = vpop.f32.mrb[2].mxu1 }
 0x44d   : > { %v11274_v31 = vpop.f32.mrb[3].mxu1 }
 0x450   : > { %v1502_v39 = vpop.f32.mrb[2].mxu0 }
 0x451   : > { %v14371_v51 = vadd.f32 %v1797_v25, %v1502_v39  ;;  %v11169_v61 = vpop.f32.mrb[3].mxu0  ;;  %v702_v39 = vpop.xlane.xlu1 %701 }
 0x452   : > { %vm703_vm6 = vcmp.le.f32.partialorder %v702_v39, 0.0 }
 0x453   : > { %v1801_v24 = vsub.f32 %v14371_v51, %v14657_v1  ;;  %v1809_v29 = vmax.f32 %v14371_v51, 1e-08 }
 0x455   : > { %14566 = vrcp.f32 %v1809_v29  ;;  %v1802_v23 = vand.u32 2147483647, %v1801_v24 }
 0x457   : > { %v1803_v4 = vsub.f32 %v1802_v23, %v14662_v2 }
 0x459   : > { %v1805_v0 = vsel %vm1804_vm3, %v1803_v4, -inf }
 0x45a   : > { %1806 = vmax.xlane.f32.xlu0 %v1805_v0 }
 0x45f   : > { %v14567_v36 = vpop.eup %14566 }
 0x460   : > { %v1811_v41 = vmul.f32 %v14567_v36, %v14657_v1 }
 0x462   : > { %v1814_v18 = vsel %vm1812_vm4, %v1811_v41, 0 }
 0x463   : > { %v1883_v46 = vand.u32 4294901760, %v1814_v18 }
 0x465   : > { %v1884_v58 = vsub.f32 %v1814_v18, %v1883_v46 }
 0x467   : > { %v1885_v49 = vand.u32 4294901760, %v1884_v58 }
 0x469   : > { %v1886_v25 = vsub.f32 %v1884_v58, %v1885_v49 }
 0x46b   : > { %v1887_v31 = vand.u32 4294901760, %v1886_v25 }
 0x46d   : > { %11280 = vmatmul.mubr.f32.vlgmr.msra.gmra.mrb[4].mxu0 %v1887_v31 }
 0x46e   : > { %13296 = vmatpush3.bf16.msra.mxu0 %v15268_v59  ;;  %11286 = vmatprep.mubr.msk.f32.mxu0 %vm14613_vm0, %v16430_v21 }
 0x46f   : > { %13297 = vmatprep.subr.bf16.mxu0 %v16429_v12 }
 0x475   : > { %11287 = vmatmul.mubr.f32.vlgmr.msra.gmra.mrb[4].mxu0 %v1883_v46 }
 0x476   : > { %13299 = vmatpush3.bf16.msra.mxu0 %v15270_v6  ;;  %11293 = vmatprep.mubr.msk.f32.mxu0 %vm14613_vm0, %v16430_v21 }
 0x477   : > { %13300 = vmatprep.subr.bf16.mxu0 %v16429_v12 }
 0x47d   : > { %11294 = vmatmul.mubr.f32.vlgmr.msra.gmra.mrb[4].mxu0 %v1884_v58 }
 0x47e   : > { %13302 = vmatpush3.bf16.msra.mxu0 %v15262_v34  ;;  %11300 = vmatprep.mubr.msk.f32.mxu0 %vm14613_vm0, %v16430_v21 }
 0x47f   : > { %13303 = vmatprep.subr.bf16.mxu0 %v16429_v12 }
 0x485   : > { %11301 = vmatmul.mubr.f32.vlgmr.msra.gmra.mrb[4].mxu0 %v1885_v49 }
 0x486   : > { %13305 = vmatpush3.bf16.msra.mxu0 %v15272_v3  ;;  %11307 = vmatprep.mubr.msk.f32.mxu0 %vm14613_vm0, %v16430_v21 }
 0x487   : > { %13306 = vmatprep.subr.bf16.mxu0 %v16429_v12 }
 0x48d   : > { %11308 = vmatmul.mubr.f32.vlgmr.msra.gmra.mrb[4].mxu0 %v1883_v46 }
 0x48e   : > { %13308 = vmatpush3.bf16.msra.mxu0 %v15262_v34  ;;  %11314 = vmatprep.mubr.msk.f32.mxu0 %vm14613_vm0, %v16430_v21 }
 0x48f   : > { %11527 = vmatprep.subr.mxu0 %v16430_v21 }
 0x495   : > { %11315 = vmatmul.mubr.f32.vlgmr.msra.gmra.mrb[4].mxu0 %v1883_v46 }
 0x496   : > { %11528 = vmatpush3.msra.mxu0 %v15096_v33  ;;  %11529 = vmatprep.mubr.msk.f32.mxu0 %vm14613_vm0, %v16430_v21 }
 0x497   : > { %11532 = vmatprep.subr.mxu0 %v16430_v21 }
 0x4e7   : > { %v1807_v23 = vpop.xlane.xlu0 %1806 }
 0x4e8   : > { %vm1808_vm5 = vcmp.le.f32.partialorder %v1807_v23, 0.0 }
 0x568   : > { %v2271_v51 = vpop.f32.mrb[4].mxu0 }
 0x569   : > { %v2275_v61 = vmul.f32 %v2271_v51, %v15153_v7  ;;  %v11316_v24 = vpop.f32.mrb[5].mxu0 }
 0x56b   : > { %v2278_v29 = vsel %vm1808_vm5, %v15153_v7, %v2275_v61 }
 0x56c   : > { %v2281_v4 = vsel %vm703_vm6, %v16433_v44, %v2278_v29 }
 0x56d   : > { %v2282_v0 = vmax.f32 %v2281_v4, 1e-08 }
 0x56f   : > { %v2284_v36 = vsel %vm2283_vm7, %v2282_v0, 0.0 }
 0x570   : > { %v2285_v41 = vrot.slane %v2284_v36, 4 }
 0x572   : > { %v2286_v18 = vadd.f32 %v2285_v41, %v2284_v36 }
 0x574   : > { %v2287_v46 = vrot.slane %v2286_v18, 2 }
 0x576   : > { %v2288_v58 = vadd.f32 %v2287_v46, %v2286_v18 }
 0x578   : > { %v2289_v49 = vrot.slane %v2288_v58, 1 }
 0x57a   : > { %v2290_v25 = vadd.f32 %v2289_v49, %v2288_v58 }
 0x57c   : > { %14568 = vrcp.f32 %v2290_v25 }
 0x586   : > { %v14569_v31 = vpop.eup %14568 }
 0x587   : > { %v2292_v51 = vmul.f32 %v14569_v31, %v2282_v0 }
 0x589   : > { %v2293_v24 = vmax.f32 %v2292_v51, 1e-08 }
 0x58b   : > { %v2294_v23 = vmin.f32 %v2293_v24, 1.0 }
 0x58d   : > { %v2295_v39 = vsel %vm2283_vm7, %v2294_v23, 0.0 }
 0x58e   : > { %v2296_v7 = vrot.slane %v2295_v39, 4 }
 0x590   : > { %v2297_v61 = vadd.f32 %v2296_v7, %v2295_v39 }
 0x592   : > { %v2298_v29 = vrot.slane %v2297_v61, 2 }
 0x594   : > { %v2299_v26 = vadd.f32 %v2298_v29, %v2297_v61 }
 0x596   : > { %v2300_v4 = vrot.slane %v2299_v26, 1 }
 0x598   : > { %v2301_v30 = vadd.f32 %v2300_v4, %v2299_v26 }
 0x59a   : > { %14570 = vrcp.f32 %v2301_v30 }
 0x5a4   : > { %v14571_v3 = vpop.eup %14570 }
 0x5a5   : > { %v2303_v36 = vmul.f32 %v14571_v3, %v2294_v23 }
 0x5a7   : > { %v2304_v41 = vmul.f32 %v2303_v36, %v2290_v25 }
 0x5a9   : > { %vm2305_vm8 = vcmp.ne.f32.partialorder %v2304_v41, %v2304_v41 }
 0x5aa   : > { %v2306_v18 = vsel %vm2305_vm8, 1.0, %v16430_v21 }
 0x5ab   : > { %v2307_v46 = vsel %vm2283_vm7, %v2306_v18, -inf }
 0x5ac   : > { %2308 = vmax.xlane.f32.xlu1 %v2307_v46 }
 0x639   : > { %v2309_v0 = vpop.xlane.xlu1 %2308 }
 0x63a   : > { %v2310_v58 = vsel %vm2283_vm7, %v2309_v0, -inf }
 0x63b   : > { %v2311_v49 = vrot.slane %v2310_v58, 4 }
 0x63d   : > { %v2312_v31 = vmax.f32 %v2310_v58, %v2311_v49 }
 0x63f   : > { %v2313_v51 = vrot.slane %v2312_v31, 2 }
 0x641   : > { %v2314_v24 = vmax.f32 %v2312_v31, %v2313_v51 }
 0x643   : > { %v2315_v39 = vrot.slane %v2314_v24, 1 }
 0x645   : > { %v15311_v7 = vmax.f32 %v2314_v24, %v2315_v39 }
 0x647   : > { %v16389_v30 = vmax.f32 %v15311_v7, 0.0 }
 0x649   : > { %vm2318_vm9 = vcmp.gt.f32.partialorder %v16389_v30, 0.0 }
 0x64a   : > { %v15317_v26 = vsel %vm2318_vm9, %v16433_v44, %v2304_v41 }
 0x64b   : > { %v15320_v3 = vand.u32 4294901760, %v15317_v26 }
 0x64d   : > { %v2404_v25 = vsub.f32 %v15317_v26, %v15320_v3 }
 0x64f   : > { %v2405_v23 = vand.u32 4294901760, %v2404_v25 }
 0x651   : > { %v2406_v61 = vsub.f32 %v2404_v25, %v2405_v23 }
 0x653   : > { %v2407_v29 = vand.u32 4294901760, %v2406_v61 }
 0x655   : > { %11350 = vmatmul.mubr.f32.vlgmr.msra.gmra.mrb[4].mxu1 %v2407_v29 }
 0x656   : > { %13335 = vmatpush3.bf16.msra.mxu1 %v14918_v52  ;;  %11384 = vmatprep.mubr.msk.f32.mxu1 %vm14613_vm0, %v16430_v21 }
 0x657   : > { %13336 = vmatprep.subr.bf16.mxu1 %v16429_v12 }
 0x65a   : > { %13338 = vmatpush3.bf16.msra.mxu1 %v14924_v19 }
 0x65b   : > { %13339 = vmatprep.subr.bf16.mxu1 %v16429_v12 }
 0x65e   : > { %13341 = vmatpush3.bf16.msra.mxu1 %v14932_v17 }
 0x65f   : > { %13342 = vmatprep.subr.bf16.mxu1 %v16429_v12 }
 0x662   : > { %13344 = vmatpush3.bf16.msra.mxu1 %v14937_v42 }
 0x663   : > { %13345 = vmatprep.subr.bf16.mxu1 %v16429_v12 }
 0x666   : > { %13347 = vmatpush3.bf16.msra.mxu1 %v14944_v20 }
 0x667   : > { %13348 = vmatprep.subr.bf16.mxu1 %v16429_v12 }
 0x66a   : > { %13350 = vmatpush3.bf16.msra.mxu1 %v14950_v5 }
 0x66b   : > { %13351 = vmatprep.subr.bf16.mxu1 %v16429_v12 }
 0x66e   : > { %13353 = vmatpush3.bf16.msra.mxu1 %v14955_v22 }
 0x66f   : > { %13354 = vmatprep.subr.bf16.mxu1 %v16429_v12 }
 0x672   : > { %13356 = vmatpush3.bf16.msra.mxu1 %v14959_v8 }
 0x673   : > { %13357 = vmatprep.subr.bf16.mxu1 %v16429_v12 }
 0x675   : > { %11385 = vmatmul.mubr.f32.vlgmr.msra.gmra.mrb[4].mxu1 %v15320_v3 }
 0x676   : > { %13359 = vmatpush3.bf16.msra.mxu1 %v14965_v63  ;;  %11419 = vmatprep.mubr.msk.f32.mxu1 %vm14613_vm0, %v16430_v21 }
 0x677   : > { %13360 = vmatprep.subr.bf16.mxu1 %v16429_v12 }
 0x67a   : > { %13362 = vmatpush3.bf16.msra.mxu1 %v14972_v62 }
 0x67b   : > { %13363 = vmatprep.subr.bf16.mxu1 %v16429_v12 }
 0x67e   : > { %13365 = vmatpush3.bf16.msra.mxu1 %v14980_v38 }
 0x67f   : > { %13366 = vmatprep.subr.bf16.mxu1 %v16429_v12 }
 0x682   : > { %13368 = vmatpush3.bf16.msra.mxu1 %v14986_v40 }
 0x683   : > { %13369 = vmatprep.subr.bf16.mxu1 %v16429_v12 }
 0x686   : > { %13371 = vmatpush3.bf16.msra.mxu1 %v14992_v47 }
 0x687   : > { %13372 = vmatprep.subr.bf16.mxu1 %v16429_v12 }
 0x68a   : > { %13374 = vmatpush3.bf16.msra.mxu1 %v14998_v50 }
 0x68b   : > { %13375 = vmatprep.subr.bf16.mxu1 %v16429_v12 }
 0x68e   : > { %13377 = vmatpush3.bf16.msra.mxu1 %v15004_v53 }
 0x68f   : > { %13378 = vmatprep.subr.bf16.mxu1 %v16429_v12 }
 0x692   : > { %13380 = vmatpush3.bf16.msra.mxu1 %v15010_v60 }
 0x693   : > { %13381 = vmatprep.subr.bf16.mxu1 %v16429_v12 }
 0x695   : > { %11420 = vmatmul.mubr.f32.vlgmr.msra.gmra.mrb[4].mxu1 %v2404_v25 }
 0x696   : > { %13383 = vmatpush3.bf16.msra.mxu1 %v14774_v27  ;;  %11454 = vmatprep.mubr.msk.f32.mxu1 %vm14613_vm0, %v16430_v21 }
 0x697   : > { %13384 = vmatprep.subr.bf16.mxu1 %v16429_v12 }
 0x69a   : > { %13386 = vmatpush3.bf16.msra.mxu1 %v14777_v28 }
 0x69b   : > { %13387 = vmatprep.subr.bf16.mxu1 %v16429_v12 }
 0x69e   : > { %13389 = vmatpush3.bf16.msra.mxu1 %v14786_v32 }
 0x69f   : > { %13390 = vmatprep.subr.bf16.mxu1 %v16429_v12 }
 0x6a2   : > { %13392 = vmatpush3.bf16.msra.mxu1 %v14794_v35 }
 0x6a3   : > { %13393 = vmatprep.subr.bf16.mxu1 %v16429_v12 }
 0x6a6   : > { %13395 = vmatpush3.bf16.msra.mxu1 %v14818_v48 }
 0x6a7   : > { %13396 = vmatprep.subr.bf16.mxu1 %v16429_v12 }
 0x6aa   : > { %13398 = vmatpush3.bf16.msra.mxu1 %v14833_v54 }
 0x6ab   : > { %13399 = vmatprep.subr.bf16.mxu1 %v16429_v12 }
 0x6ae   : > { %13401 = vmatpush3.bf16.msra.mxu1 %v14835_v55 }
 0x6af   : > { %13402 = vmatprep.subr.bf16.mxu1 %v16429_v12 }
 0x6b2   : > { %13404 = vmatpush3.bf16.msra.mxu1 %v14837_v56 }
 0x6b3   : > { %13405 = vmatprep.subr.bf16.mxu1 %v16429_v12 }
 0x6b5   : > { %11455 = vmatmul.mubr.f32.vlgmr.msra.gmra.mrb[4].mxu1 %v2405_v23 }
 0x6b6   : > { %13407 = vmatpush3.bf16.msra.mxu1 %v14899_v43  ;;  %11489 = vmatprep.mubr.msk.f32.mxu1 %vm14613_vm0, %v16430_v21 }
 0x6b7   : > { %13408 = vmatprep.subr.bf16.mxu1 %v16429_v12 }
 0x6ba   : > { %13410 = vmatpush3.bf16.msra.mxu1 %v14901_v9 }
 0x6bb   : > { %13411 = vmatprep.subr.bf16.mxu1 %v16429_v12 }
 0x6be   : > { %13413 = vmatpush3.bf16.msra.mxu1 %v14903_v10 }
 0x6bf   : > { %13414 = vmatprep.subr.bf16.mxu1 %v16429_v12 }
 0x6c2   : > { %13416 = vmatpush3.bf16.msra.mxu1 %v14905_v11 }
 0x6c3   : > { %13417 = vmatprep.subr.bf16.mxu1 %v16429_v12 }
 0x6c6   : > { %13419 = vmatpush3.bf16.msra.mxu1 %v14908_v13 }
 0x6c7   : > { %13420 = vmatprep.subr.bf16.mxu1 %v16429_v12 }
 0x6ca   : > { %13422 = vmatpush3.bf16.msra.mxu1 %v14910_v14 }
 0x6cb   : > { %13423 = vmatprep.subr.bf16.mxu1 %v16429_v12 }
 0x6ce   : > { %13425 = vmatpush3.bf16.msra.mxu1 %v14912_v15 }
 0x6cf   : > { %13426 = vmatprep.subr.bf16.mxu1 %v16429_v12 }
 0x6d2   : > { %13428 = vmatpush3.bf16.msra.mxu1 %v14914_v16 }
 0x6d3   : > { %13429 = vmatprep.subr.bf16.mxu1 %v16429_v12 }
 0x6d5   : > { %11490 = vmatmul.mubr.f32.vlgmr.msra.gmra.mrb[4].mxu1 %v15320_v3 }
 0x6d6   : > { %13431 = vmatpush3.bf16.msra.mxu1 %v14774_v27  ;;  %11524 = vmatprep.mubr.msk.f32.mxu1 %vm14613_vm0, %v16430_v21 }
 0x6d7   : > { %13432 = vmatprep.subr.bf16.mxu1 %v16429_v12 }
 0x6da   : > { %13434 = vmatpush3.bf16.msra.mxu1 %v14777_v28 }
 0x6db   : > { %13435 = vmatprep.subr.bf16.mxu1 %v16429_v12 }
 0x6de   : > { %13437 = vmatpush3.bf16.msra.mxu1 %v14786_v32 }
 0x6df   : > { %13438 = vmatprep.subr.bf16.mxu1 %v16429_v12 }
 0x6e2   : > { %13440 = vmatpush3.bf16.msra.mxu1 %v14794_v35 }
 0x6e3   : > { %13441 = vmatprep.subr.bf16.mxu1 %v16429_v12 }
 0x6e6   : > { %13443 = vmatpush3.bf16.msra.mxu1 %v14818_v48 }
 0x6e7   : > { %13444 = vmatprep.subr.bf16.mxu1 %v16429_v12 }
 0x6ea   : > { %13446 = vmatpush3.bf16.msra.mxu1 %v14833_v54 }
 0x6eb   : > { %13447 = vmatprep.subr.bf16.mxu1 %v16429_v12 }
 0x6ee   : > { %13449 = vmatpush3.bf16.msra.mxu1 %v14835_v55 }
 0x6ef   : > { %13450 = vmatprep.subr.bf16.mxu1 %v16429_v12 }
 0x6f2   : > { %13452 = vmatpush3.bf16.msra.mxu1 %v14837_v56 }
 0x6f3   : > { %13597 = vmatprep.subr.bf16.mxu1 %v16429_v12 }
 0x6f5   : > { %11525 = vmatmul.mubr.f32.vlgmr.msra.gmra.mrb[4].mxu1 %v15320_v3 }
 0x6f6   : > { %13599 = vmatpush3.bf16.msra.mxu1 %v15262_v34  ;;  %11771 = vmatprep.mubr.msk.f32.mxu1 %vm14613_vm0, %v16430_v21 }
 0x6f7   : > { %13600 = vmatprep.subr.bf16.mxu1 %v16429_v12 }
 0x7c8   : > { %v2959_v44 = vpop.f32.mrb[4].mxu1 }
 0x7c9   : > { %v2963_v4 = vsub.f32 %v2959_v44, %v14657_v1  ;;  %v2970_v36 = vmax.f32 %v2959_v44, 1e-08  ;;  %v11526_v41 = vpop.f32.mrb[5].mxu1 }
 0x7cb   : > { %v2964_v18 = vand.u32 2147483647, %v2963_v4  ;;  %14572 = vrcp.f32 %v2970_v36 }
 0x7cd   : > { %v2965_v46 = vsub.f32 %v2964_v18, %v14662_v2 }
 0x7cf   : > { %v2966_v0 = vsel %vm699_vm1, %v2965_v46, -inf }
 0x7d0   : > { %2967 = vmax.xlane.f32.xlu0 %v2966_v0 }
 0x7d5   : > { %v14573_v58 = vpop.eup %14572 }
 0x7d6   : > { %v2972_v49 = vmul.f32 %v14573_v58, %v14657_v1 }
 0x7d8   : > { %2974 = vrot.lane.b32.xlu1 %v2972_v49, %s14615_s3 }
 0x84a   : > { %v2975_v31 = vpop.permute.xlu1 %2974 }
 0x84b   : > { %v2976_v51 = vsel %vm710_vm2, %v2975_v31, 0 }
 0x84c   : > { %v3044_v24 = vand.u32 4294901760, %v2976_v51 }
 0x84e   : > { %v3045_v39 = vsub.f32 %v2976_v51, %v3044_v24 }
 0x850   : > { %v3046_v3 = vand.u32 4294901760, %v3045_v39 }
 0x852   : > { %v3047_v25 = vsub.f32 %v3045_v39, %v3046_v3 }
 0x854   : > { %v3048_v23 = vand.u32 4294901760, %v3047_v25 }
 0x856   : > { %11530 = vmatmul.mubr.f32.vlgmr.msra.gmra.mrb[6].mxu0 %v3048_v23 }
 0x857   : > { %11533 = vmatpush3.msra.mxu0 %v15112_v57  ;;  %11534 = vmatprep.mubr.msk.f32.mxu0 %vm14613_vm0, %v16430_v21 }
 0x858   : > { %11537 = vmatprep.subr.mxu0 %v16430_v21 }
 0x85e   : > { %11535 = vmatmul.mubr.f32.vlgmr.msra.gmra.mrb[6].mxu0 %v3044_v24 }
 0x85f   : > { %11538 = vmatpush3.msra.mxu0 %v15104_v37  ;;  %11539 = vmatprep.mubr.msk.f32.mxu0 %vm14613_vm0, %v16430_v21 }
 0x860   : > { %11542 = vmatprep.subr.mxu0 %v16430_v21 }
 0x866   : > { %11540 = vmatmul.mubr.f32.vlgmr.msra.gmra.mrb[6].mxu0 %v3045_v39 }
 0x867   : > { %11543 = vmatpush3.msra.mxu0 %v15096_v33  ;;  %11544 = vmatprep.mubr.msk.f32.mxu0 %vm14613_vm0, %v16430_v21 }
 0x868   : > { %11547 = vmatprep.subr.mxu0 %v16430_v21 }
 0x86e   : > { %11545 = vmatmul.mubr.f32.vlgmr.msra.gmra.mrb[6].mxu0 %v3046_v3 }
 0x86f   : > { %11548 = vmatpush3.msra.mxu0 %v15108_v45  ;;  %11549 = vmatprep.mubr.msk.f32.mxu0 %vm14613_vm0, %v16430_v21 }
 0x870   : > { %11552 = vmatprep.subr.mxu0 %v16430_v21 }
 0x876   : > { %11550 = vmatmul.mubr.f32.vlgmr.msra.gmra.mrb[6].mxu0 %v3044_v24 }
 0x877   : > { %11553 = vmatpush3.msra.mxu0 %v15096_v33  ;;  %11554 = vmatprep.mubr.msk.f32.mxu0 %vm14613_vm0, %v16430_v21 }
 0x878   : > { %13453 = vmatprep.subr.bf16.mxu0 %v16429_v12 }
 0x87e   : > { %11555 = vmatmul.mubr.f32.vlgmr.msra.gmra.mrb[6].mxu0 %v3044_v24 }
 0x87f   : > { %13455 = vmatpush3.bf16.msra.mxu0 %v14774_v27  ;;  %11589 = vmatprep.mubr.msk.f32.mxu0 %vm14613_vm0, %v16430_v21 }
 0x880   : > { %13456 = vmatprep.subr.bf16.mxu0 %v16429_v12 }
 0x883   : > { %13458 = vmatpush3.bf16.msra.mxu0 %v14777_v28 }
 0x884   : > { %13459 = vmatprep.subr.bf16.mxu0 %v16429_v12 }
 0x887   : > { %13461 = vmatpush3.bf16.msra.mxu0 %v14786_v32 }
 0x888   : > { %13462 = vmatprep.subr.bf16.mxu0 %v16429_v12 }
 0x88b   : > { %13464 = vmatpush3.bf16.msra.mxu0 %v14794_v35 }
 0x88c   : > { %13465 = vmatprep.subr.bf16.mxu0 %v16429_v12 }
 0x88f   : > { %13467 = vmatpush3.bf16.msra.mxu0 %v14818_v48 }
 0x890   : > { %13468 = vmatprep.subr.bf16.mxu0 %v16429_v12 }
 0x893   : > { %13470 = vmatpush3.bf16.msra.mxu0 %v14833_v54 }
 0x894   : > { %13471 = vmatprep.subr.bf16.mxu0 %v16429_v12 }
 0x897   : > { %13473 = vmatpush3.bf16.msra.mxu0 %v14835_v55 }
 0x898   : > { %13474 = vmatprep.subr.bf16.mxu0 %v16429_v12 }
 0x89b   : > { %13476 = vmatpush3.bf16.msra.mxu0 %v14837_v56 }
 0x89c   : > { %13477 = vmatprep.subr.bf16.mxu0 %v16429_v12 }
 0x951   : > { %v3420_v61 = vpop.f32.mrb[6].mxu0 }
 0x952   : > { %v15466_v29 = vmul.f32 %v3420_v61, %v15317_v26  ;;  %v11556_v44 = vpop.f32.mrb[7].mxu0 }
 0x954   : > { %v15469_v4 = vand.u32 4294901760, %v15466_v29 }
 0x956   : > { %v3507_v36 = vsub.f32 %v15466_v29, %v15469_v4 }
 0x958   : > { %v3508_v41 = vand.u32 4294901760, %v3507_v36 }
 0x95a   : > { %v3509_v18 = vsub.f32 %v3507_v36, %v3508_v41 }
 0x95c   : > { %v3510_v46 = vand.u32 4294901760, %v3509_v18  ;;  %v16438_v18 = vld [vmem:[#allocation22_spill] sm:$0xff] }
 0x95e   : > { %11590 = vmatmul.mubr.f32.vlgmr.msra.gmra.mrb[8].mxu0 %v3510_v46 }
 0x95f   : > { %13479 = vmatpush3.bf16.msra.mxu0 %v14918_v52  ;;  %11624 = vmatprep.mubr.msk.f32.mxu0 %vm14613_vm0, %v16430_v21 }
 0x960   : > { %13480 = vmatprep.subr.bf16.mxu0 %v16429_v12 }
 0x963   : > { %13482 = vmatpush3.bf16.msra.mxu0 %v14924_v19 }
 0x964   : > { %13483 = vmatprep.subr.bf16.mxu0 %v16429_v12 }
 0x967   : > { %13485 = vmatpush3.bf16.msra.mxu0 %v14932_v17 }
 0x968   : > { %13486 = vmatprep.subr.bf16.mxu0 %v16429_v12 }
 0x96b   : > { %13488 = vmatpush3.bf16.msra.mxu0 %v14937_v42 }
 0x96c   : > { %13489 = vmatprep.subr.bf16.mxu0 %v16429_v12 }
 0x96f   : > { %13491 = vmatpush3.bf16.msra.mxu0 %v14944_v20 }
 0x970   : > { %13492 = vmatprep.subr.bf16.mxu0 %v16429_v12 }
 0x973   : > { %13494 = vmatpush3.bf16.msra.mxu0 %v14950_v5 }
 0x974   : > { %13495 = vmatprep.subr.bf16.mxu0 %v16429_v12 }
 0x977   : > { %13497 = vmatpush3.bf16.msra.mxu0 %v14955_v22 }
 0x978   : > { %13498 = vmatprep.subr.bf16.mxu0 %v16429_v12 }
 0x97b   : > { %13500 = vmatpush3.bf16.msra.mxu0 %v14959_v8 }
 0x97c   : > { %13501 = vmatprep.subr.bf16.mxu0 %v16429_v12 }
 0x97e   : > { %11625 = vmatmul.mubr.f32.vlgmr.msra.gmra.mrb[8].mxu0 %v15469_v4 }
 0x97f   : > { %13503 = vmatpush3.bf16.msra.mxu0 %v14965_v63  ;;  %11659 = vmatprep.mubr.msk.f32.mxu0 %vm14613_vm0, %v16430_v21 }
 0x980   : > { %13504 = vmatprep.subr.bf16.mxu0 %v16429_v12 }
 0x983   : > { %13506 = vmatpush3.bf16.msra.mxu0 %v14972_v62 }
 0x984   : > { %13507 = vmatprep.subr.bf16.mxu0 %v16429_v12 }
 0x987   : > { %13509 = vmatpush3.bf16.msra.mxu0 %v14980_v38 }
 0x988   : > { %13510 = vmatprep.subr.bf16.mxu0 %v16429_v12 }
 0x98b   : > { %13512 = vmatpush3.bf16.msra.mxu0 %v14986_v40 }
 0x98c   : > { %13513 = vmatprep.subr.bf16.mxu0 %v16429_v12 }
 0x98f   : > { %13515 = vmatpush3.bf16.msra.mxu0 %v14992_v47 }
 0x990   : > { %13516 = vmatprep.subr.bf16.mxu0 %v16429_v12 }
 0x993   : > { %13518 = vmatpush3.bf16.msra.mxu0 %v14998_v50 }
 0x994   : > { %13519 = vmatprep.subr.bf16.mxu0 %v16429_v12 }
 0x997   : > { %13521 = vmatpush3.bf16.msra.mxu0 %v15004_v53 }
 0x998   : > { %13522 = vmatprep.subr.bf16.mxu0 %v16429_v12 }
 0x99b   : > { %13524 = vmatpush3.bf16.msra.mxu0 %v15010_v60 }
 0x99c   : > { %13525 = vmatprep.subr.bf16.mxu0 %v16429_v12 }
 0x99e   : > { %11660 = vmatmul.mubr.f32.vlgmr.msra.gmra.mrb[8].mxu0 %v3507_v36 }
 0x99f   : > { %13527 = vmatpush3.bf16.msra.mxu0 %v14774_v27  ;;  %11694 = vmatprep.mubr.msk.f32.mxu0 %vm14613_vm0, %v16430_v21 }
 0x9a0   : > { %13528 = vmatprep.subr.bf16.mxu0 %v16429_v12 }
 0x9a3   : > { %13530 = vmatpush3.bf16.msra.mxu0 %v14777_v28 }
 0x9a4   : > { %13531 = vmatprep.subr.bf16.mxu0 %v16429_v12 }
 0x9a7   : > { %13533 = vmatpush3.bf16.msra.mxu0 %v14786_v32 }
 0x9a8   : > { %13534 = vmatprep.subr.bf16.mxu0 %v16429_v12 }
 0x9ab   : > { %13536 = vmatpush3.bf16.msra.mxu0 %v14794_v35 }
 0x9ac   : > { %13537 = vmatprep.subr.bf16.mxu0 %v16429_v12 }
 0x9af   : > { %13539 = vmatpush3.bf16.msra.mxu0 %v14818_v48 }
 0x9b0   : > { %13540 = vmatprep.subr.bf16.mxu0 %v16429_v12 }
 0x9b3   : > { %13542 = vmatpush3.bf16.msra.mxu0 %v14833_v54 }
 0x9b4   : > { %13543 = vmatprep.subr.bf16.mxu0 %v16429_v12 }
 0x9b7   : > { %13545 = vmatpush3.bf16.msra.mxu0 %v14835_v55 }
 0x9b8   : > { %13546 = vmatprep.subr.bf16.mxu0 %v16429_v12 }
 0x9bb   : > { %13548 = vmatpush3.bf16.msra.mxu0 %v14837_v56 }
 0x9bc   : > { %13549 = vmatprep.subr.bf16.mxu0 %v16429_v12 }
 0x9be   : > { %11695 = vmatmul.mubr.f32.vlgmr.msra.gmra.mrb[8].mxu0 %v3508_v41 }
 0x9bf   : > { %13551 = vmatpush3.bf16.msra.mxu0 %v14899_v43  ;;  %11729 = vmatprep.mubr.msk.f32.mxu0 %vm14613_vm0, %v16430_v21 }
 0x9c0   : > { %13552 = vmatprep.subr.bf16.mxu0 %v16429_v12 }
 0x9c3   : > { %13554 = vmatpush3.bf16.msra.mxu0 %v14901_v9 }
 0x9c4   : > { %13555 = vmatprep.subr.bf16.mxu0 %v16429_v12 }
 0x9c7   : > { %13557 = vmatpush3.bf16.msra.mxu0 %v14903_v10 }
 0x9c8   : > { %13558 = vmatprep.subr.bf16.mxu0 %v16429_v12 }
 0x9cb   : > { %13560 = vmatpush3.bf16.msra.mxu0 %v14905_v11 }
 0x9cc   : > { %13561 = vmatprep.subr.bf16.mxu0 %v16429_v12 }
 0x9cf   : > { %13563 = vmatpush3.bf16.msra.mxu0 %v14908_v13 }
 0x9d0   : > { %13564 = vmatprep.subr.bf16.mxu0 %v16429_v12 }
 0x9d3   : > { %13566 = vmatpush3.bf16.msra.mxu0 %v14910_v14 }
 0x9d4   : > { %13567 = vmatprep.subr.bf16.mxu0 %v16429_v12 }
 0x9d7   : > { %13569 = vmatpush3.bf16.msra.mxu0 %v14912_v15 }
 0x9d8   : > { %13570 = vmatprep.subr.bf16.mxu0 %v16429_v12 }
 0x9db   : > { %13572 = vmatpush3.bf16.msra.mxu0 %v14914_v16 }
 0x9dc   : > { %13573 = vmatprep.subr.bf16.mxu0 %v16429_v12 }
 0x9de   : > { %11730 = vmatmul.mubr.f32.vlgmr.msra.gmra.mrb[8].mxu0 %v15469_v4 }
 0x9df   : > { %13575 = vmatpush3.bf16.msra.mxu0 %v14774_v27  ;;  %11764 = vmatprep.mubr.msk.f32.mxu0 %vm14613_vm0, %v16430_v21 }
 0x9e0   : > { %13576 = vmatprep.subr.bf16.mxu0 %v16429_v12 }
 0x9e3   : > { %13578 = vmatpush3.bf16.msra.mxu0 %v14777_v28 }
 0x9e4   : > { %13579 = vmatprep.subr.bf16.mxu0 %v16429_v12 }
 0x9e7   : > { %13581 = vmatpush3.bf16.msra.mxu0 %v14786_v32 }
 0x9e8   : > { %13582 = vmatprep.subr.bf16.mxu0 %v16429_v12 }
 0x9eb   : > { %13584 = vmatpush3.bf16.msra.mxu0 %v14794_v35 }
 0x9ec   : > { %13585 = vmatprep.subr.bf16.mxu0 %v16429_v12 }
 0x9ef   : > { %13587 = vmatpush3.bf16.msra.mxu0 %v14818_v48 }
 0x9f0   : > { %13588 = vmatprep.subr.bf16.mxu0 %v16429_v12 }
 0x9f3   : > { %13590 = vmatpush3.bf16.msra.mxu0 %v14833_v54 }
 0x9f4   : > { %13591 = vmatprep.subr.bf16.mxu0 %v16429_v12 }
 0x9f7   : > { %13593 = vmatpush3.bf16.msra.mxu0 %v14835_v55 }
 0x9f8   : > { %13594 = vmatprep.subr.bf16.mxu0 %v16429_v12 }
 0x9fb   : > { %13596 = vmatpush3.bf16.msra.mxu0 %v14837_v56 }
 0x9fc   : > { %12019 = vmatprep.subr.mxu0 %v16430_v21 }
 0x9fe   : > { %11765 = vmatmul.mubr.f32.vlgmr.msra.gmra.mrb[8].mxu0 %v15469_v4 }
 0x9ff   : > { %12020 = vmatpush3.msra.mxu0 %v15096_v33  ;;  %12021 = vmatprep.mubr.msk.f32.mxu0 %vm14613_vm0, %v16430_v21 }
 0xa00   : > { %12024 = vmatprep.subr.mxu0 %v16430_v21 }
 0xad1   : > { %v4062_v0 = vpop.f32.mrb[8].mxu0 }
 0xad2   : > { %v4066_v58 = vsub.f32 %v4062_v0, %v14657_v1  ;;  %v4073_v49 = vmax.f32 %v4062_v0, 1e-08  ;;  %v11766_v31 = vpop.f32.mrb[9].mxu0  ;;  %v2968_v0 = vpop.xlane.xlu0 %2967 }
 0xad3   : > { %vm2969_vm11 = vcmp.le.f32.partialorder %v2968_v0, 0.0 }
 0xad4   : > { %v4067_v51 = vand.u32 2147483647, %v4066_v58  ;;  %14574 = vrcp.f32 %v4073_v49 }
 0xad6   : > { %v4068_v24 = vsub.f32 %v4067_v51, %v14662_v2 }
 0xad8   : > { %v4069_v39 = vsel %vm1804_vm3, %v4068_v24, -inf }
 0xad9   : > { %4070 = vmax.xlane.f32.xlu1 %v4069_v39 }
 0xade   : > { %v14575_v3 = vpop.eup %14574 }
 0xadf   : > { %v4075_v25 = vmul.f32 %v14575_v3, %v14657_v1 }
 0xae1   : > { %v4077_v23 = vsel %vm1812_vm4, %v4075_v25, 0 }
 0xae2   : > { %v4146_v61 = vand.u32 4294901760, %v4077_v23 }
 0xae4   : > { %v4147_v44 = vsub.f32 %v4077_v23, %v4146_v61 }
 0xae6   : > { %v4148_v4 = vand.u32 4294901760, %v4147_v44 }
 0xae8   : > { %v4149_v36 = vsub.f32 %v4147_v44, %v4148_v4 }
 0xaea   : > { %v4150_v41 = vand.u32 4294901760, %v4149_v36 }
 0xaec   : > { %11772 = vmatmul.mubr.f32.vlgmr.msra.gmra.mrb[6].mxu1 %v4150_v41 }
 0xaed   : > { %13602 = vmatpush3.bf16.msra.mxu1 %v15268_v59  ;;  %11778 = vmatprep.mubr.msk.f32.mxu1 %vm14613_vm0, %v16430_v21 }
 0xaee   : > { %13603 = vmatprep.subr.bf16.mxu1 %v16429_v12 }
 0xaf4   : > { %11779 = vmatmul.mubr.f32.vlgmr.msra.gmra.mrb[6].mxu1 %v4146_v61 }
 0xaf5   : > { %13605 = vmatpush3.bf16.msra.mxu1 %v15270_v6  ;;  %11785 = vmatprep.mubr.msk.f32.mxu1 %vm14613_vm0, %v16430_v21 }
 0xaf6   : > { %13606 = vmatprep.subr.bf16.mxu1 %v16429_v12 }
 0xafc   : > { %11786 = vmatmul.mubr.f32.vlgmr.msra.gmra.mrb[6].mxu1 %v4147_v44 }
 0xafd   : > { %13608 = vmatpush3.bf16.msra.mxu1 %v15262_v34  ;;  %11792 = vmatprep.mubr.msk.f32.mxu1 %vm14613_vm0, %v16430_v21 }
 0xafe   : > { %13609 = vmatprep.subr.bf16.mxu1 %v16429_v12 }
 0xb04   : > { %11793 = vmatmul.mubr.f32.vlgmr.msra.gmra.mrb[6].mxu1 %v4148_v4 }
 0xb05   : > { %13611 = vmatpush3.bf16.msra.mxu1 %v16438_v18  ;;  %11799 = vmatprep.mubr.msk.f32.mxu1 %vm14613_vm0, %v16430_v21 }
 0xb06   : > { %13612 = vmatprep.subr.bf16.mxu1 %v16429_v12 }
 0xb0c   : > { %11800 = vmatmul.mubr.f32.vlgmr.msra.gmra.mrb[6].mxu1 %v4146_v61 }
 0xb0d   : > { %13614 = vmatpush3.bf16.msra.mxu1 %v15262_v34  ;;  %11806 = vmatprep.mubr.msk.f32.mxu1 %vm14613_vm0, %v16430_v21 }
 0xb0e   : > { %13615 = vmatprep.subr.bf16.mxu1 %v16429_v12 }
 0xb14   : > { %11807 = vmatmul.mubr.f32.vlgmr.msra.gmra.mrb[6].mxu1 %v4146_v61 }
 0xb15   : > { %13617 = vmatpush3.bf16.msra.mxu1 %v14774_v27  ;;  %11841 = vmatprep.mubr.msk.f32.mxu1 %vm14613_vm0, %v16430_v21 }
 0xb16   : > { %13618 = vmatprep.subr.bf16.mxu1 %v16429_v12 }
 0xb19   : > { %13620 = vmatpush3.bf16.msra.mxu1 %v14777_v28 }
 0xb1a   : > { %13621 = vmatprep.subr.bf16.mxu1 %v16429_v12 }
 0xb1d   : > { %13623 = vmatpush3.bf16.msra.mxu1 %v14786_v32 }
 0xb1e   : > { %13624 = vmatprep.subr.bf16.mxu1 %v16429_v12 }
 0xb21   : > { %13626 = vmatpush3.bf16.msra.mxu1 %v14794_v35 }
 0xb22   : > { %13627 = vmatprep.subr.bf16.mxu1 %v16429_v12 }
 0xb25   : > { %13629 = vmatpush3.bf16.msra.mxu1 %v14818_v48 }
 0xb26   : > { %13630 = vmatprep.subr.bf16.mxu1 %v16429_v12 }
 0xb29   : > { %13632 = vmatpush3.bf16.msra.mxu1 %v14833_v54 }
 0xb2a   : > { %13633 = vmatprep.subr.bf16.mxu1 %v16429_v12 }
 0xb2d   : > { %13635 = vmatpush3.bf16.msra.mxu1 %v14835_v55 }
 0xb2e   : > { %13636 = vmatprep.subr.bf16.mxu1 %v16429_v12 }
 0xb31   : > { %13638 = vmatpush3.bf16.msra.mxu1 %v14837_v56 }
 0xb32   : > { %13639 = vmatprep.subr.bf16.mxu1 %v16429_v12 }
 0xb66   : > { %v4071_v46 = vpop.xlane.xlu1 %4070 }
 0xb67   : > { %vm4072_vm10 = vcmp.le.f32.partialorder %v4071_v46, 0.0 }
 0xbe7   : > { %v4534_v58 = vpop.f32.mrb[6].mxu1 }
 0xbe8   : > { %v4538_v49 = vmul.f32 %v4534_v58, %v15466_v29  ;;  %v11808_v31 = vpop.f32.mrb[7].mxu1 }
 0xbea   : > { %v4541_v51 = vsel %vm4072_vm10, %v15466_v29, %v4538_v49 }
 0xbeb   : > { %v4544_v24 = vsel %vm2969_vm11, %v15317_v26, %v4541_v51 }
 0xbec   : > { %v4545_v39 = vmax.f32 %v4544_v24, 1e-08 }
 0xbee   : > { %v4546_v3 = vsel %vm2283_vm7, %v4545_v39, 0.0 }
 0xbef   : > { %v4547_v25 = vrot.slane %v4546_v3, 4 }
 0xbf1   : > { %v4548_v23 = vadd.f32 %v4547_v25, %v4546_v3 }
 0xbf3   : > { %v4549_v61 = vrot.slane %v4548_v23, 2 }
 0xbf5   : > { %v4550_v44 = vadd.f32 %v4549_v61, %v4548_v23 }
 0xbf7   : > { %v4551_v4 = vrot.slane %v4550_v44, 1 }
 0xbf9   : > { %v4552_v36 = vadd.f32 %v4551_v4, %v4550_v44 }
 0xbfb   : > { %14576 = vrcp.f32 %v4552_v36 }
 0xc05   : > { %v14577_v41 = vpop.eup %14576 }
 0xc06   : > { %v4554_v30 = vmul.f32 %v14577_v41, %v4545_v39 }
 0xc08   : > { %v4555_v58 = vmax.f32 %v4554_v30, 1e-08 }
 0xc0a   : > { %v4556_v31 = vmin.f32 %v4555_v58, 1.0 }
 0xc0c   : > { %v4557_v46 = vsel %vm2283_vm7, %v4556_v31, 0.0 }
 0xc0d   : > { %v4558_v0 = vrot.slane %v4557_v46, 4 }
 0xc0f   : > { %v4559_v29 = vadd.f32 %v4558_v0, %v4557_v46 }
 0xc11   : > { %v4560_v49 = vrot.slane %v4559_v29, 2 }
 0xc13   : > { %v4561_v51 = vadd.f32 %v4560_v49, %v4559_v29 }
 0xc15   : > { %v4562_v24 = vrot.slane %v4561_v51, 1 }
 0xc17   : > { %v4563_v18 = vadd.f32 %v4562_v24, %v4561_v51 }
 0xc19   : > { %14578 = vrcp.f32 %v4563_v18  ;;  %v16439_v18 = vmax.f32 %v15311_v7, 0.0 }
 0xc23   : > { %v14579_v6 = vpop.eup %14578 }
 0xc24   : > { %v4565_v3 = vmul.f32 %v14579_v6, %v4556_v31 }
 0xc26   : > { %v4566_v25 = vmul.f32 %v4565_v3, %v4552_v36 }
 0xc28   : > { %vm4567_vm12 = vcmp.ne.f32.partialorder %v4566_v25, %v4566_v25 }
 0xc29   : > { %v4568_v23 = vsel %vm4567_vm12, 1.0, %v16430_v21 }
 0xc2a   : > { %v4569_v61 = vsel %vm2283_vm7, %v4568_v23, -inf }
 0xc2b   : > { %4570 = vmax.xlane.f32.xlu0 %v4569_v61 }
 0xcb8   : > { %v4571_v30 = vpop.xlane.xlu0 %4570 }
 0xcb9   : > { %v4572_v39 = vsel %vm2283_vm7, %v4571_v30, -inf }
 0xcba   : > { %v4573_v44 = vrot.slane %v4572_v39, 4 }
 0xcbc   : > { %v4574_v4 = vmax.f32 %v4572_v39, %v4573_v44 }
 0xcbe   : > { %v4575_v41 = vrot.slane %v4574_v4, 2 }
 0xcc0   : > { %v4576_v58 = vmax.f32 %v4574_v4, %v4575_v41 }
 0xcc2   : > { %v4577_v46 = vrot.slane %v4576_v58, 1 }
 0xcc4   : > { %v4578_v0 = vmax.f32 %v4576_v58, %v4577_v46 }
 0xcc6   : > { %v15623_v29 = vmax.f32 %v16439_v18, %v4578_v0 }
 0xcc8   : > { %vm4580_vm13 = vcmp.gt.f32.partialorder %v15623_v29, 0.0 }
 0xcc9   : > { %v15627_v6 = vsel %vm4580_vm13, %v15317_v26, %v4566_v25 }
 0xcca   : > { %v15630_v36 = vand.u32 4294901760, %v15627_v6 }
 0xccc   : > { %v4666_v31 = vsub.f32 %v15627_v6, %v15630_v36 }
 0xcce   : > { %v4667_v49 = vand.u32 4294901760, %v4666_v31 }
 0xcd0   : > { %v4668_v51 = vsub.f32 %v4666_v31, %v4667_v49 }
 0xcd2   : > { %v4669_v24 = vand.u32 4294901760, %v4668_v51 }
 0xcd4   : > { %11842 = vmatmul.mubr.f32.vlgmr.msra.gmra.mrb[8].mxu1 %v4669_v24 }
 0xcd5   : > { %13641 = vmatpush3.bf16.msra.mxu1 %v14918_v52  ;;  %11876 = vmatprep.mubr.msk.f32.mxu1 %vm14613_vm0, %v16430_v21 }
 0xcd6   : > { %13642 = vmatprep.subr.bf16.mxu1 %v16429_v12 }
 0xcd9   : > { %13644 = vmatpush3.bf16.msra.mxu1 %v14924_v19 }
 0xcda   : > { %13645 = vmatprep.subr.bf16.mxu1 %v16429_v12 }
 0xcdd   : > { %13647 = vmatpush3.bf16.msra.mxu1 %v14932_v17 }
 0xcde   : > { %13648 = vmatprep.subr.bf16.mxu1 %v16429_v12 }
 0xce1   : > { %13650 = vmatpush3.bf16.msra.mxu1 %v14937_v42 }
 0xce2   : > { %13651 = vmatprep.subr.bf16.mxu1 %v16429_v12 }
 0xce5   : > { %13653 = vmatpush3.bf16.msra.mxu1 %v14944_v20 }
 0xce6   : > { %13654 = vmatprep.subr.bf16.mxu1 %v16429_v12 }
 0xce9   : > { %13656 = vmatpush3.bf16.msra.mxu1 %v14950_v5 }
 0xcea   : > { %13657 = vmatprep.subr.bf16.mxu1 %v16429_v12 }
 0xced   : > { %13659 = vmatpush3.bf16.msra.mxu1 %v14955_v22 }
 0xcee   : > { %13660 = vmatprep.subr.bf16.mxu1 %v16429_v12 }
 0xcf1   : > { %13662 = vmatpush3.bf16.msra.mxu1 %v14959_v8 }
 0xcf2   : > { %13663 = vmatprep.subr.bf16.mxu1 %v16429_v12 }
 0xcf4   : > { %11877 = vmatmul.mubr.f32.vlgmr.msra.gmra.mrb[8].mxu1 %v15630_v36 }
 0xcf5   : > { %13665 = vmatpush3.bf16.msra.mxu1 %v14965_v63  ;;  %11911 = vmatprep.mubr.msk.f32.mxu1 %vm14613_vm0, %v16430_v21 }
 0xcf6   : > { %13666 = vmatprep.subr.bf16.mxu1 %v16429_v12 }
 0xcf9   : > { %13668 = vmatpush3.bf16.msra.mxu1 %v14972_v62 }
 0xcfa   : > { %13669 = vmatprep.subr.bf16.mxu1 %v16429_v12 }
 0xcfd   : > { %13671 = vmatpush3.bf16.msra.mxu1 %v14980_v38 }
 0xcfe   : > { %13672 = vmatprep.subr.bf16.mxu1 %v16429_v12 }
 0xd01   : > { %13674 = vmatpush3.bf16.msra.mxu1 %v14986_v40 }
 0xd02   : > { %13675 = vmatprep.subr.bf16.mxu1 %v16429_v12 }
 0xd05   : > { %13677 = vmatpush3.bf16.msra.mxu1 %v14992_v47 }
 0xd06   : > { %13678 = vmatprep.subr.bf16.mxu1 %v16429_v12 }
 0xd09   : > { %13680 = vmatpush3.bf16.msra.mxu1 %v14998_v50 }
 0xd0a   : > { %13681 = vmatprep.subr.bf16.mxu1 %v16429_v12 }
 0xd0d   : > { %13683 = vmatpush3.bf16.msra.mxu1 %v15004_v53 }
 0xd0e   : > { %13684 = vmatprep.subr.bf16.mxu1 %v16429_v12 }
 0xd11   : > { %13686 = vmatpush3.bf16.msra.mxu1 %v15010_v60 }
 0xd12   : > { %13687 = vmatprep.subr.bf16.mxu1 %v16429_v12 }
 0xd14   : > { %11912 = vmatmul.mubr.f32.vlgmr.msra.gmra.mrb[8].mxu1 %v4666_v31 }
 0xd15   : > { %13689 = vmatpush3.bf16.msra.mxu1 %v14774_v27  ;;  %11946 = vmatprep.mubr.msk.f32.mxu1 %vm14613_vm0, %v16430_v21 }
 0xd16   : > { %13690 = vmatprep.subr.bf16.mxu1 %v16429_v12 }
 0xd19   : > { %13692 = vmatpush3.bf16.msra.mxu1 %v14777_v28 }
 0xd1a   : > { %13693 = vmatprep.subr.bf16.mxu1 %v16429_v12 }
 0xd1d   : > { %13695 = vmatpush3.bf16.msra.mxu1 %v14786_v32 }
 0xd1e   : > { %13696 = vmatprep.subr.bf16.mxu1 %v16429_v12 }
 0xd21   : > { %13698 = vmatpush3.bf16.msra.mxu1 %v14794_v35 }
 0xd22   : > { %13699 = vmatprep.subr.bf16.mxu1 %v16429_v12 }
 0xd25   : > { %13701 = vmatpush3.bf16.msra.mxu1 %v14818_v48 }
 0xd26   : > { %13702 = vmatprep.subr.bf16.mxu1 %v16429_v12 }
 0xd29   : > { %13704 = vmatpush3.bf16.msra.mxu1 %v14833_v54 }
 0xd2a   : > { %13705 = vmatprep.subr.bf16.mxu1 %v16429_v12 }
 0xd2d   : > { %13707 = vmatpush3.bf16.msra.mxu1 %v14835_v55 }
 0xd2e   : > { %13708 = vmatprep.subr.bf16.mxu1 %v16429_v12 }
 0xd31   : > { %13710 = vmatpush3.bf16.msra.mxu1 %v14837_v56 }
 0xd32   : > { %13711 = vmatprep.subr.bf16.mxu1 %v16429_v12 }
 0xd34   : > { %11947 = vmatmul.mubr.f32.vlgmr.msra.gmra.mrb[8].mxu1 %v4667_v49 }
 0xd35   : > { %13713 = vmatpush3.bf16.msra.mxu1 %v14899_v43  ;;  %11981 = vmatprep.mubr.msk.f32.mxu1 %vm14613_vm0, %v16430_v21 }
 0xd36   : > { %13714 = vmatprep.subr.bf16.mxu1 %v16429_v12 }
 0xd39   : > { %13716 = vmatpush3.bf16.msra.mxu1 %v14901_v9 }
 0xd3a   : > { %13717 = vmatprep.subr.bf16.mxu1 %v16429_v12 }
 0xd3d   : > { %13719 = vmatpush3.bf16.msra.mxu1 %v14903_v10 }
 0xd3e   : > { %13720 = vmatprep.subr.bf16.mxu1 %v16429_v12 }
 0xd41   : > { %13722 = vmatpush3.bf16.msra.mxu1 %v14905_v11 }
 0xd42   : > { %13723 = vmatprep.subr.bf16.mxu1 %v16429_v12 }
 0xd45   : > { %13725 = vmatpush3.bf16.msra.mxu1 %v14908_v13 }
 0xd46   : > { %13726 = vmatprep.subr.bf16.mxu1 %v16429_v12 }
 0xd49   : > { %13728 = vmatpush3.bf16.msra.mxu1 %v14910_v14 }
 0xd4a   : > { %13729 = vmatprep.subr.bf16.mxu1 %v16429_v12 }
 0xd4d   : > { %13731 = vmatpush3.bf16.msra.mxu1 %v14912_v15 }
 0xd4e   : > { %13732 = vmatprep.subr.bf16.mxu1 %v16429_v12 }
 0xd51   : > { %13734 = vmatpush3.bf16.msra.mxu1 %v14914_v16 }
 0xd52   : > { %13735 = vmatprep.subr.bf16.mxu1 %v16429_v12 }
 0xd54   : > { %11982 = vmatmul.mubr.f32.vlgmr.msra.gmra.mrb[8].mxu1 %v15630_v36 }
 0xd55   : > { %13737 = vmatpush3.bf16.msra.mxu1 %v14774_v27  ;;  %12016 = vmatprep.mubr.msk.f32.mxu1 %vm14613_vm0, %v16430_v21 }
 0xd56   : > { %13738 = vmatprep.subr.bf16.mxu1 %v16429_v12 }
 0xd59   : > { %13740 = vmatpush3.bf16.msra.mxu1 %v14777_v28 }
 0xd5a   : > { %13741 = vmatprep.subr.bf16.mxu1 %v16429_v12 }
 0xd5d   : > { %13743 = vmatpush3.bf16.msra.mxu1 %v14786_v32 }
 0xd5e   : > { %13744 = vmatprep.subr.bf16.mxu1 %v16429_v12 }
 0xd61   : > { %13746 = vmatpush3.bf16.msra.mxu1 %v14794_v35 }
 0xd62   : > { %13747 = vmatprep.subr.bf16.mxu1 %v16429_v12 }
 0xd65   : > { %13749 = vmatpush3.bf16.msra.mxu1 %v14818_v48 }
 0xd66   : > { %13750 = vmatprep.subr.bf16.mxu1 %v16429_v12 }
 0xd69   : > { %13752 = vmatpush3.bf16.msra.mxu1 %v14833_v54 }
 0xd6a   : > { %13753 = vmatprep.subr.bf16.mxu1 %v16429_v12 }
 0xd6d   : > { %13755 = vmatpush3.bf16.msra.mxu1 %v14835_v55 }
 0xd6e   : > { %13756 = vmatprep.subr.bf16.mxu1 %v16429_v12 }
 0xd71   : > { %13758 = vmatpush3.bf16.msra.mxu1 %v14837_v56 }
 0xd72   : > { %13903 = vmatprep.subr.bf16.mxu1 %v16429_v12 }
 0xd74   : > { %12017 = vmatmul.mubr.f32.vlgmr.msra.gmra.mrb[8].mxu1 %v15630_v36 }
 0xd75   : > { %13905 = vmatpush3.bf16.msra.mxu1 %v15262_v34  ;;  %12263 = vmatprep.mubr.msk.f32.mxu1 %vm14613_vm0, %v16430_v21 }
 0xd76   : > { %13906 = vmatprep.subr.bf16.mxu1 %v16429_v12 }
 0xe47   : > { %v5221_v7 = vpop.f32.mrb[8].mxu1 }
 0xe48   : > { %v5232_v26 = vmax.f32 %v5221_v7, 1e-08  ;;  %v12018_v3 = vpop.f32.mrb[9].mxu1  ;;  %v5225_v61 = vsub.f32 %v5221_v7, %v14657_v1 }
 0xe4a   : > { %14580 = vrcp.f32 %v5232_v26  ;;  %v5226_v30 = vand.u32 2147483647, %v5225_v61 }
 0xe4c   : > { %v5227_v39 = vsub.f32 %v5226_v30, %v14662_v2 }
 0xe4e   : > { %v5228_v44 = vsel %vm699_vm1, %v5227_v39, -inf }
 0xe54   : > { %v14581_v25 = vpop.eup %14580 }
 0xe55   : > { %v5234_v23 = vmul.f32 %v14581_v25, %v14657_v1 }
 0xe57   : > { %5236 = vrot.lane.b32.xlu0 %v5234_v23, %s14615_s3 }
 0xe76   : > { %5229 = vmax.xlane.f32.xlu0 %v5228_v44 }
 0xec9   : > { %v5237_v4 = vpop.permute.xlu0 %5236 }
 0xeca   : > { %v5238_v41 = vsel %vm710_vm2, %v5237_v4, 0 }
 0xecb   : > { %v5306_v58 = vand.u32 4294901760, %v5238_v41 }
 0xecd   : > { %v5307_v46 = vsub.f32 %v5238_v41, %v5306_v58 }
 0xecf   : > { %v5308_v0 = vand.u32 4294901760, %v5307_v46 }
 0xed1   : > { %v5309_v18 = vsub.f32 %v5307_v46, %v5308_v0 }
 0xed3   : > { %v5310_v36 = vand.u32 4294901760, %v5309_v18 }
 0xed5   : > { %12022 = vmatmul.mubr.f32.vlgmr.msra.gmra.mrb[10].mxu0 %v5310_v36 }
 0xed6   : > { %12025 = vmatpush3.msra.mxu0 %v15112_v57  ;;  %12026 = vmatprep.mubr.msk.f32.mxu0 %vm14613_vm0, %v16430_v21 }
 0xed7   : > { %12029 = vmatprep.subr.mxu0 %v16430_v21 }
 0xedd   : > { %12027 = vmatmul.mubr.f32.vlgmr.msra.gmra.mrb[10].mxu0 %v5306_v58 }
 0xede   : > { %12030 = vmatpush3.msra.mxu0 %v15104_v37  ;;  %12031 = vmatprep.mubr.msk.f32.mxu0 %vm14613_vm0, %v16430_v21 }
 0xedf   : > { %12034 = vmatprep.subr.mxu0 %v16430_v21 }
 0xee5   : > { %12032 = vmatmul.mubr.f32.vlgmr.msra.gmra.mrb[10].mxu0 %v5307_v46 }
 0xee6   : > { %12035 = vmatpush3.msra.mxu0 %v15096_v33  ;;  %12036 = vmatprep.mubr.msk.f32.mxu0 %vm14613_vm0, %v16430_v21 }
 0xee7   : > { %12039 = vmatprep.subr.mxu0 %v16430_v21 }
 0xeed   : > { %12037 = vmatmul.mubr.f32.vlgmr.msra.gmra.mrb[10].mxu0 %v5308_v0 }
 0xeee   : > { %12040 = vmatpush3.msra.mxu0 %v15108_v45  ;;  %12041 = vmatprep.mubr.msk.f32.mxu0 %vm14613_vm0, %v16430_v21 }
 0xeef   : > { %12044 = vmatprep.subr.mxu0 %v16430_v21 }
 0xef5   : > { %12042 = vmatmul.mubr.f32.vlgmr.msra.gmra.mrb[10].mxu0 %v5306_v58 }
 0xef6   : > { %12045 = vmatpush3.msra.mxu0 %v15096_v33  ;;  %12046 = vmatprep.mubr.msk.f32.mxu0 %vm14613_vm0, %v16430_v21 }
 0xef7   : > { %13759 = vmatprep.subr.bf16.mxu0 %v16429_v12 }
 0xefd   : > { %12047 = vmatmul.mubr.f32.vlgmr.msra.gmra.mrb[10].mxu0 %v5306_v58 }
 0xefe   : > { %13761 = vmatpush3.bf16.msra.mxu0 %v14774_v27  ;;  %12081 = vmatprep.mubr.msk.f32.mxu0 %vm14613_vm0, %v16430_v21 }
 0xeff   : > { %13762 = vmatprep.subr.bf16.mxu0 %v16429_v12 }
 0xf02   : > { %13764 = vmatpush3.bf16.msra.mxu0 %v14777_v28 }
 0xf03   : > { %13765 = vmatprep.subr.bf16.mxu0 %v16429_v12 }
 0xf06   : > { %13767 = vmatpush3.bf16.msra.mxu0 %v14786_v32 }
 0xf07   : > { %13768 = vmatprep.subr.bf16.mxu0 %v16429_v12 }
 0xf0a   : > { %13770 = vmatpush3.bf16.msra.mxu0 %v14794_v35 }
 0xf0b   : > { %13771 = vmatprep.subr.bf16.mxu0 %v16429_v12 }
 0xf0e   : > { %13773 = vmatpush3.bf16.msra.mxu0 %v14818_v48 }
 0xf0f   : > { %13774 = vmatprep.subr.bf16.mxu0 %v16429_v12 }
 0xf12   : > { %13776 = vmatpush3.bf16.msra.mxu0 %v14833_v54 }
 0xf13   : > { %13777 = vmatprep.subr.bf16.mxu0 %v16429_v12 }
 0xf16   : > { %13779 = vmatpush3.bf16.msra.mxu0 %v14835_v55 }
 0xf17   : > { %13780 = vmatprep.subr.bf16.mxu0 %v16429_v12 }
 0xf1a   : > { %13782 = vmatpush3.bf16.msra.mxu0 %v14837_v56 }
 0xf1b   : > { %13783 = vmatprep.subr.bf16.mxu0 %v16429_v12 }
 0xfd0   : > { %v5682_v31 = vpop.f32.mrb[10].mxu0 }
 0xfd1   : > { %v15776_v49 = vmul.f32 %v5682_v31, %v15627_v6  ;;  %v12048_v51 = vpop.f32.mrb[11].mxu0 }
 0xfd3   : > { %v15779_v24 = vand.u32 4294901760, %v15776_v49 }
 0xfd5   : > { %v5769_v7 = vsub.f32 %v15776_v49, %v15779_v24 }
 0xfd7   : > { %v5770_v26 = vand.u32 4294901760, %v5769_v7 }
 0xfd9   : > { %v5771_v3 = vsub.f32 %v5769_v7, %v5770_v26 }
 0xfdb   : > { %v5772_v25 = vand.u32 4294901760, %v5771_v3 }
 0xfdd   : > { %12082 = vmatmul.mubr.f32.vlgmr.msra.gmra.mrb[12].mxu0 %v5772_v25  ;;  %v5230_v25 = vpop.xlane.xlu0 %5229 }
 0xfde   : > { %13785 = vmatpush3.bf16.msra.mxu0 %v14918_v52  ;;  %12116 = vmatprep.mubr.msk.f32.mxu0 %vm14613_vm0, %v16430_v21  ;;  %vm5231_vm15 = vcmp.le.f32.partialorder %v5230_v25, 0.0 }
 0xfdf   : > { %13786 = vmatprep.subr.bf16.mxu0 %v16429_v12 }
 0xfe2   : > { %13788 = vmatpush3.bf16.msra.mxu0 %v14924_v19 }
 0xfe3   : > { %13789 = vmatprep.subr.bf16.mxu0 %v16429_v12 }
 0xfe6   : > { %13791 = vmatpush3.bf16.msra.mxu0 %v14932_v17 }
 0xfe7   : > { %13792 = vmatprep.subr.bf16.mxu0 %v16429_v12 }
 0xfea   : > { %13794 = vmatpush3.bf16.msra.mxu0 %v14937_v42 }
 0xfeb   : > { %13795 = vmatprep.subr.bf16.mxu0 %v16429_v12 }
 0xfee   : > { %13797 = vmatpush3.bf16.msra.mxu0 %v14944_v20 }
 0xfef   : > { %13798 = vmatprep.subr.bf16.mxu0 %v16429_v12 }
 0xff2   : > { %13800 = vmatpush3.bf16.msra.mxu0 %v14950_v5 }
 0xff3   : > { %13801 = vmatprep.subr.bf16.mxu0 %v16429_v12 }
 0xff6   : > { %13803 = vmatpush3.bf16.msra.mxu0 %v14955_v22 }
 0xff7   : > { %13804 = vmatprep.subr.bf16.mxu0 %v16429_v12 }
 0xffa   : > { %13806 = vmatpush3.bf16.msra.mxu0 %v14959_v8 }
 0xffb   : > { %13807 = vmatprep.subr.bf16.mxu0 %v16429_v12 }
 0xffd   : > { %12117 = vmatmul.mubr.f32.vlgmr.msra.gmra.mrb[12].mxu0 %v15779_v24 }
 0xffe   : > { %13809 = vmatpush3.bf16.msra.mxu0 %v14965_v63  ;;  %12151 = vmatprep.mubr.msk.f32.mxu0 %vm14613_vm0, %v16430_v21 }
 0xfff   : > { %13810 = vmatprep.subr.bf16.mxu0 %v16429_v12 }
0x1002   : > { %13812 = vmatpush3.bf16.msra.mxu0 %v14972_v62 }
0x1003   : > { %13813 = vmatprep.subr.bf16.mxu0 %v16429_v12 }
0x1006   : > { %13815 = vmatpush3.bf16.msra.mxu0 %v14980_v38 }
0x1007   : > { %13816 = vmatprep.subr.bf16.mxu0 %v16429_v12 }
0x100a   : > { %13818 = vmatpush3.bf16.msra.mxu0 %v14986_v40 }
0x100b   : > { %13819 = vmatprep.subr.bf16.mxu0 %v16429_v12 }
0x100e   : > { %13821 = vmatpush3.bf16.msra.mxu0 %v14992_v47 }
0x100f   : > { %13822 = vmatprep.subr.bf16.mxu0 %v16429_v12 }
0x1012   : > { %13824 = vmatpush3.bf16.msra.mxu0 %v14998_v50 }
0x1013   : > { %13825 = vmatprep.subr.bf16.mxu0 %v16429_v12 }
0x1016   : > { %13827 = vmatpush3.bf16.msra.mxu0 %v15004_v53 }
0x1017   : > { %13828 = vmatprep.subr.bf16.mxu0 %v16429_v12 }
0x101a   : > { %13830 = vmatpush3.bf16.msra.mxu0 %v15010_v60 }
0x101b   : > { %13831 = vmatprep.subr.bf16.mxu0 %v16429_v12 }
0x101d   : > { %12152 = vmatmul.mubr.f32.vlgmr.msra.gmra.mrb[12].mxu0 %v5769_v7  ;;  %v16440_v7 = vld [vmem:[#allocation21_spill] sm:$0xff] }
0x101e   : > { %13833 = vmatpush3.bf16.msra.mxu0 %v14774_v27  ;;  %12186 = vmatprep.mubr.msk.f32.mxu0 %vm14613_vm0, %v16430_v21 }
0x101f   : > { %13834 = vmatprep.subr.bf16.mxu0 %v16429_v12 }
0x1022   : > { %13836 = vmatpush3.bf16.msra.mxu0 %v14777_v28 }
0x1023   : > { %13837 = vmatprep.subr.bf16.mxu0 %v16429_v12 }
0x1026   : > { %13839 = vmatpush3.bf16.msra.mxu0 %v14786_v32 }
0x1027   : > { %13840 = vmatprep.subr.bf16.mxu0 %v16429_v12 }
0x102a   : > { %13842 = vmatpush3.bf16.msra.mxu0 %v14794_v35 }
0x102b   : > { %13843 = vmatprep.subr.bf16.mxu0 %v16429_v12 }
0x102e   : > { %13845 = vmatpush3.bf16.msra.mxu0 %v14818_v48 }
0x102f   : > { %13846 = vmatprep.subr.bf16.mxu0 %v16429_v12 }
0x1032   : > { %13848 = vmatpush3.bf16.msra.mxu0 %v14833_v54 }
0x1033   : > { %13849 = vmatprep.subr.bf16.mxu0 %v16429_v12 }
0x1036   : > { %13851 = vmatpush3.bf16.msra.mxu0 %v14835_v55 }
0x1037   : > { %13852 = vmatprep.subr.bf16.mxu0 %v16429_v12 }
0x103a   : > { %13854 = vmatpush3.bf16.msra.mxu0 %v14837_v56 }
0x103b   : > { %13855 = vmatprep.subr.bf16.mxu0 %v16429_v12 }
0x103d   : > { %12187 = vmatmul.mubr.f32.vlgmr.msra.gmra.mrb[12].mxu0 %v5770_v26  ;;  %v16441_v26 = vld [vmem:[#allocation22_spill] sm:$0xff] }
0x103e   : > { %13857 = vmatpush3.bf16.msra.mxu0 %v14899_v43  ;;  %12221 = vmatprep.mubr.msk.f32.mxu0 %vm14613_vm0, %v16430_v21 }
0x103f   : > { %13858 = vmatprep.subr.bf16.mxu0 %v16429_v12 }
0x1042   : > { %13860 = vmatpush3.bf16.msra.mxu0 %v14901_v9 }
0x1043   : > { %13861 = vmatprep.subr.bf16.mxu0 %v16429_v12 }
0x1046   : > { %13863 = vmatpush3.bf16.msra.mxu0 %v14903_v10 }
0x1047   : > { %13864 = vmatprep.subr.bf16.mxu0 %v16429_v12 }
0x104a   : > { %13866 = vmatpush3.bf16.msra.mxu0 %v14905_v11 }
0x104b   : > { %13867 = vmatprep.subr.bf16.mxu0 %v16429_v12 }
0x104e   : > { %13869 = vmatpush3.bf16.msra.mxu0 %v14908_v13 }
0x104f   : > { %13870 = vmatprep.subr.bf16.mxu0 %v16429_v12 }
0x1052   : > { %13872 = vmatpush3.bf16.msra.mxu0 %v14910_v14 }
0x1053   : > { %13873 = vmatprep.subr.bf16.mxu0 %v16429_v12 }
0x1056   : > { %13875 = vmatpush3.bf16.msra.mxu0 %v14912_v15 }
0x1057   : > { %13876 = vmatprep.subr.bf16.mxu0 %v16429_v12 }
0x105a   : > { %13878 = vmatpush3.bf16.msra.mxu0 %v14914_v16 }
0x105b   : > { %13879 = vmatprep.subr.bf16.mxu0 %v16429_v12 }
0x105d   : > { %12222 = vmatmul.mubr.f32.vlgmr.msra.gmra.mrb[12].mxu0 %v15779_v24 }
0x105e   : > { %13881 = vmatpush3.bf16.msra.mxu0 %v14774_v27  ;;  %12256 = vmatprep.mubr.msk.f32.mxu0 %vm14613_vm0, %v16430_v21 }
0x105f   : > { %13882 = vmatprep.subr.bf16.mxu0 %v16429_v12 }
0x1062   : > { %13884 = vmatpush3.bf16.msra.mxu0 %v14777_v28 }
0x1063   : > { %13885 = vmatprep.subr.bf16.mxu0 %v16429_v12 }
0x1066   : > { %13887 = vmatpush3.bf16.msra.mxu0 %v14786_v32 }
0x1067   : > { %13888 = vmatprep.subr.bf16.mxu0 %v16429_v12 }
0x106a   : > { %13890 = vmatpush3.bf16.msra.mxu0 %v14794_v35 }
0x106b   : > { %13891 = vmatprep.subr.bf16.mxu0 %v16429_v12 }
0x106e   : > { %13893 = vmatpush3.bf16.msra.mxu0 %v14818_v48 }
0x106f   : > { %13894 = vmatprep.subr.bf16.mxu0 %v16429_v12 }
0x1072   : > { %13896 = vmatpush3.bf16.msra.mxu0 %v14833_v54 }
0x1073   : > { %13897 = vmatprep.subr.bf16.mxu0 %v16429_v12 }
0x1076   : > { %13899 = vmatpush3.bf16.msra.mxu0 %v14835_v55 }
0x1077   : > { %13900 = vmatprep.subr.bf16.mxu0 %v16429_v12 }
0x107a   : > { %13902 = vmatpush3.bf16.msra.mxu0 %v14837_v56 }
0x107b   : > { %12511 = vmatprep.subr.mxu0 %v16430_v21 }
0x107d   : > { %12257 = vmatmul.mubr.f32.vlgmr.msra.gmra.mrb[12].mxu0 %v15779_v24 }
0x107e   : > { %12512 = vmatpush3.msra.mxu0 %v15096_v33  ;;  %12513 = vmatprep.mubr.msk.f32.mxu0 %vm14613_vm0, %v16430_v21 }
0x107f   : > { %12516 = vmatprep.subr.mxu0 %v16430_v21 }
0x1150   : > { %v6324_v23 = vpop.f32.mrb[12].mxu0 }
0x1151   : > { %v6328_v61 = vsub.f32 %v6324_v23, %v14657_v1  ;;  %v6335_v30 = vmax.f32 %v6324_v23, 1e-08  ;;  %v12258_v39 = vpop.f32.mrb[13].mxu0 }
0x1153   : > { %v6329_v44 = vand.u32 2147483647, %v6328_v61  ;;  %14582 = vrcp.f32 %v6335_v30 }
0x1155   : > { %v6330_v4 = vsub.f32 %v6329_v44, %v14662_v2 }
0x1157   : > { %v6331_v41 = vsel %vm1804_vm3, %v6330_v4, -inf }
0x1158   : > { %6332 = vmax.xlane.f32.xlu1 %v6331_v41 }
0x115d   : > { %v14583_v58 = vpop.eup %14582 }
0x115e   : > { %v6337_v46 = vmul.f32 %v14583_v58, %v14657_v1 }
0x1160   : > { %v6339_v0 = vsel %vm1812_vm4, %v6337_v46, 0 }
0x1161   : > { %v6408_v18 = vand.u32 4294901760, %v6339_v0 }
0x1163   : > { %v6409_v36 = vsub.f32 %v6339_v0, %v6408_v18 }
0x1165   : > { %v6410_v31 = vand.u32 4294901760, %v6409_v36 }
0x1167   : > { %v6411_v51 = vsub.f32 %v6409_v36, %v6410_v31 }
0x1169   : > { %v6412_v24 = vand.u32 4294901760, %v6411_v51 }
0x116b   : > { %12264 = vmatmul.mubr.f32.vlgmr.msra.gmra.mrb[10].mxu1 %v6412_v24 }
0x116c   : > { %13908 = vmatpush3.bf16.msra.mxu1 %v15268_v59  ;;  %12270 = vmatprep.mubr.msk.f32.mxu1 %vm14613_vm0, %v16430_v21 }
0x116d   : > { %13909 = vmatprep.subr.bf16.mxu1 %v16429_v12 }
0x1173   : > { %12271 = vmatmul.mubr.f32.vlgmr.msra.gmra.mrb[10].mxu1 %v6408_v18 }
0x1174   : > { %13911 = vmatpush3.bf16.msra.mxu1 %v16440_v7  ;;  %12277 = vmatprep.mubr.msk.f32.mxu1 %vm14613_vm0, %v16430_v21 }
0x1175   : > { %13912 = vmatprep.subr.bf16.mxu1 %v16429_v12 }
0x117b   : > { %12278 = vmatmul.mubr.f32.vlgmr.msra.gmra.mrb[10].mxu1 %v6409_v36 }
0x117c   : > { %13914 = vmatpush3.bf16.msra.mxu1 %v15262_v34  ;;  %12284 = vmatprep.mubr.msk.f32.mxu1 %vm14613_vm0, %v16430_v21 }
0x117d   : > { %13915 = vmatprep.subr.bf16.mxu1 %v16429_v12 }
0x1183   : > { %12285 = vmatmul.mubr.f32.vlgmr.msra.gmra.mrb[10].mxu1 %v6410_v31 }
0x1184   : > { %13917 = vmatpush3.bf16.msra.mxu1 %v16441_v26  ;;  %12291 = vmatprep.mubr.msk.f32.mxu1 %vm14613_vm0, %v16430_v21 }
0x1185   : > { %13918 = vmatprep.subr.bf16.mxu1 %v16429_v12 }
0x118b   : > { %12292 = vmatmul.mubr.f32.vlgmr.msra.gmra.mrb[10].mxu1 %v6408_v18 }
0x118c   : > { %13920 = vmatpush3.bf16.msra.mxu1 %v15262_v34  ;;  %12298 = vmatprep.mubr.msk.f32.mxu1 %vm14613_vm0, %v16430_v21 }
0x118d   : > { %13921 = vmatprep.subr.bf16.mxu1 %v16429_v12 }
0x1193   : > { %12299 = vmatmul.mubr.f32.vlgmr.msra.gmra.mrb[10].mxu1 %v6408_v18 }
0x1194   : > { %13923 = vmatpush3.bf16.msra.mxu1 %v14774_v27  ;;  %12333 = vmatprep.mubr.msk.f32.mxu1 %vm14613_vm0, %v16430_v21 }
0x1195   : > { %13924 = vmatprep.subr.bf16.mxu1 %v16429_v12 }
0x1198   : > { %13926 = vmatpush3.bf16.msra.mxu1 %v14777_v28 }
0x1199   : > { %13927 = vmatprep.subr.bf16.mxu1 %v16429_v12 }
0x119c   : > { %13929 = vmatpush3.bf16.msra.mxu1 %v14786_v32 }
0x119d   : > { %13930 = vmatprep.subr.bf16.mxu1 %v16429_v12 }
0x11a0   : > { %13932 = vmatpush3.bf16.msra.mxu1 %v14794_v35 }
0x11a1   : > { %13933 = vmatprep.subr.bf16.mxu1 %v16429_v12 }
0x11a4   : > { %13935 = vmatpush3.bf16.msra.mxu1 %v14818_v48 }
0x11a5   : > { %13936 = vmatprep.subr.bf16.mxu1 %v16429_v12 }
0x11a8   : > { %13938 = vmatpush3.bf16.msra.mxu1 %v14833_v54 }
0x11a9   : > { %13939 = vmatprep.subr.bf16.mxu1 %v16429_v12 }
0x11ac   : > { %13941 = vmatpush3.bf16.msra.mxu1 %v14835_v55 }
0x11ad   : > { %13942 = vmatprep.subr.bf16.mxu1 %v16429_v12 }
0x11b0   : > { %13944 = vmatpush3.bf16.msra.mxu1 %v14837_v56 }
0x11b1   : > { %13945 = vmatprep.subr.bf16.mxu1 %v16429_v12 }
0x11e5   : > { %v6333_v3 = vpop.xlane.xlu1 %6332 }
0x11e6   : > { %vm6334_vm14 = vcmp.le.f32.partialorder %v6333_v3, 0.0 }
0x1266   : > { %v6796_v23 = vpop.f32.mrb[10].mxu1 }
0x1267   : > { %v6800_v61 = vmul.f32 %v6796_v23, %v15776_v49  ;;  %v12300_v30 = vpop.f32.mrb[11].mxu1 }
0x1269   : > { %v6803_v39 = vsel %vm6334_vm14, %v15776_v49, %v6800_v61 }
0x126a   : > { %v6806_v44 = vsel %vm5231_vm15, %v15627_v6, %v6803_v39 }
0x126b   : > { %v6807_v4 = vmax.f32 %v6806_v44, 1e-08 }
0x126d   : > { %v6808_v41 = vsel %vm2283_vm7, %v6807_v4, 0.0 }
0x126e   : > { %v6809_v58 = vrot.slane %v6808_v41, 4 }
0x1270   : > { %v6810_v46 = vadd.f32 %v6809_v58, %v6808_v41 }
0x1272   : > { %v6811_v0 = vrot.slane %v6810_v46, 2 }
0x1274   : > { %v6812_v18 = vadd.f32 %v6811_v0, %v6810_v46 }
0x1276   : > { %v6813_v36 = vrot.slane %v6812_v18, 1 }
0x1278   : > { %v6814_v31 = vadd.f32 %v6813_v36, %v6812_v18 }
0x127a   : > { %14584 = vrcp.f32 %v6814_v31 }
0x1284   : > { %v14585_v51 = vpop.eup %14584 }
0x1285   : > { %v6816_v24 = vmul.f32 %v14585_v51, %v6807_v4 }
0x1287   : > { %v6817_v23 = vmax.f32 %v6816_v24, 1e-08 }
0x1289   : > { %v6818_v30 = vmin.f32 %v6817_v23, 1.0 }
0x128b   : > { %v6819_v3 = vsel %vm2283_vm7, %v6818_v30, 0.0 }
0x128c   : > { %v6820_v25 = vrot.slane %v6819_v3, 4 }
0x128e   : > { %v6821_v49 = vadd.f32 %v6820_v25, %v6819_v3 }
0x1290   : > { %v6822_v61 = vrot.slane %v6821_v49, 2 }
0x1292   : > { %v6823_v39 = vadd.f32 %v6822_v61, %v6821_v49 }
0x1294   : > { %v6824_v44 = vrot.slane %v6823_v39, 1 }
0x1296   : > { %v6825_v26 = vadd.f32 %v6824_v44, %v6823_v39 }
0x1298   : > { %14586 = vrcp.f32 %v6825_v26 }
0x12a2   : > { %v14587_v7 = vpop.eup %14586 }
0x12a3   : > { %v6827_v41 = vmul.f32 %v14587_v7, %v6818_v30 }
0x12a5   : > { %v6828_v58 = vmul.f32 %v6827_v41, %v6814_v31 }
0x12a7   : > { %vm6829_vm5 = vcmp.ne.f32.partialorder %v6828_v58, %v6828_v58 }
0x12a8   : > { %v6830_v46 = vsel %vm6829_vm5, 1.0, %v16430_v21 }
0x12a9   : > { %v6831_v0 = vsel %vm2283_vm7, %v6830_v46, -inf }
0x12aa   : > { %6832 = vmax.xlane.f32.xlu1 %v6831_v0 }
0x1337   : > { %v6833_v4 = vpop.xlane.xlu1 %6832 }
0x1338   : > { %v6834_v18 = vsel %vm2283_vm7, %v6833_v4, -inf }
0x1339   : > { %v6835_v36 = vrot.slane %v6834_v18, 4 }
0x133b   : > { %v6836_v51 = vmax.f32 %v6834_v18, %v6835_v36 }
0x133d   : > { %v6837_v24 = vrot.slane %v6836_v51, 2 }
0x133f   : > { %v6838_v23 = vmax.f32 %v6836_v51, %v6837_v24 }
0x1341   : > { %v6839_v3 = vrot.slane %v6838_v23, 1 }
0x1343   : > { %v6840_v25 = vmax.f32 %v6838_v23, %v6839_v3 }
0x1345   : > { %v15932_v26 = vmax.f32 %v15623_v29, %v6840_v25 }
0x1347   : > { %vm6842_vm6 = vcmp.gt.f32.partialorder %v15932_v26, 0.0 }
0x1348   : > { %v15936_v7 = vsel %vm6842_vm6, %v15627_v6, %v6828_v58 }
0x1349   : > { %v15939_v31 = vand.u32 4294901760, %v15936_v7 }
0x134b   : > { %v6928_v30 = vsub.f32 %v15936_v7, %v15939_v31 }
0x134d   : > { %v6929_v49 = vand.u32 4294901760, %v6928_v30 }
0x134f   : > { %v6930_v61 = vsub.f32 %v6928_v30, %v6929_v49 }
0x1351   : > { %v6931_v39 = vand.u32 4294901760, %v6930_v61 }
0x1353   : > { %12334 = vmatmul.mubr.f32.vlgmr.msra.gmra.mrb[12].mxu1 %v6931_v39 }
0x1354   : > { %13947 = vmatpush3.bf16.msra.mxu1 %v14918_v52  ;;  %12368 = vmatprep.mubr.msk.f32.mxu1 %vm14613_vm0, %v16430_v21 }
0x1355   : > { %13948 = vmatprep.subr.bf16.mxu1 %v16429_v12 }
0x1358   : > { %13950 = vmatpush3.bf16.msra.mxu1 %v14924_v19 }
0x1359   : > { %13951 = vmatprep.subr.bf16.mxu1 %v16429_v12 }
0x135c   : > { %13953 = vmatpush3.bf16.msra.mxu1 %v14932_v17 }
0x135d   : > { %13954 = vmatprep.subr.bf16.mxu1 %v16429_v12 }
0x1360   : > { %13956 = vmatpush3.bf16.msra.mxu1 %v14937_v42 }
0x1361   : > { %13957 = vmatprep.subr.bf16.mxu1 %v16429_v12 }
0x1364   : > { %13959 = vmatpush3.bf16.msra.mxu1 %v14944_v20 }
0x1365   : > { %13960 = vmatprep.subr.bf16.mxu1 %v16429_v12 }
0x1368   : > { %13962 = vmatpush3.bf16.msra.mxu1 %v14950_v5 }
0x1369   : > { %13963 = vmatprep.subr.bf16.mxu1 %v16429_v12 }
0x136c   : > { %13965 = vmatpush3.bf16.msra.mxu1 %v14955_v22 }
0x136d   : > { %13966 = vmatprep.subr.bf16.mxu1 %v16429_v12 }
0x1370   : > { %13968 = vmatpush3.bf16.msra.mxu1 %v14959_v8 }
0x1371   : > { %13969 = vmatprep.subr.bf16.mxu1 %v16429_v12 }
0x1373   : > { %12369 = vmatmul.mubr.f32.vlgmr.msra.gmra.mrb[12].mxu1 %v15939_v31 }
0x1374   : > { %13971 = vmatpush3.bf16.msra.mxu1 %v14965_v63  ;;  %12403 = vmatprep.mubr.msk.f32.mxu1 %vm14613_vm0, %v16430_v21 }
0x1375   : > { %13972 = vmatprep.subr.bf16.mxu1 %v16429_v12 }
0x1378   : > { %13974 = vmatpush3.bf16.msra.mxu1 %v14972_v62 }
0x1379   : > { %13975 = vmatprep.subr.bf16.mxu1 %v16429_v12 }
0x137c   : > { %13977 = vmatpush3.bf16.msra.mxu1 %v14980_v38 }
0x137d   : > { %13978 = vmatprep.subr.bf16.mxu1 %v16429_v12 }
0x1380   : > { %13980 = vmatpush3.bf16.msra.mxu1 %v14986_v40 }
0x1381   : > { %13981 = vmatprep.subr.bf16.mxu1 %v16429_v12 }
0x1384   : > { %13983 = vmatpush3.bf16.msra.mxu1 %v14992_v47 }
0x1385   : > { %13984 = vmatprep.subr.bf16.mxu1 %v16429_v12 }
0x1388   : > { %13986 = vmatpush3.bf16.msra.mxu1 %v14998_v50 }
0x1389   : > { %13987 = vmatprep.subr.bf16.mxu1 %v16429_v12 }
0x138c   : > { %13989 = vmatpush3.bf16.msra.mxu1 %v15004_v53 }
0x138d   : > { %13990 = vmatprep.subr.bf16.mxu1 %v16429_v12 }
0x1390   : > { %13992 = vmatpush3.bf16.msra.mxu1 %v15010_v60 }
0x1391   : > { %13993 = vmatprep.subr.bf16.mxu1 %v16429_v12 }
0x1393   : > { %12404 = vmatmul.mubr.f32.vlgmr.msra.gmra.mrb[12].mxu1 %v6928_v30 }
0x1394   : > { %13995 = vmatpush3.bf16.msra.mxu1 %v14774_v27  ;;  %12438 = vmatprep.mubr.msk.f32.mxu1 %vm14613_vm0, %v16430_v21 }
0x1395   : > { %13996 = vmatprep.subr.bf16.mxu1 %v16429_v12 }
0x1398   : > { %13998 = vmatpush3.bf16.msra.mxu1 %v14777_v28 }
0x1399   : > { %13999 = vmatprep.subr.bf16.mxu1 %v16429_v12 }
0x139c   : > { %14001 = vmatpush3.bf16.msra.mxu1 %v14786_v32 }
0x139d   : > { %14002 = vmatprep.subr.bf16.mxu1 %v16429_v12 }
0x13a0   : > { %14004 = vmatpush3.bf16.msra.mxu1 %v14794_v35 }
0x13a1   : > { %14005 = vmatprep.subr.bf16.mxu1 %v16429_v12 }
0x13a4   : > { %14007 = vmatpush3.bf16.msra.mxu1 %v14818_v48 }
0x13a5   : > { %14008 = vmatprep.subr.bf16.mxu1 %v16429_v12 }
0x13a8   : > { %14010 = vmatpush3.bf16.msra.mxu1 %v14833_v54 }
0x13a9   : > { %14011 = vmatprep.subr.bf16.mxu1 %v16429_v12 }
0x13ac   : > { %14013 = vmatpush3.bf16.msra.mxu1 %v14835_v55 }
0x13ad   : > { %14014 = vmatprep.subr.bf16.mxu1 %v16429_v12 }
0x13b0   : > { %14016 = vmatpush3.bf16.msra.mxu1 %v14837_v56 }
0x13b1   : > { %14017 = vmatprep.subr.bf16.mxu1 %v16429_v12 }
0x13b3   : > { %12439 = vmatmul.mubr.f32.vlgmr.msra.gmra.mrb[12].mxu1 %v6929_v49 }
0x13b4   : > { %14019 = vmatpush3.bf16.msra.mxu1 %v14899_v43  ;;  %12473 = vmatprep.mubr.msk.f32.mxu1 %vm14613_vm0, %v16430_v21 }
0x13b5   : > { %14020 = vmatprep.subr.bf16.mxu1 %v16429_v12 }
0x13b8   : > { %14022 = vmatpush3.bf16.msra.mxu1 %v14901_v9 }
0x13b9   : > { %14023 = vmatprep.subr.bf16.mxu1 %v16429_v12 }
0x13bc   : > { %14025 = vmatpush3.bf16.msra.mxu1 %v14903_v10 }
0x13bd   : > { %14026 = vmatprep.subr.bf16.mxu1 %v16429_v12 }
0x13c0   : > { %14028 = vmatpush3.bf16.msra.mxu1 %v14905_v11 }
0x13c1   : > { %14029 = vmatprep.subr.bf16.mxu1 %v16429_v12 }
0x13c4   : > { %14031 = vmatpush3.bf16.msra.mxu1 %v14908_v13 }
0x13c5   : > { %14032 = vmatprep.subr.bf16.mxu1 %v16429_v12 }
0x13c8   : > { %14034 = vmatpush3.bf16.msra.mxu1 %v14910_v14 }
0x13c9   : > { %14035 = vmatprep.subr.bf16.mxu1 %v16429_v12 }
0x13cc   : > { %14037 = vmatpush3.bf16.msra.mxu1 %v14912_v15 }
0x13cd   : > { %14038 = vmatprep.subr.bf16.mxu1 %v16429_v12 }
0x13d0   : > { %14040 = vmatpush3.bf16.msra.mxu1 %v14914_v16 }
0x13d1   : > { %14041 = vmatprep.subr.bf16.mxu1 %v16429_v12 }
0x13d3   : > { %12474 = vmatmul.mubr.f32.vlgmr.msra.gmra.mrb[12].mxu1 %v15939_v31 }
0x13d4   : > { %14043 = vmatpush3.bf16.msra.mxu1 %v14774_v27  ;;  %12508 = vmatprep.mubr.msk.f32.mxu1 %vm14613_vm0, %v16430_v21 }
0x13d5   : > { %14044 = vmatprep.subr.bf16.mxu1 %v16429_v12 }
0x13d8   : > { %14046 = vmatpush3.bf16.msra.mxu1 %v14777_v28 }
0x13d9   : > { %14047 = vmatprep.subr.bf16.mxu1 %v16429_v12 }
0x13dc   : > { %14049 = vmatpush3.bf16.msra.mxu1 %v14786_v32 }
0x13dd   : > { %14050 = vmatprep.subr.bf16.mxu1 %v16429_v12 }
0x13e0   : > { %14052 = vmatpush3.bf16.msra.mxu1 %v14794_v35 }
0x13e1   : > { %14053 = vmatprep.subr.bf16.mxu1 %v16429_v12 }
0x13e4   : > { %14055 = vmatpush3.bf16.msra.mxu1 %v14818_v48 }
0x13e5   : > { %14056 = vmatprep.subr.bf16.mxu1 %v16429_v12 }
0x13e8   : > { %14058 = vmatpush3.bf16.msra.mxu1 %v14833_v54 }
0x13e9   : > { %14059 = vmatprep.subr.bf16.mxu1 %v16429_v12 }
0x13ec   : > { %14061 = vmatpush3.bf16.msra.mxu1 %v14835_v55 }
0x13ed   : > { %14062 = vmatprep.subr.bf16.mxu1 %v16429_v12 }
0x13f0   : > { %14064 = vmatpush3.bf16.msra.mxu1 %v14837_v56 }
0x13f1   : > { %14209 = vmatprep.subr.bf16.mxu1 %v16429_v12 }
0x13f3   : > { %12509 = vmatmul.mubr.f32.vlgmr.msra.gmra.mrb[12].mxu1 %v15939_v31 }
0x13f4   : > { %14211 = vmatpush3.bf16.msra.mxu1 %v15262_v34  ;;  %12755 = vmatprep.mubr.msk.f32.mxu1 %vm14613_vm0, %v16430_v21 }
0x13f5   : > { %14212 = vmatprep.subr.bf16.mxu1 %v16429_v12 }
0x14c6   : > { %v7483_v29 = vpop.f32.mrb[12].mxu1 }
0x14c7   : > { %v7487_v6 = vsub.f32 %v7483_v29, %v14657_v1  ;;  %v7494_v44 = vmax.f32 %v7483_v29, 1e-08  ;;  %v12510_v41 = vpop.f32.mrb[13].mxu1 }
0x14c9   : > { %v7488_v58 = vand.u32 2147483647, %v7487_v6  ;;  %14588 = vrcp.f32 %v7494_v44 }
0x14cb   : > { %v7489_v46 = vsub.f32 %v7488_v58, %v14662_v2 }
0x14cd   : > { %v7490_v0 = vsel %vm699_vm1, %v7489_v46, -inf }
0x14ce   : > { %7491 = vmax.xlane.f32.xlu0 %v7490_v0 }
0x14d3   : > { %v14589_v4 = vpop.eup %14588 }
0x14d4   : > { %v7496_v18 = vmul.f32 %v14589_v4, %v14657_v1 }
0x14d6   : > { %7498 = vrot.lane.b32.xlu1 %v7496_v18, %s14615_s3 }
0x1548   : > { %v7499_v36 = vpop.permute.xlu1 %7498 }
0x1549   : > { %v7500_v51 = vsel %vm710_vm2, %v7499_v36, 0  ;;  %vm9752_vm2 = vcmask 189568  }
0x154a   : > { %v7568_v24 = vand.u32 4294901760, %v7500_v51 }
0x154c   : > { %v7569_v23 = vsub.f32 %v7500_v51, %v7568_v24 }
0x154e   : > { %v7570_v3 = vand.u32 4294901760, %v7569_v23 }
0x1550   : > { %v7571_v25 = vsub.f32 %v7569_v23, %v7570_v3 }
0x1552   : > { %v7572_v31 = vand.u32 4294901760, %v7571_v25 }
0x1554   : > { %12514 = vmatmul.mubr.f32.vlgmr.msra.gmra.mrb[14].mxu0 %v7572_v31  ;;  %v16442_v31 = vld [vmem:[#allocation21_spill] sm:$0xff] }
0x1555   : > { %12517 = vmatpush3.msra.mxu0 %v15112_v57  ;;  %12518 = vmatprep.mubr.msk.f32.mxu0 %vm14613_vm0, %v16430_v21 }
0x1556   : > { %12521 = vmatprep.subr.mxu0 %v16430_v21 }
0x155c   : > { %12519 = vmatmul.mubr.f32.vlgmr.msra.gmra.mrb[14].mxu0 %v7568_v24 }
0x155d   : > { %12522 = vmatpush3.msra.mxu0 %v15104_v37  ;;  %12523 = vmatprep.mubr.msk.f32.mxu0 %vm14613_vm0, %v16430_v21 }
0x155e   : > { %12526 = vmatprep.subr.mxu0 %v16430_v21 }
0x1564   : > { %12524 = vmatmul.mubr.f32.vlgmr.msra.gmra.mrb[14].mxu0 %v7569_v23 }
0x1565   : > { %12527 = vmatpush3.msra.mxu0 %v15096_v33  ;;  %12528 = vmatprep.mubr.msk.f32.mxu0 %vm14613_vm0, %v16430_v21 }
0x1566   : > { %12531 = vmatprep.subr.mxu0 %v16430_v21 }
0x156c   : > { %12529 = vmatmul.mubr.f32.vlgmr.msra.gmra.mrb[14].mxu0 %v7570_v3 }
0x156d   : > { %12532 = vmatpush3.msra.mxu0 %v15108_v45  ;;  %12533 = vmatprep.mubr.msk.f32.mxu0 %vm14613_vm0, %v16430_v21 }
0x156e   : > { %12536 = vmatprep.subr.mxu0 %v16430_v21 }
0x1574   : > { %12534 = vmatmul.mubr.f32.vlgmr.msra.gmra.mrb[14].mxu0 %v7568_v24 }
0x1575   : > { %12537 = vmatpush3.msra.mxu0 %v15096_v33  ;;  %12538 = vmatprep.mubr.msk.f32.mxu0 %vm14613_vm0, %v16430_v21 }
0x1576   : > { %14065 = vmatprep.subr.bf16.mxu0 %v16429_v12 }
0x157c   : > { %12539 = vmatmul.mubr.f32.vlgmr.msra.gmra.mrb[14].mxu0 %v7568_v24 }
0x157d   : > { %14067 = vmatpush3.bf16.msra.mxu0 %v14774_v27  ;;  %12573 = vmatprep.mubr.msk.f32.mxu0 %vm14613_vm0, %v16430_v21 }
0x157e   : > { %14068 = vmatprep.subr.bf16.mxu0 %v16429_v12 }
0x1581   : > { %14070 = vmatpush3.bf16.msra.mxu0 %v14777_v28 }
0x1582   : > { %14071 = vmatprep.subr.bf16.mxu0 %v16429_v12 }
0x1585   : > { %14073 = vmatpush3.bf16.msra.mxu0 %v14786_v32 }
0x1586   : > { %14074 = vmatprep.subr.bf16.mxu0 %v16429_v12 }
0x1589   : > { %14076 = vmatpush3.bf16.msra.mxu0 %v14794_v35 }
0x158a   : > { %14077 = vmatprep.subr.bf16.mxu0 %v16429_v12 }
0x158d   : > { %14079 = vmatpush3.bf16.msra.mxu0 %v14818_v48 }
0x158e   : > { %14080 = vmatprep.subr.bf16.mxu0 %v16429_v12 }
0x1591   : > { %14082 = vmatpush3.bf16.msra.mxu0 %v14833_v54 }
0x1592   : > { %14083 = vmatprep.subr.bf16.mxu0 %v16429_v12 }
0x1595   : > { %14085 = vmatpush3.bf16.msra.mxu0 %v14835_v55 }
0x1596   : > { %14086 = vmatprep.subr.bf16.mxu0 %v16429_v12 }
0x1599   : > { %14088 = vmatpush3.bf16.msra.mxu0 %v14837_v56 }
0x159a   : > { %14089 = vmatprep.subr.bf16.mxu0 %v16429_v12 }
0x164f   : > { %v7944_v33 = vpop.f32.mrb[14].mxu0 }
0x1650   : > { %v16085_v37 = vmul.f32 %v7944_v33, %v15936_v7  ;;  %v12540_v45 = vpop.f32.mrb[15].mxu0 }
0x1652   : > { %v16088_v57 = vand.u32 4294901760, %v16085_v37 }
0x1654   : > { %v8031_v30 = vsub.f32 %v16085_v37, %v16088_v57 }
0x1656   : > { %v8032_v49 = vand.u32 4294901760, %v8031_v30 }
0x1658   : > { %v8033_v61 = vsub.f32 %v8031_v30, %v8032_v49 }
0x165a   : > { %v8034_v39 = vand.u32 4294901760, %v8033_v61 }
0x165c   : > { %12574 = vmatmul.mubr.f32.vlgmr.msra.gmra.mrb[16].mxu0 %v8034_v39 }
0x165d   : > { %14091 = vmatpush3.bf16.msra.mxu0 %v14918_v52  ;;  %12608 = vmatprep.mubr.msk.f32.mxu0 %vm14613_vm0, %v16430_v21 }
0x165e   : > { %14092 = vmatprep.subr.bf16.mxu0 %v16429_v12 }
0x1661   : > { %14094 = vmatpush3.bf16.msra.mxu0 %v14924_v19 }
0x1662   : > { %14095 = vmatprep.subr.bf16.mxu0 %v16429_v12 }
0x1665   : > { %14097 = vmatpush3.bf16.msra.mxu0 %v14932_v17 }
0x1666   : > { %14098 = vmatprep.subr.bf16.mxu0 %v16429_v12 }
0x1669   : > { %14100 = vmatpush3.bf16.msra.mxu0 %v14937_v42 }
0x166a   : > { %14101 = vmatprep.subr.bf16.mxu0 %v16429_v12 }
0x166d   : > { %14103 = vmatpush3.bf16.msra.mxu0 %v14944_v20 }
0x166e   : > { %14104 = vmatprep.subr.bf16.mxu0 %v16429_v12 }
0x1671   : > { %14106 = vmatpush3.bf16.msra.mxu0 %v14950_v5 }
0x1672   : > { %14107 = vmatprep.subr.bf16.mxu0 %v16429_v12 }
0x1675   : > { %14109 = vmatpush3.bf16.msra.mxu0 %v14955_v22 }
0x1676   : > { %14110 = vmatprep.subr.bf16.mxu0 %v16429_v12 }
0x1679   : > { %14112 = vmatpush3.bf16.msra.mxu0 %v14959_v8 }
0x167a   : > { %14113 = vmatprep.subr.bf16.mxu0 %v16429_v12 }
0x167c   : > { %12609 = vmatmul.mubr.f32.vlgmr.msra.gmra.mrb[16].mxu0 %v16088_v57 }
0x167d   : > { %14115 = vmatpush3.bf16.msra.mxu0 %v14965_v63  ;;  %12643 = vmatprep.mubr.msk.f32.mxu0 %vm14613_vm0, %v16430_v21 }
0x167e   : > { %14116 = vmatprep.subr.bf16.mxu0 %v16429_v12 }
0x1681   : > { %14118 = vmatpush3.bf16.msra.mxu0 %v14972_v62 }
0x1682   : > { %14119 = vmatprep.subr.bf16.mxu0 %v16429_v12 }
0x1685   : > { %14121 = vmatpush3.bf16.msra.mxu0 %v14980_v38 }
0x1686   : > { %14122 = vmatprep.subr.bf16.mxu0 %v16429_v12 }
0x1689   : > { %14124 = vmatpush3.bf16.msra.mxu0 %v14986_v40 }
0x168a   : > { %14125 = vmatprep.subr.bf16.mxu0 %v16429_v12 }
0x168d   : > { %14127 = vmatpush3.bf16.msra.mxu0 %v14992_v47 }
0x168e   : > { %14128 = vmatprep.subr.bf16.mxu0 %v16429_v12 }
0x1691   : > { %14130 = vmatpush3.bf16.msra.mxu0 %v14998_v50 }
0x1692   : > { %14131 = vmatprep.subr.bf16.mxu0 %v16429_v12 }
0x1695   : > { %14133 = vmatpush3.bf16.msra.mxu0 %v15004_v53 }
0x1696   : > { %14134 = vmatprep.subr.bf16.mxu0 %v16429_v12 }
0x1699   : > { %14136 = vmatpush3.bf16.msra.mxu0 %v15010_v60 }
0x169a   : > { %14137 = vmatprep.subr.bf16.mxu0 %v16429_v12 }
0x169c   : > { %12644 = vmatmul.mubr.f32.vlgmr.msra.gmra.mrb[16].mxu0 %v8031_v30 }
0x169d   : > { %14139 = vmatpush3.bf16.msra.mxu0 %v14774_v27  ;;  %12678 = vmatprep.mubr.msk.f32.mxu0 %vm14613_vm0, %v16430_v21 }
0x169e   : > { %14140 = vmatprep.subr.bf16.mxu0 %v16429_v12 }
0x16a1   : > { %14142 = vmatpush3.bf16.msra.mxu0 %v14777_v28 }
0x16a2   : > { %14143 = vmatprep.subr.bf16.mxu0 %v16429_v12 }
0x16a5   : > { %14145 = vmatpush3.bf16.msra.mxu0 %v14786_v32 }
0x16a6   : > { %14146 = vmatprep.subr.bf16.mxu0 %v16429_v12 }
0x16a9   : > { %14148 = vmatpush3.bf16.msra.mxu0 %v14794_v35 }
0x16aa   : > { %14149 = vmatprep.subr.bf16.mxu0 %v16429_v12 }
0x16ad   : > { %14151 = vmatpush3.bf16.msra.mxu0 %v14818_v48 }
0x16ae   : > { %14152 = vmatprep.subr.bf16.mxu0 %v16429_v12 }
0x16b1   : > { %14154 = vmatpush3.bf16.msra.mxu0 %v14833_v54 }
0x16b2   : > { %14155 = vmatprep.subr.bf16.mxu0 %v16429_v12 }
0x16b5   : > { %14157 = vmatpush3.bf16.msra.mxu0 %v14835_v55 }
0x16b6   : > { %14158 = vmatprep.subr.bf16.mxu0 %v16429_v12 }
0x16b9   : > { %14160 = vmatpush3.bf16.msra.mxu0 %v14837_v56 }
0x16ba   : > { %14161 = vmatprep.subr.bf16.mxu0 %v16429_v12 }
0x16bc   : > { %12679 = vmatmul.mubr.f32.vlgmr.msra.gmra.mrb[16].mxu0 %v8032_v49 }
0x16bd   : > { %14163 = vmatpush3.bf16.msra.mxu0 %v14899_v43  ;;  %12713 = vmatprep.mubr.msk.f32.mxu0 %vm14613_vm0, %v16430_v21 }
0x16be   : > { %14164 = vmatprep.subr.bf16.mxu0 %v16429_v12 }
0x16c1   : > { %14166 = vmatpush3.bf16.msra.mxu0 %v14901_v9 }
0x16c2   : > { %14167 = vmatprep.subr.bf16.mxu0 %v16429_v12 }
0x16c5   : > { %14169 = vmatpush3.bf16.msra.mxu0 %v14903_v10 }
0x16c6   : > { %14170 = vmatprep.subr.bf16.mxu0 %v16429_v12 }
0x16c9   : > { %14172 = vmatpush3.bf16.msra.mxu0 %v14905_v11 }
0x16ca   : > { %14173 = vmatprep.subr.bf16.mxu0 %v16429_v12 }
0x16cd   : > { %14175 = vmatpush3.bf16.msra.mxu0 %v14908_v13 }
0x16ce   : > { %14176 = vmatprep.subr.bf16.mxu0 %v16429_v12 }
0x16d1   : > { %14178 = vmatpush3.bf16.msra.mxu0 %v14910_v14 }
0x16d2   : > { %14179 = vmatprep.subr.bf16.mxu0 %v16429_v12 }
0x16d5   : > { %14181 = vmatpush3.bf16.msra.mxu0 %v14912_v15 }
0x16d6   : > { %14182 = vmatprep.subr.bf16.mxu0 %v16429_v12 }
0x16d9   : > { %14184 = vmatpush3.bf16.msra.mxu0 %v14914_v16 }
0x16da   : > { %14185 = vmatprep.subr.bf16.mxu0 %v16429_v12 }
0x16dc   : > { %12714 = vmatmul.mubr.f32.vlgmr.msra.gmra.mrb[16].mxu0 %v16088_v57 }
0x16dd   : > { %14187 = vmatpush3.bf16.msra.mxu0 %v14774_v27  ;;  %12748 = vmatprep.mubr.msk.f32.mxu0 %vm14613_vm0, %v16430_v21 }
0x16de   : > { %14188 = vmatprep.subr.bf16.mxu0 %v16429_v12 }
0x16e1   : > { %14190 = vmatpush3.bf16.msra.mxu0 %v14777_v28 }
0x16e2   : > { %14191 = vmatprep.subr.bf16.mxu0 %v16429_v12 }
0x16e5   : > { %14193 = vmatpush3.bf16.msra.mxu0 %v14786_v32 }
0x16e6   : > { %14194 = vmatprep.subr.bf16.mxu0 %v16429_v12 }
0x16e9   : > { %14196 = vmatpush3.bf16.msra.mxu0 %v14794_v35 }
0x16ea   : > { %14197 = vmatprep.subr.bf16.mxu0 %v16429_v12 }
0x16ed   : > { %14199 = vmatpush3.bf16.msra.mxu0 %v14818_v48 }
0x16ee   : > { %14200 = vmatprep.subr.bf16.mxu0 %v16429_v12 }
0x16f1   : > { %14202 = vmatpush3.bf16.msra.mxu0 %v14833_v54 }
0x16f2   : > { %14203 = vmatprep.subr.bf16.mxu0 %v16429_v12 }
0x16f5   : > { %14205 = vmatpush3.bf16.msra.mxu0 %v14835_v55 }
0x16f6   : > { %14206 = vmatprep.subr.bf16.mxu0 %v16429_v12 }
0x16f9   : > { %14208 = vmatpush3.bf16.msra.mxu0 %v14837_v56 }
0x16fc   : > { %12749 = vmatmul.mubr.f32.vlgmr.msra.gmra.mrb[16].mxu0 %v16088_v57 }
0x17cf   : > { %v8586_v29 = vpop.f32.mrb[16].mxu0 }
0x17d0   : > { %v8590_v6 = vsub.f32 %v8586_v29, %v14657_v1  ;;  %v8597_v44 = vmax.f32 %v8586_v29, 1e-08  ;;  %v12750_v41 = vpop.f32.mrb[17].mxu0 }
0x17d2   : > { %v8591_v58 = vand.u32 2147483647, %v8590_v6  ;;  %14590 = vrcp.f32 %v8597_v44 }
0x17d4   : > { %v8592_v46 = vsub.f32 %v8591_v58, %v14662_v2 }
0x17d6   : > { %v8593_v0 = vsel %vm1804_vm3, %v8592_v46, -inf }
0x17d7   : > { %8594 = vmax.xlane.f32.xlu1 %v8593_v0 }
0x17dc   : > { %v14591_v4 = vpop.eup %14590 }
0x17dd   : > { %v8599_v18 = vmul.f32 %v14591_v4, %v14657_v1 }
0x17df   : > { %v8601_v36 = vsel %vm1812_vm4, %v8599_v18, 0 }
0x17e0   : > { %v8670_v51 = vand.u32 4294901760, %v8601_v36 }
0x17e2   : > { %v8671_v24 = vsub.f32 %v8601_v36, %v8670_v51 }
0x17e4   : > { %v8672_v23 = vand.u32 4294901760, %v8671_v24 }
0x17e6   : > { %v8673_v3 = vsub.f32 %v8671_v24, %v8672_v23 }
0x17e8   : > { %v8674_v25 = vand.u32 4294901760, %v8673_v3 }
0x17ea   : > { %12756 = vmatmul.mubr.f32.vlgmr.msra.gmra.mrb[14].mxu1 %v8674_v25 }
0x17eb   : > { %14214 = vmatpush3.bf16.msra.mxu1 %v15268_v59  ;;  %12762 = vmatprep.mubr.msk.f32.mxu1 %vm14613_vm0, %v16430_v21  ;;  %v16443_v59 = vld [vmem:[#allocation22_spill] sm:$0xff] }
0x17ec   : > { %14215 = vmatprep.subr.bf16.mxu1 %v16429_v12 }
0x17f2   : > { %12763 = vmatmul.mubr.f32.vlgmr.msra.gmra.mrb[14].mxu1 %v8670_v51 }
0x17f3   : > { %14217 = vmatpush3.bf16.msra.mxu1 %v16442_v31  ;;  %12769 = vmatprep.mubr.msk.f32.mxu1 %vm14613_vm0, %v16430_v21 }
0x17f4   : > { %14218 = vmatprep.subr.bf16.mxu1 %v16429_v12 }
0x17fa   : > { %12770 = vmatmul.mubr.f32.vlgmr.msra.gmra.mrb[14].mxu1 %v8671_v24 }
0x17fb   : > { %14220 = vmatpush3.bf16.msra.mxu1 %v15262_v34  ;;  %12776 = vmatprep.mubr.msk.f32.mxu1 %vm14613_vm0, %v16430_v21 }
0x17fc   : > { %14221 = vmatprep.subr.bf16.mxu1 %v16429_v12 }
0x1802   : > { %12777 = vmatmul.mubr.f32.vlgmr.msra.gmra.mrb[14].mxu1 %v8672_v23 }
0x1803   : > { %14223 = vmatpush3.bf16.msra.mxu1 %v16443_v59  ;;  %12783 = vmatprep.mubr.msk.f32.mxu1 %vm14613_vm0, %v16430_v21 }
0x1804   : > { %14224 = vmatprep.subr.bf16.mxu1 %v16429_v12 }
0x180a   : > { %12784 = vmatmul.mubr.f32.vlgmr.msra.gmra.mrb[14].mxu1 %v8670_v51 }
0x180b   : > { %14226 = vmatpush3.bf16.msra.mxu1 %v15262_v34  ;;  %12790 = vmatprep.mubr.msk.f32.mxu1 %vm14613_vm0, %v16430_v21 }
0x180c   : > { %14227 = vmatprep.subr.bf16.mxu1 %v16429_v12 }
0x1812   : > { %12791 = vmatmul.mubr.f32.vlgmr.msra.gmra.mrb[14].mxu1 %v8670_v51 }
0x1813   : > { %14229 = vmatpush3.bf16.msra.mxu1 %v14774_v27  ;;  %12825 = vmatprep.mubr.msk.f32.mxu1 %vm14613_vm0, %v16430_v21 }
0x1814   : > { %14230 = vmatprep.subr.bf16.mxu1 %v16429_v12 }
0x1817   : > { %14232 = vmatpush3.bf16.msra.mxu1 %v14777_v28 }
0x1818   : > { %14233 = vmatprep.subr.bf16.mxu1 %v16429_v12 }
0x181b   : > { %14235 = vmatpush3.bf16.msra.mxu1 %v14786_v32 }
0x181c   : > { %14236 = vmatprep.subr.bf16.mxu1 %v16429_v12 }
0x181f   : > { %14238 = vmatpush3.bf16.msra.mxu1 %v14794_v35 }
0x1820   : > { %14239 = vmatprep.subr.bf16.mxu1 %v16429_v12 }
0x1823   : > { %14241 = vmatpush3.bf16.msra.mxu1 %v14818_v48 }
0x1824   : > { %14242 = vmatprep.subr.bf16.mxu1 %v16429_v12 }
0x1827   : > { %14244 = vmatpush3.bf16.msra.mxu1 %v14833_v54 }
0x1828   : > { %14245 = vmatprep.subr.bf16.mxu1 %v16429_v12 }
0x182b   : > { %14247 = vmatpush3.bf16.msra.mxu1 %v14835_v55 }
0x182c   : > { %14248 = vmatprep.subr.bf16.mxu1 %v16429_v12 }
0x182f   : > { %14250 = vmatpush3.bf16.msra.mxu1 %v14837_v56 }
0x1830   : > { %14251 = vmatprep.subr.bf16.mxu1 %v16429_v12 }
0x18e5   : > { %v9058_v34 = vpop.f32.mrb[14].mxu1 }
0x18e6   : > { %v16228_v33 = vmul.f32 %v9058_v34, %v16085_v37  ;;  %v12792_v45 = vpop.f32.mrb[15].mxu1 }
0x18e8   : > { %v16231_v57 = vand.u32 4294901760, %v16228_v33 }
0x18ea   : > { %v9190_v30 = vsub.f32 %v16228_v33, %v16231_v57 }
0x18ec   : > { %v9191_v49 = vand.u32 4294901760, %v9190_v30 }
0x18ee   : > { %v9192_v61 = vsub.f32 %v9190_v30, %v9191_v49 }
0x18f0   : > { %v9193_v39 = vand.u32 4294901760, %v9192_v61 }
0x18f2   : > { %12826 = vmatmul.mubr.f32.vlgmr.msra.gmra.mrb[16].mxu1 %v9193_v39 }
0x18f3   : > { %14253 = vmatpush3.bf16.msra.mxu1 %v14918_v52  ;;  %12860 = vmatprep.mubr.msk.f32.mxu1 %vm14613_vm0, %v16430_v21 }
0x18f4   : > { %14254 = vmatprep.subr.bf16.mxu1 %v16429_v12 }
0x18f7   : > { %14256 = vmatpush3.bf16.msra.mxu1 %v14924_v19 }
0x18f8   : > { %14257 = vmatprep.subr.bf16.mxu1 %v16429_v12 }
0x18fb   : > { %14259 = vmatpush3.bf16.msra.mxu1 %v14932_v17 }
0x18fc   : > { %14260 = vmatprep.subr.bf16.mxu1 %v16429_v12 }
0x18ff   : > { %14262 = vmatpush3.bf16.msra.mxu1 %v14937_v42 }
0x1900   : > { %14263 = vmatprep.subr.bf16.mxu1 %v16429_v12 }
0x1903   : > { %14265 = vmatpush3.bf16.msra.mxu1 %v14944_v20 }
0x1904   : > { %14266 = vmatprep.subr.bf16.mxu1 %v16429_v12 }
0x1907   : > { %14268 = vmatpush3.bf16.msra.mxu1 %v14950_v5 }
0x1908   : > { %14269 = vmatprep.subr.bf16.mxu1 %v16429_v12 }
0x190b   : > { %14271 = vmatpush3.bf16.msra.mxu1 %v14955_v22 }
0x190c   : > { %14272 = vmatprep.subr.bf16.mxu1 %v16429_v12 }
0x190f   : > { %14274 = vmatpush3.bf16.msra.mxu1 %v14959_v8 }
0x1910   : > { %14275 = vmatprep.subr.bf16.mxu1 %v16429_v12 }
0x1912   : > { %12861 = vmatmul.mubr.f32.vlgmr.msra.gmra.mrb[16].mxu1 %v16231_v57 }
0x1913   : > { %14277 = vmatpush3.bf16.msra.mxu1 %v14965_v63  ;;  %12895 = vmatprep.mubr.msk.f32.mxu1 %vm14613_vm0, %v16430_v21 }
0x1914   : > { %14278 = vmatprep.subr.bf16.mxu1 %v16429_v12 }
0x1917   : > { %14280 = vmatpush3.bf16.msra.mxu1 %v14972_v62 }
0x1918   : > { %14281 = vmatprep.subr.bf16.mxu1 %v16429_v12 }
0x191b   : > { %14283 = vmatpush3.bf16.msra.mxu1 %v14980_v38 }
0x191c   : > { %14284 = vmatprep.subr.bf16.mxu1 %v16429_v12 }
0x191f   : > { %14286 = vmatpush3.bf16.msra.mxu1 %v14986_v40 }
0x1920   : > { %14287 = vmatprep.subr.bf16.mxu1 %v16429_v12 }
0x1923   : > { %14289 = vmatpush3.bf16.msra.mxu1 %v14992_v47 }
0x1924   : > { %14290 = vmatprep.subr.bf16.mxu1 %v16429_v12 }
0x1927   : > { %14292 = vmatpush3.bf16.msra.mxu1 %v14998_v50 }
0x1928   : > { %14293 = vmatprep.subr.bf16.mxu1 %v16429_v12 }
0x192b   : > { %14295 = vmatpush3.bf16.msra.mxu1 %v15004_v53 }
0x192c   : > { %14296 = vmatprep.subr.bf16.mxu1 %v16429_v12 }
0x192f   : > { %14298 = vmatpush3.bf16.msra.mxu1 %v15010_v60 }
0x1930   : > { %14299 = vmatprep.subr.bf16.mxu1 %v16429_v12 }
0x1932   : > { %12896 = vmatmul.mubr.f32.vlgmr.msra.gmra.mrb[16].mxu1 %v9190_v30 }
0x1933   : > { %14301 = vmatpush3.bf16.msra.mxu1 %v14774_v27  ;;  %12930 = vmatprep.mubr.msk.f32.mxu1 %vm14613_vm0, %v16430_v21 }
0x1934   : > { %14302 = vmatprep.subr.bf16.mxu1 %v16429_v12 }
0x1937   : > { %14304 = vmatpush3.bf16.msra.mxu1 %v14777_v28 }
0x1938   : > { %14305 = vmatprep.subr.bf16.mxu1 %v16429_v12 }
0x193b   : > { %14307 = vmatpush3.bf16.msra.mxu1 %v14786_v32 }
0x193c   : > { %14308 = vmatprep.subr.bf16.mxu1 %v16429_v12 }
0x193f   : > { %14310 = vmatpush3.bf16.msra.mxu1 %v14794_v35 }
0x1940   : > { %14311 = vmatprep.subr.bf16.mxu1 %v16429_v12 }
0x1943   : > { %14313 = vmatpush3.bf16.msra.mxu1 %v14818_v48 }
0x1944   : > { %14314 = vmatprep.subr.bf16.mxu1 %v16429_v12 }
0x1947   : > { %14316 = vmatpush3.bf16.msra.mxu1 %v14833_v54 }
0x1948   : > { %14317 = vmatprep.subr.bf16.mxu1 %v16429_v12 }
0x194b   : > { %14319 = vmatpush3.bf16.msra.mxu1 %v14835_v55 }
0x194c   : > { %14320 = vmatprep.subr.bf16.mxu1 %v16429_v12 }
0x194f   : > { %14322 = vmatpush3.bf16.msra.mxu1 %v14837_v56 }
0x1950   : > { %14323 = vmatprep.subr.bf16.mxu1 %v16429_v12 }
0x1952   : > { %12931 = vmatmul.mubr.f32.vlgmr.msra.gmra.mrb[16].mxu1 %v9191_v49 }
0x1953   : > { %14325 = vmatpush3.bf16.msra.mxu1 %v14899_v43  ;;  %12965 = vmatprep.mubr.msk.f32.mxu1 %vm14613_vm0, %v16430_v21 }
0x1954   : > { %14326 = vmatprep.subr.bf16.mxu1 %v16429_v12 }
0x1957   : > { %14328 = vmatpush3.bf16.msra.mxu1 %v14901_v9  ;;  %v8595_v9 = vpop.xlane.xlu1 %8594 }
0x1958   : > { %14329 = vmatprep.subr.bf16.mxu1 %v16429_v12 }
0x195b   : > { %14331 = vmatpush3.bf16.msra.mxu1 %v14903_v10  ;;  %v7492_v10 = vpop.xlane.xlu0 %7491 }
0x195c   : > { %14332 = vmatprep.subr.bf16.mxu1 %v16429_v12  ;;  %vm7493_vm1 = vcmp.le.f32.partialorder %v7492_v10, 0.0 }
0x195f   : > { %14334 = vmatpush3.bf16.msra.mxu1 %v14905_v11 }
0x1960   : > { %14335 = vmatprep.subr.bf16.mxu1 %v16429_v12 }
0x1963   : > { %14337 = vmatpush3.bf16.msra.mxu1 %v14908_v13 }
0x1964   : > { %14338 = vmatprep.subr.bf16.mxu1 %v16429_v12 }
0x1967   : > { %14340 = vmatpush3.bf16.msra.mxu1 %v14910_v14 }
0x1968   : > { %14341 = vmatprep.subr.bf16.mxu1 %v16429_v12 }
0x196b   : > { %14343 = vmatpush3.bf16.msra.mxu1 %v14912_v15 }
0x196c   : > { %14344 = vmatprep.subr.bf16.mxu1 %v16429_v12 }
0x196f   : > { %14346 = vmatpush3.bf16.msra.mxu1 %v14914_v16 }
0x1970   : > { %14347 = vmatprep.subr.bf16.mxu1 %v16429_v12 }
0x1972   : > { %12966 = vmatmul.mubr.f32.vlgmr.msra.gmra.mrb[16].mxu1 %v16231_v57 }
0x1973   : > { %14349 = vmatpush3.bf16.msra.mxu1 %v14774_v27  ;;  %13000 = vmatprep.mubr.msk.f32.mxu1 %vm14613_vm0, %v16430_v21  ;;  %vm8596_vm0 = vcmp.le.f32.partialorder %v8595_v9, 0.0 }
0x1974   : > { %14350 = vmatprep.subr.bf16.mxu1 %v16429_v12  ;;  %v9065_v11 = vsel %vm8596_vm0, %v16085_v37, %v16228_v33 }
0x1975   : > { %v9068_v13 = vsel %vm7493_vm1, %v15936_v7, %v9065_v11 }
0x1976   : > { %v9069_v14 = vmax.f32 %v9068_v13, 1e-08 }
0x1977   : > { %14352 = vmatpush3.bf16.msra.mxu1 %v14777_v28 }
0x1978   : > { %14353 = vmatprep.subr.bf16.mxu1 %v16429_v12  ;;  %v9070_v15 = vsel %vm2283_vm7, %v9069_v14, 0.0 }
0x1979   : > { %v9071_v16 = vrot.slane %v9070_v15, 4 }
0x197b   : > { %14355 = vmatpush3.bf16.msra.mxu1 %v14786_v32  ;;  %v9072_v19 = vadd.f32 %v9071_v16, %v9070_v15 }
0x197c   : > { %14356 = vmatprep.subr.bf16.mxu1 %v16429_v12 }
0x197d   : > { %v9073_v27 = vrot.slane %v9072_v19, 2 }
0x197f   : > { %14358 = vmatpush3.bf16.msra.mxu1 %v14794_v35 }
0x1980   : > { %14359 = vmatprep.subr.bf16.mxu1 %v16429_v12 }
0x1983   : > { %14361 = vmatpush3.bf16.msra.mxu1 %v14818_v48 }
0x1984   : > { %14362 = vmatprep.subr.bf16.mxu1 %v16429_v12 }
0x1987   : > { %14364 = vmatpush3.bf16.msra.mxu1 %v14833_v54 }
0x1988   : > { %14365 = vmatprep.subr.bf16.mxu1 %v16429_v12 }
0x198b   : > { %14367 = vmatpush3.bf16.msra.mxu1 %v14835_v55 }
0x198c   : > { %14368 = vmatprep.subr.bf16.mxu1 %v16429_v12  ;;  %v9074_v12 = vadd.f32 %v9073_v27, %v9072_v19 }
0x198e   : > { %v9075_v28 = vrot.slane %v9074_v12, 1 }
0x198f   : > { %14370 = vmatpush3.bf16.msra.mxu1 %v14837_v56 }
0x1990   : > { %v9076_v32 = vadd.f32 %v9075_v28, %v9074_v12 }
0x1992   : > { %13001 = vmatmul.mubr.f32.vlgmr.msra.gmra.mrb[16].mxu1 %v16231_v57  ;;  %14592 = vrcp.f32 %v9076_v32 }
0x199c   : > { %v14593_v35 = vpop.eup %14592 }
0x199d   : > { %v9078_v48 = vmul.f32 %v14593_v35, %v9069_v14 }
0x199f   : > { %v9079_v54 = vmax.f32 %v9078_v48, 1e-08 }
0x19a1   : > { %v9080_v55 = vmin.f32 %v9079_v54, 1.0 }
0x19a3   : > { %v9081_v56 = vsel %vm2283_vm7, %v9080_v55, 0.0 }
0x19a4   : > { %v9082_v43 = vrot.slane %v9081_v56, 4 }
0x19a6   : > { %v9083_v52 = vadd.f32 %v9082_v43, %v9081_v56 }
0x19a8   : > { %v9084_v17 = vrot.slane %v9083_v52, 2 }
0x19aa   : > { %v9085_v42 = vadd.f32 %v9084_v17, %v9083_v52 }
0x19ac   : > { %v9086_v20 = vrot.slane %v9085_v42, 1 }
0x19ae   : > { %v9087_v5 = vadd.f32 %v9086_v20, %v9085_v42 }
0x19b0   : > { %14594 = vrcp.f32 %v9087_v5 }
0x19ba   : > { %v14595_v22 = vpop.eup %14594 }
0x19bb   : > { %v9089_v8 = vmul.f32 %v14595_v22, %v9080_v55 }
0x19bd   : > { %v9090_v40 = vmul.f32 %v9089_v8, %v9076_v32 }
0x19bf   : > { %vm9091_vm3 = vcmp.ne.f32.partialorder %v9090_v40, %v9090_v40 }
0x19c0   : > { %v9092_v60 = vsel %vm9091_vm3, 1.0, %v16430_v21 }
0x19c1   : > { %v9093_v37 = vsel %vm2283_vm7, %v9092_v60, -inf }
0x1a65   : > { %v9745_v63 = vpop.f32.mrb[16].mxu1 }
0x1a66   : > { %v9749_v62 = vsub.f32 %v9745_v63, %v14657_v1  ;;  %v13002_v38 = vpop.f32.mrb[17].mxu1 }
0x1a68   : > { %v9750_v47 = vand.u32 2147483647, %v9749_v62 }
0x1a6a   : > { %v9751_v50 = vsub.f32 %v9750_v47, %v14662_v2 }
0x1a6c   : > { %v9753_v53 = vsel %vm9752_vm2, %v9751_v50, -inf }
0x1a6d   : > { %9754 = vmax.xlane.f32.xlu0 %v9753_v53 }
0x1a71   : > { %9094 = vmax.xlane.f32.xlu0 %v9093_v37 }
0x1afa   : > { %v9755_v29 = vpop.xlane.xlu0 %9754 }
0x1afb   : > { %v9756_v6 = vmin.f32 %v8595_v9, %v9755_v29 }
0x1afd   : > { %v9757_v44 = vmin.f32 %v7492_v10, %v9756_v6 }
0x1afe   : > { %v9095_v41 = vpop.xlane.xlu0 %9094 }
0x1aff   : > { %v9760_v58 = vsel %vm2283_vm7, %v9757_v44, -inf  ;;  %v9096_v46 = vsel %vm2283_vm7, %v9095_v41, -inf }
0x1b00   : > { %v9761_v0 = vrot.slane %v9760_v58, 4  ;;  %v9097_v4 = vrot.slane %v9096_v46, 4 }
0x1b02   : > { %v9098_v18 = vmax.f32 %v9096_v46, %v9097_v4  ;;  %v9762_v36 = vmax.f32 %v9760_v58, %v9761_v0 }
0x1b04   : > { %v9099_v51 = vrot.slane %v9098_v18, 2  ;;  %v9763_v24 = vrot.slane %v9762_v36, 2 }
0x1b06   : > { %v9100_v23 = vmax.f32 %v9098_v18, %v9099_v51  ;;  %v9764_v21 = vmax.f32 %v9762_v36, %v9763_v24 }
0x1b08   : > { %v9101_v3 = vrot.slane %v9100_v23, 1  ;;  %v9765_v25 = vrot.slane %v9764_v21, 1 }
0x1b0a   : > { %v9102_v31 = vmax.f32 %v9100_v23, %v9101_v3  ;;  %v9766_v34 = vmax.f32 %v9764_v21, %v9765_v25 }
0x1b0c   : > { %v9103_v59 = vmax.f32 %v15932_v26, %v9102_v31 }
0x1b0e   : > { %vm9104_vm4 = vcmp.gt.f32.partialorder %v9103_v59, 0.0  ;;  %14540 = vpush %v9103_v59 }
0x1b0f   : > { %v9107_v33 = vsel %vm9104_vm4, %v15936_v7, %v9090_v40   ;;  %14542 = vpush %v9766_v34 }
0x1b10   : > { %v16445_v0 = vmov %v9107_v33 }
0x1b3f   : > { %s14541_s5 = spop %14540 }
0x1b40   : > { %p9759_p0 = scmp.gt.f32.partialorder %s14541_s5, 0.0  ;;  %s14543_s12 = spop %14542 }
0x1b41   : > { %p9768_p1 = scmp.le.f32.partialorder %s14543_s12, 0.0 }
0x1b43   : > { %p9769_p2 = por %p9768_p1, %p9759_p0 }
0x1b45   : > { %p50_p4 = pneg %p9769_p2 }
0x1b47   : > { %p51_p5 = pnand %p50_p4, %p49_p3 }
0x1b48   :  { %9771 = vst [vmem:[%s16356_s6] sm:$0x3] (%p51_p5), %v9107_v33 }
0x1b49   :  { %54 = sbr.rel (!%p51_p5) target bundleno = 12 (0xc), region = 51 }

</bundles_post_ra>
